<compile_context>
chip_gen: v7x
topology: tpu7x:2x2x1
jax: 0.10.0
libtpu: 0.0.40
codegen_flags: <defaults>
</compile_context>

<pallas_src>
import jax
import jax.numpy as jnp
from jax.experimental import pallas as pl
from jax.experimental.pallas import tpu as pltpu


# ----------------------------------------------------------------------------
# Pallas kernel: fused LM-head matmul + online logsumexp + label-logit extract.
# grid = (token tiles [parallel], vocab tiles [arbitrary / reduction]).
# ----------------------------------------------------------------------------
def _ce_head_kernel(h_ref, w_ref, lab_ref, ce_ref, m_sc, l_sc, z_sc):
    """h_ref: (TN, H) bf16, w_ref: (H, TV) bf16, lab_ref: (TN, 1) i32,
    ce_ref: (TN, 1) f32 = logsumexp_v(logits) - logits[n, labels[n]]."""
    j = pl.program_id(1)
    tv = w_ref.shape[1]

    @pl.when(j == 0)
    def _init():
        m_sc[...] = jnp.full_like(m_sc, -jnp.inf)
        l_sc[...] = jnp.zeros_like(l_sc)
        z_sc[...] = jnp.zeros_like(z_sc)

    # (TN, TV) logits for this (token tile, vocab tile): MXU, f32 accumulate.
    logits = jnp.dot(h_ref[...], w_ref[...],
                     preferred_element_type=jnp.float32)

    # Online logsumexp accumulation (all f32).
    m_prev = m_sc[...]
    m_new = jnp.maximum(m_prev, jnp.max(logits, axis=1, keepdims=True))
    l_sc[...] = (l_sc[...] * jnp.exp(m_prev - m_new)
                 + jnp.sum(jnp.exp(logits - m_new), axis=1, keepdims=True))
    m_sc[...] = m_new

    # Label logit: each label falls in exactly one vocab tile -> masked
    # row-reduce of this tile's logits (VPU/XLU filler under the MXU stream).
    col = jax.lax.broadcasted_iota(jnp.int32, logits.shape, 1) + j * tv
    hit = col == lab_ref[...]                              # (TN, TV)
    z_sc[...] += jnp.sum(jnp.where(hit, logits, 0.0), axis=1, keepdims=True)

    @pl.when(j == pl.num_programs(1) - 1)
    def _finalize():
        ce_ref[...] = m_sc[...] + jnp.log(l_sc[...]) - z_sc[...]


def fused_ce_per_token(hidden, w_head, labels, *, tn=256, tv=512,
                       vmem_limit_bytes=48 * 1024 * 1024):
    """Per-token cross-entropy of softmax(hidden @ w_head) vs labels, without
    materializing the (N, V) logits in HBM.

    hidden: (N, H), w_head: (H, V) (cast to bf16 inside), labels: (N,) int.
    Returns (N,) f32 CE (== CrossEntropyLoss(reduction='none')).

    VMEM per step ~= 2*TN*H*2 + 2*H*TV*2 + TN*TV*4 (logits temp) + small;
    defaults (tn=256, tv=512) stay well under v7x's 64 MiB for H up to a few
    thousand.
    """
    N, H = hidden.shape
    H2, V = w_head.shape
    assert H == H2
    tn = min(tn, N)
    tv = min(tv, V)
    assert N % tn == 0 and V % tv == 0, (N, tn, V, tv)
    assert tn % 8 == 0 and (tv % 128 == 0 or tv == V)

    h_bf = hidden.astype(jnp.bfloat16)
    w_bf = w_head.astype(jnp.bfloat16)
    lab2 = labels.reshape(N, 1).astype(jnp.int32)

    ce = pl.pallas_call(
        _ce_head_kernel,
        out_shape=jax.ShapeDtypeStruct((N, 1), jnp.float32),
        grid_spec=pltpu.PrefetchScalarGridSpec(
            num_scalar_prefetch=0,
            grid=(N // tn, V // tv),
            in_specs=[
                pl.BlockSpec((tn, H), lambda i, j: (i, 0)),   # token tile
                pl.BlockSpec((H, tv), lambda i, j: (0, j)),   # vocab tile (streamed)
                pl.BlockSpec((tn, 1), lambda i, j: (i, 0)),   # labels for token tile
            ],
            out_specs=pl.BlockSpec((tn, 1), lambda i, j: (i, 0)),
            scratch_shapes=[
                pltpu.VMEM((tn, 1), jnp.float32),   # running max
                pltpu.VMEM((tn, 1), jnp.float32),   # running sum-exp
                pltpu.VMEM((tn, 1), jnp.float32),   # label logit accumulator
            ],
        ),
        compiler_params=pltpu.CompilerParams(
            dimension_semantics=("parallel", "arbitrary"),
            vmem_limit_bytes=vmem_limit_bytes,
        ),
    )(h_bf, w_bf, lab2)
    return ce[:, 0]


def weighted_ce_head_loss(hidden, w_head, labels, label_weights, *, tn=256, tv=512):
    """loss = sum(CE(hidden @ w_head, labels) * w) / sum(w > 0).

    The (N, V) matmul + softmax normalizer + label-logit extraction is one
    Pallas kernel (single streaming pass over the LM-head weight); the O(N)
    weighted reduction is cheap and stays in plain JAX.
    """
    ce = fused_ce_per_token(hidden, w_head, labels, tn=tn, tv=tv)   # (N,)
    w = label_weights.astype(jnp.float32)
    # NB: if all weights are zero this yields inf/nan, matching the PyTorch module.
    return jnp.sum(ce * w) / jnp.sum((w > 0).astype(jnp.float32))


# ----------------------------------------------------------------------------
# Glue: deterministic synthetic "causal LM" body (embedding + one dense layer)
# standing in for AutoModelForCausalLM; parameters initialized in-script.
# ----------------------------------------------------------------------------
def make_params(key, vocab, hidden):
    k_emb, k_body, k_head = jax.random.split(key, 3)
    emb = jax.random.normal(k_emb, (vocab, hidden), jnp.float32) * 0.02
    w_body = jax.random.normal(k_body, (hidden, hidden), jnp.float32) * 0.02
    w_head = jax.random.normal(k_head, (hidden, vocab), jnp.float32) * 0.02
    return emb, w_body, w_head


def forward_loss(params, input_ids, labels, label_weights):
    emb, w_body, w_head = params
    B, S = input_ids.shape
    H = emb.shape[1]
    # "model body" (glue, plain JAX)
    hidden = jnp.tanh(emb[input_ids].reshape(B * S, H) @ w_body)
    # loss head (Pallas kernel + cheap JAX epilogue)
    return weighted_ce_head_loss(hidden, w_head,
                                 labels.reshape(-1), label_weights.reshape(-1))


def reference_loss(params, input_ids, labels, label_weights):
    emb, w_body, w_head = params
    B, S = input_ids.shape
    H = emb.shape[1]
    hidden = jnp.tanh(emb[input_ids].reshape(B * S, H) @ w_body)
    logits = hidden @ w_head
    lab = labels.reshape(-1)
    w = label_weights.reshape(-1)
    lse = jax.scipy.special.logsumexp(logits, axis=-1)
    z = jnp.take_along_axis(logits, lab[:, None], axis=1)[:, 0]
    ce = lse - z
    return jnp.sum(ce * w) / jnp.sum(w > 0)


if __name__ == "__main__":
    # Small but tiling-exercising shapes: N = B*S = 512 tokens (2 token tiles),
    # V = 1024 (2 vocab tiles of 512), H = 256.
    B, S, H, V = 2, 256, 256, 1024

    key = jax.random.PRNGKey(0)
    k_par, k_ids, k_lab, k_w = jax.random.split(key, 4)

    params = make_params(k_par, V, H)
    input_ids = jax.random.randint(k_ids, (B, S), 0, V, dtype=jnp.int32)
    labels = jax.random.randint(k_lab, (B, S), 0, V, dtype=jnp.int32)
    # some zero weights (masked/prompt tokens), some positive
    label_weights = (jax.random.uniform(k_w, (B, S)) > 0.3).astype(jnp.float32)
    label_weights = label_weights.at[0, 0].set(1.0)  # guarantee sum(w>0) > 0

    loss = forward_loss(params, input_ids, labels, label_weights)
    loss = jax.block_until_ready(loss)

    ref = reference_loss(params, input_ids, labels, label_weights)
    # bf16 matmul inputs (f32 accumulation) vs the all-f32 reference.
    assert jnp.allclose(loss, ref, rtol=2e-3, atol=2e-3), (loss, ref)
    assert jnp.isfinite(loss)

    print("KERNEL_OK")
</pallas_src>

<mosaic_0001>
module attributes {stable_mosaic.version = 11 : i64} {
  func.func @_ce_head_kernel(%arg0: i32, %arg1: i32, %arg2: memref<256x256xbf16, #tpu.memory_space<vmem>>, %arg3: memref<256x512xbf16, #tpu.memory_space<vmem>>, %arg4: memref<256x1xi32, #tpu.memory_space<vmem>>, %arg5: memref<256x1xf32, #tpu.memory_space<vmem>>, %arg6: memref<256x1xf32, #tpu.memory_space<vmem>>, %arg7: memref<256x1xf32, #tpu.memory_space<vmem>>, %arg8: memref<256x1xf32, #tpu.memory_space<vmem>>) attributes {dimension_semantics = [#tpu.dimension_semantics<parallel>, #tpu.dimension_semantics<arbitrary>], iteration_bounds = array<i64: 2, 2>, scalar_prefetch = 0 : i64, scratch_operands = 3 : i64, tpu.core_type = #tpu.core_type<tc>, window_params = [{transform_indices = @transform_0, window_bounds = array<i64: 256, 256>}, {transform_indices = @transform_1, window_bounds = array<i64: 256, 512>}, {transform_indices = @transform_2, window_bounds = array<i64: 256, 1>}, {transform_indices = @transform_3, window_bounds = array<i64: 256, 1>}]} {
    %c0_i32 = arith.constant 0 : i32
    %0 = arith.cmpi eq, %arg1, %c0_i32 : i32
    %1 = arith.extui %0 : i1 to i32
    %c0_i32_0 = arith.constant 0 : i32
    %2 = arith.cmpi ne, %1, %c0_i32_0 : i32
    scf.if %2 {
      %cst_23 = arith.constant 0xFF800000 : f32
      %39 = vector.broadcast %cst_23 : f32 to vector<256x1xf32>
      %c0_24 = arith.constant 0 : index
      %c0_25 = arith.constant 0 : index
      %40 = vector.load %arg6[%c0_24, %c0_25] : memref<256x1xf32, #tpu.memory_space<vmem>>, vector<256x1xf32>
      tpu.vector_store %arg6[%c0_24, %c0_25], %39 {strides = array<i32>} : memref<256x1xf32, #tpu.memory_space<vmem>>, vector<256x1xf32>,
      %cst_26 = arith.constant 0.000000e+00 : f32
      %41 = vector.broadcast %cst_26 : f32 to vector<256x1xf32>
      %c0_27 = arith.constant 0 : index
      %c0_28 = arith.constant 0 : index
      %42 = vector.load %arg7[%c0_27, %c0_28] : memref<256x1xf32, #tpu.memory_space<vmem>>, vector<256x1xf32>
      tpu.vector_store %arg7[%c0_27, %c0_28], %41 {strides = array<i32>} : memref<256x1xf32, #tpu.memory_space<vmem>>, vector<256x1xf32>,
      %cst_29 = arith.constant 0.000000e+00 : f32
      %43 = vector.broadcast %cst_29 : f32 to vector<256x1xf32>
      %c0_30 = arith.constant 0 : index
      %c0_31 = arith.constant 0 : index
      %44 = vector.load %arg8[%c0_30, %c0_31] : memref<256x1xf32, #tpu.memory_space<vmem>>, vector<256x1xf32>
      tpu.vector_store %arg8[%c0_30, %c0_31], %43 {strides = array<i32>} : memref<256x1xf32, #tpu.memory_space<vmem>>, vector<256x1xf32>,
    } else {
    }
    %c0 = arith.constant 0 : index
    %c0_1 = arith.constant 0 : index
    %3 = vector.load %arg2[%c0, %c0_1] : memref<256x256xbf16, #tpu.memory_space<vmem>>, vector<256x256xbf16>
    %c0_2 = arith.constant 0 : index
    %c0_3 = arith.constant 0 : index
    %4 = vector.load %arg3[%c0_2, %c0_3] : memref<256x512xbf16, #tpu.memory_space<vmem>>, vector<256x512xbf16>
    %cst = arith.constant dense<0.000000e+00> : vector<256x512xf32>
    %5 = tpu.matmul %3, %4, %cst {dimension_numbers = #tpu.dot_dimension_numbers<[1], [0], [0], [1], [0, 0, 1, 1], [], []>} : vector<256x256xbf16>, vector<256x512xbf16>, vector<256x512xf32> -> vector<256x512xf32>
    %c0_4 = arith.constant 0 : index
    %c0_5 = arith.constant 0 : index
    %6 = vector.load %arg6[%c0_4, %c0_5] : memref<256x1xf32, #tpu.memory_space<vmem>>, vector<256x1xf32>
    %cst_6 = arith.constant dense<0xFF800000> : vector<256xf32>
    %7 = vector.multi_reduction <maximumf>, %5, %cst_6 [1] : vector<256x512xf32> to vector<256xf32>
    %8 = vector.shape_cast %7 : vector<256xf32> to vector<256x1xf32>
    %9 = arith.maximumf %6, %8 : vector<256x1xf32>
    %c0_7 = arith.constant 0 : index
    %c0_8 = arith.constant 0 : index
    %10 = vector.load %arg7[%c0_7, %c0_8] : memref<256x1xf32, #tpu.memory_space<vmem>>, vector<256x1xf32>
    %11 = arith.subf %6, %9 : vector<256x1xf32>
    %12 = math.exp %11 : vector<256x1xf32>
    %13 = arith.mulf %10, %12 : vector<256x1xf32>
    %14 = vector.broadcast %9 : vector<256x1xf32> to vector<256x512xf32>
    %15 = arith.subf %5, %14 : vector<256x512xf32>
    %16 = math.exp %15 : vector<256x512xf32>
    %cst_9 = arith.constant dense<0.000000e+00> : vector<256xf32>
    %17 = vector.multi_reduction <add>, %16, %cst_9 [1] : vector<256x512xf32> to vector<256xf32>
    %18 = vector.shape_cast %17 : vector<256xf32> to vector<256x1xf32>
    %19 = arith.addf %13, %18 : vector<256x1xf32>
    %c0_10 = arith.constant 0 : index
    %c0_11 = arith.constant 0 : index
    %20 = vector.load %arg7[%c0_10, %c0_11] : memref<256x1xf32, #tpu.memory_space<vmem>>, vector<256x1xf32>
    tpu.vector_store %arg7[%c0_10, %c0_11], %19 {strides = array<i32>} : memref<256x1xf32, #tpu.memory_space<vmem>>, vector<256x1xf32>,
    %c0_12 = arith.constant 0 : index
    %c0_13 = arith.constant 0 : index
    %21 = vector.load %arg6[%c0_12, %c0_13] : memref<256x1xf32, #tpu.memory_space<vmem>>, vector<256x1xf32>
    tpu.vector_store %arg6[%c0_12, %c0_13], %9 {strides = array<i32>} : memref<256x1xf32, #tpu.memory_space<vmem>>, vector<256x1xf32>,
    %22 = tpu.iota {dimensions = array<i32: 1>} : vector<256x512xi32>
    %c512_i32 = arith.constant 512 : i32
    %23 = arith.muli %arg1, %c512_i32 : i32
    %24 = vector.broadcast %23 : i32 to vector<256x512xi32>
    %25 = arith.addi %22, %24 : vector<256x512xi32>
    %c0_14 = arith.constant 0 : index
    %c0_15 = arith.constant 0 : index
    %26 = vector.load %arg4[%c0_14, %c0_15] : memref<256x1xi32, #tpu.memory_space<vmem>>, vector<256x1xi32>
    %27 = vector.broadcast %26 : vector<256x1xi32> to vector<256x512xi32>
    %28 = arith.cmpi eq, %25, %27 : vector<256x512xi32>
    %c0_16 = arith.constant 0 : index
    %c0_17 = arith.constant 0 : index
    %29 = vector.load %arg8[%c0_16, %c0_17] : memref<256x1xf32, #tpu.memory_space<vmem>>, vector<256x1xf32>
    %cst_18 = arith.constant 0.000000e+00 : f32
    %30 = vector.broadcast %cst_18 : f32 to vector<256x512xf32>
    %31 = arith.select %28, %5, %30 : vector<256x512xi1>, vector<256x512xf32>
    %cst_19 = arith.constant dense<0.000000e+00> : vector<256xf32>
    %32 = vector.multi_reduction <add>, %31, %cst_19 [1] : vector<256x512xf32> to vector<256xf32>
    %33 = vector.shape_cast %32 : vector<256xf32> to vector<256x1xf32>
    %34 = arith.addf %29, %33 : vector<256x1xf32>
    %c0_20 = arith.constant 0 : index
    %c0_21 = arith.constant 0 : index
    %35 = vector.load %arg8[%c0_20, %c0_21] : memref<256x1xf32, #tpu.memory_space<vmem>>, vector<256x1xf32>
    tpu.vector_store %arg8[%c0_20, %c0_21], %34 {strides = array<i32>} : memref<256x1xf32, #tpu.memory_space<vmem>>, vector<256x1xf32>,
    %c1_i32 = arith.constant 1 : i32
    %36 = arith.cmpi eq, %arg1, %c1_i32 : i32
    %37 = arith.extui %36 : i1 to i32
    %c0_i32_22 = arith.constant 0 : i32
    %38 = arith.cmpi ne, %37, %c0_i32_22 : i32
    scf.if %38 {
      %c0_23 = arith.constant 0 : index
      %c0_24 = arith.constant 0 : index
      %39 = vector.load %arg6[%c0_23, %c0_24] : memref<256x1xf32, #tpu.memory_space<vmem>>, vector<256x1xf32>
      %c0_25 = arith.constant 0 : index
      %c0_26 = arith.constant 0 : index
      %40 = vector.load %arg7[%c0_25, %c0_26] : memref<256x1xf32, #tpu.memory_space<vmem>>, vector<256x1xf32>
      %41 = math.log %40 : vector<256x1xf32>
      %42 = arith.addf %39, %41 : vector<256x1xf32>
      %c0_27 = arith.constant 0 : index
      %c0_28 = arith.constant 0 : index
      %43 = vector.load %arg8[%c0_27, %c0_28] : memref<256x1xf32, #tpu.memory_space<vmem>>, vector<256x1xf32>
      %44 = arith.subf %42, %43 : vector<256x1xf32>
      %c0_29 = arith.constant 0 : index
      %c0_30 = arith.constant 0 : index
      %45 = vector.load %arg5[%c0_29, %c0_30] : memref<256x1xf32, #tpu.memory_space<vmem>>, vector<256x1xf32>
      tpu.vector_store %arg5[%c0_29, %c0_30], %44 {strides = array<i32>} : memref<256x1xf32, #tpu.memory_space<vmem>>, vector<256x1xf32>,
    } else {
    }
    return
  }
  func.func @transform_0(%arg0: i32, %arg1: i32) -> (i32, i32) {
    %c0_i32 = arith.constant 0 : i32
    %c0_i32_0 = arith.constant 0 : i32
    return %arg0, %c0_i32 : i32, i32
  }
  func.func @transform_1(%arg0: i32, %arg1: i32) -> (i32, i32) {
    %c0_i32 = arith.constant 0 : i32
    %c0_i32_0 = arith.constant 0 : i32
    return %c0_i32, %arg1 : i32, i32
  }
  func.func @transform_2(%arg0: i32, %arg1: i32) -> (i32, i32) {
    %c0_i32 = arith.constant 0 : i32
    %c0_i32_0 = arith.constant 0 : i32
    return %arg0, %c0_i32 : i32, i32
  }
  func.func @transform_3(%arg0: i32, %arg1: i32) -> (i32, i32) {
    %c0_i32 = arith.constant 0 : i32
    %c0_i32_0 = arith.constant 0 : i32
    return %arg0, %c0_i32 : i32, i32
  }
}

</mosaic_0001>

<bundles_post_ra>
// kernel: tpu_custom_call.1
= control target key start
LH: loop header
LB: loop body
LE: loop exit
PB: predicated region body
PF: predicated region fallthrough
CT: control target
= control target key end

     0   :  { %8 = vsyncpa [#allocation6], 0  ;;  %s6241_s0 = inlined_call_operand.vmem [shape: bf16[512,256], index: 0, kind: input, shape index: {}]   ;;  %s6242_s1 = inlined_call_operand.hbm [shape: bf16[256,1024], index: 1, kind: input, shape index: {}]   ;;  %s6243_s2 = inlined_call_operand.vmem [shape: s32[512,1], index: 2, kind: input, shape index: {}]   ;;  %s6244_s3 = inlined_call_operand.vmem [shape: f32[512,1], index: 3, kind: output, shape index: {}]  }
   0x1   :  { %10 = vsyncpa [#allocation6 + $0x1], 0  ;;  %s4365_s12 = smov 0   ;;  %s4367_s13 = smov 0  }
   0x2   :  { %s4369_s14 = smov 0   ;;  %s4371_s15 = smov 0  }
   0x3   :  { %s4373_s16 = smov 0   ;;  %s4375_s17 = smov 0  }
   0x4   :  { %s4377_s18 = smov 0   ;;  %s4379_s19 = smov 0  }
   0x5 LB: > { %s3514_s20 = sadd.s32 4294967295, %s4336_s19   ;;  %s25_s21 = sadd.s32 1, %s4328_s17  ;;  %s4336_s19 = sphi %s4379_s19, %s16_s19   ;;  %s4332_s18 = sphi %s4377_s18, %s6742_s18   ;;  %s4328_s17 = sphi %s4375_s17, %s6741_s17   ;;  %s4324_s16 = sphi %s4373_s16, %s6740_s16   ;;  %s4320_s15 = sphi %s4371_s15, %s6739_s15   ;;  %s4316_s14 = sphi %s4369_s14, %s6738_s14   ;;  %s4312_s13 = sphi %s4367_s13, %s6737_s13   ;;  %s4308_s12 = sphi %s4365_s12, %s6736_s12  }
   0x6   : > { %p26_p0 = scmp.ge.s32.totalorder %s25_s21, 2  ;;  %s28_s22 = sadd.s32 1, %s4332_s18 }
   0x7   : > { %s61_s23 = sadd.s32 1, %s4316_s14  ;;  %p68_p1 = scmp.ne.s32.totalorder %s4316_s14, %s4312_s13 }
   0x8   : > { %s6744_s21 = smov (%p26_p0, %s25_s21), 0  ;;  %s6746_s22 = smov (!%p26_p0, %s28_s22), %s4332_s18 }
   0x9   : > { %s58_s24 = ssub.s32 %s4328_s17, %s6744_s21  ;;  %p69_p2 = scmp.eq.s32.totalorder %s4336_s19, 0 }
   0xa   : > { %p30_p3 = scmp.ge.s32.totalorder %s6746_s22, 2  ;;  %p59_p4 = scmp.eq.s32.totalorder %s58_s24, 0 }
   0xb   : > { %p4415_p5 = por %p69_p2, %p68_p1  ;;  %p74_p6 = scmp.ne.s32.totalorder %s4312_s13, %s4308_s12 }
   0xc   : > { %s6748_s22 = smov (%p30_p3, %s6746_s22), 0  ;;  %p75_p7 = scmp.eq.s32.totalorder %s3514_s20, 0 }
   0xd   : > { %s4423_s26 = scalar_select %p59_p4, %s4316_s14, %s61_s23  }
   0xe   : > { %p3639_p8 = scmp.lt.s32.totalorder %s4336_s19, 4  ;;  %s160_s27 = sand.u32 1, %s4316_s14  }
   0xf   : > { %p4427_p9 = por %p75_p7, %p74_p6  ;;  %s3518_s29 = sshll.u32 %s160_s27, 9 }
  0x10   : > { %s3631_s30 = sshll.u32 %s4328_s17, 8  ;;  %s164_s7 = scalar_lea.vmem [#allocation5], %s3518_s29 }
  0x11   : > { %s4435_s6 = scalar_lea.hbm %s6242_s1, %s3631_s30  ;;  %s171_s8 = sshll.u32 %s164_s7, 4  ;;  %s4443_s8 = int_to_ptr.vmem [resolvable:$true] %s171_s8 }
  0x12   : > { %p4439_p10 = pnand %p3639_p8, %p4415_p5  ;;  %s4446_s10 = scalar_lea.sflag [#allocation6], %s160_s27 }
  0x13   : > { %s4240_s11 = scalar_lea.hbm %s4435_s6, 8192  ;;  %s4245_s23 = scalar_lea.hbm %s6242_s1, 16384 }
  0x14   : > { %p4241_p12 = scmp.ne.s32.totalorder %s4435_s6, %s4240_s11  ;;  %p4242_p13 = pneg %p4439_p10 }
  0x15   : > { %p4246_p2 = scmp.lt.u32.totalorder %s4435_s6, %s6242_s1  ;;  %p4247_p3 = scmp.lt.u32.totalorder %s4245_s23, %s4240_s11 }
  0x16   : > { %p4243_p0 = pnand %p4242_p13, %p4241_p12  ;;  %p4249_p5 = scmp.lt.u32.totalorder %s4240_s11, %s4435_s6 }
  0x17   : > { %p4248_p4 = por %p4247_p3, %p4246_p2 }
  0x18   : > { %p4244_p1 = pneg %p4243_p0 }
  0x19   : > { %p4250_p6 = por %p4249_p5, %p4248_p4 }
  0x1b   : > { %p4251_p7 = pnand %p4250_p6, %p4244_p1 }
  0x1d   : > { %4254 = shalt.err (!%p4251_p7)
}
  0x1e   : > { %s4255_s27 = scalar_lea.vmem %s4443_s8, 8192  ;;  %s4338_s29 = smov [#allocation5]  }
  0x1f   : > { %p4256_p8 = scmp.ne.s32.totalorder %s4443_s8, %s4255_s27  ;;  %s4260_s30 = sshll.u32 %s4338_s29, 4  ;;  %s4261_s30 = int_to_ptr.vmem [resolvable:$false] %s4260_s30 }
  0x20   : > { %s4262_s4 = scalar_lea.vmem %s4261_s30, 16384  ;;  %p4263_p11 = scmp.lt.s32.totalorder %s4443_s8, %s4261_s30 }
  0x21   : > { %p4258_p12 = pnand %p4256_p8, %p4242_p13  ;;  %p4264_p2 = scmp.lt.s32.totalorder %s4262_s4, %s4255_s27 }
  0x23   : > { %p4259_p0 = pneg %p4258_p12  ;;  %p4265_p3 = por %p4264_p2, %p4263_p11 }
  0x25   : > { %p4266_p4 = pnand %p4265_p3, %p4259_p0 }
  0x27   : > { %4269 = shalt.err (!%p4266_p4)
}
  0x28   : > { %s4339_s5 = smov 512   ;;  %s4340_s7 = smov 256  }
  0x29   : > { %s4341_s11 = smov 16   ;;  %p188_p13 = scmp.lt.s32.totalorder %s4336_s19, 5 }
  0x2a   : > { %3638 = dma.hbm_to_vmem [thread:$0]  (!%p4439_p10), %s4435_s6, 8192, %s4443_s8, %s4446_s10, %s4339_s5, %s4340_s7, %s4341_s11  }
  0x2b   : > { %p6405_p1 = scmp.ge.s32.totalorder %s4336_s19, 1 }
  0x2d   : > { %p189_p5 = pnand %p6405_p1, %p188_p13 }
  0x2f   : > { %192 = sbr.rel (%p189_p5) target bundleno = 1082 (0x43a), region = 32 }
  0x36   : > { %s194_s12 = sand.u32 1, %s4312_s13  }
  0x37   : > { %s3522_s20 = sshll.u32 %s194_s12, 9  ;;  %s195_s23 = scalar_lea.sflag [#allocation6], %s194_s12 }
  0x38   : > { %s4478_s24 = scalar_lea.vmem [#allocation5], %s3522_s20 }
  0x39   : > { %4303 = dma.done.wait (%p4427_p9), %s195_s23, 8192  }
  0x3a   : > { %4305 = vsyncadd (%p4427_p9), %s195_s23, 4294959104  ;;  %s3523_s25 = sshll.u32 %s4324_s16, 5  ;;  %p3530_p9 = scmp.ne.s32.totalorder %s4320_s15, 0 }
  0x3b   : > { %p233_p11 = scmp.lt.s32.totalorder %s3523_s25, 63  ;;  %vm256_vm0 = vcmask (!%p3530_p9), 7168   ;;  %v4342_v0 = vmov (!%p3530_p9), -inf   ;;  %v4343_v1 = vmov (!%p3530_p9), 0.0  }
  0x3c   : > { %255 = sbr.rel (%p3530_p9) target bundleno = 108 (0x6c), region = 40  ;;  %257 = vst.msk [vmem:[#allocation2] sm:$0xff] (!%p3530_p9), %vm256_vm0, %v4342_v0  ;;  %258 = vst.msk [vmem:[#allocation2 + $0x8] sm:$0xff] (!%p3530_p9), %vm256_vm0, %v4342_v0 }
  0x3d   : > { %s6750_s25 = smov (!%p233_p11, %s3523_s25), 63  ;;  %259 = vst.msk [vmem:[#allocation2 + $0x10] sm:$0xff] (!%p3530_p9), %vm256_vm0, %v4342_v0  ;;  %260 = vst.msk [vmem:[#allocation2 + $0x18] sm:$0xff] (!%p3530_p9), %vm256_vm0, %v4342_v0 }
  0x3e   : > { %s3632_s6 = sshll.u32 %s6750_s25, 3  ;;  %261 = vst.msk [vmem:[#allocation2 + $0x20] sm:$0xff] (!%p3530_p9), %vm256_vm0, %v4342_v0  ;;  %262 = vst.msk [vmem:[#allocation2 + $0x28] sm:$0xff] (!%p3530_p9), %vm256_vm0, %v4342_v0 }
  0x3f   : > { %s4488_s10 = scalar_lea.vmem %s6241_s0, %s3632_s6  ;;  %s4493_s30 = scalar_lea.vmem %s6243_s2, %s3632_s6  ;;  %263 = vst.msk [vmem:[#allocation2 + $0x30] sm:$0xff] (!%p3530_p9), %vm256_vm0, %v4342_v0  ;;  %264 = vst.msk [vmem:[#allocation2 + $0x38] sm:$0xff] (!%p3530_p9), %vm256_vm0, %v4342_v0 }
  0x40   : > { %s4498_s28 = scalar_lea.vmem %s6244_s3, %s3632_s6  ;;  %265 = vst.msk [vmem:[#allocation2 + $0x40] sm:$0xff] (!%p3530_p9), %vm256_vm0, %v4342_v0  ;;  %266 = vst.msk [vmem:[#allocation2 + $0x48] sm:$0xff] (!%p3530_p9), %vm256_vm0, %v4342_v0 }
  0x41   : > { %267 = vst.msk [vmem:[#allocation2 + $0x50] sm:$0xff] (!%p3530_p9), %vm256_vm0, %v4342_v0  ;;  %268 = vst.msk [vmem:[#allocation2 + $0x58] sm:$0xff] (!%p3530_p9), %vm256_vm0, %v4342_v0 }
  0x42   : > { %269 = vst.msk [vmem:[#allocation2 + $0x60] sm:$0xff] (!%p3530_p9), %vm256_vm0, %v4342_v0  ;;  %270 = vst.msk [vmem:[#allocation2 + $0x68] sm:$0xff] (!%p3530_p9), %vm256_vm0, %v4342_v0 }
  0x43   : > { %271 = vst.msk [vmem:[#allocation2 + $0x70] sm:$0xff] %vm256_vm0, %v4342_v0  ;;  %272 = vst.msk [vmem:[#allocation2 + $0x78] sm:$0xff] %vm256_vm0, %v4342_v0 }
  0x44   : > { %273 = vst.msk [vmem:[#allocation2 + $0x80] sm:$0xff] %vm256_vm0, %v4342_v0  ;;  %274 = vst.msk [vmem:[#allocation2 + $0x88] sm:$0xff] %vm256_vm0, %v4342_v0 }
  0x45   : > { %275 = vst.msk [vmem:[#allocation2 + $0x90] sm:$0xff] %vm256_vm0, %v4342_v0  ;;  %276 = vst.msk [vmem:[#allocation2 + $0x98] sm:$0xff] %vm256_vm0, %v4342_v0 }
  0x46   : > { %277 = vst.msk [vmem:[#allocation2 + $0xa0] sm:$0xff] %vm256_vm0, %v4342_v0  ;;  %278 = vst.msk [vmem:[#allocation2 + $0xa8] sm:$0xff] %vm256_vm0, %v4342_v0 }
  0x47   : > { %279 = vst.msk [vmem:[#allocation2 + $0xb0] sm:$0xff] %vm256_vm0, %v4342_v0  ;;  %280 = vst.msk [vmem:[#allocation2 + $0xb8] sm:$0xff] %vm256_vm0, %v4342_v0 }
  0x48   : > { %281 = vst.msk [vmem:[#allocation2 + $0xc0] sm:$0xff] %vm256_vm0, %v4342_v0  ;;  %282 = vst.msk [vmem:[#allocation2 + $0xc8] sm:$0xff] %vm256_vm0, %v4342_v0 }
  0x49   : > { %283 = vst.msk [vmem:[#allocation2 + $0xd0] sm:$0xff] %vm256_vm0, %v4342_v0  ;;  %284 = vst.msk [vmem:[#allocation2 + $0xd8] sm:$0xff] %vm256_vm0, %v4342_v0 }
  0x4a   : > { %285 = vst.msk [vmem:[#allocation2 + $0xe0] sm:$0xff] %vm256_vm0, %v4342_v0  ;;  %286 = vst.msk [vmem:[#allocation2 + $0xe8] sm:$0xff] %vm256_vm0, %v4342_v0 }
  0x4b   : > { %287 = vst.msk [vmem:[#allocation2 + $0xf0] sm:$0xff] %vm256_vm0, %v4342_v0  ;;  %288 = vst.msk [vmem:[#allocation2 + $0xf8] sm:$0xff] %vm256_vm0, %v4342_v0 }
  0x4c   : > { %289 = vst.msk [vmem:[#allocation3] sm:$0xff] %vm256_vm0, %v4343_v1  ;;  %290 = vst.msk [vmem:[#allocation3 + $0x8] sm:$0xff] %vm256_vm0, %v4343_v1 }
  0x4d   : > { %291 = vst.msk [vmem:[#allocation3 + $0x10] sm:$0xff] %vm256_vm0, %v4343_v1  ;;  %292 = vst.msk [vmem:[#allocation3 + $0x18] sm:$0xff] %vm256_vm0, %v4343_v1 }
  0x4e   : > { %293 = vst.msk [vmem:[#allocation3 + $0x20] sm:$0xff] %vm256_vm0, %v4343_v1  ;;  %294 = vst.msk [vmem:[#allocation3 + $0x28] sm:$0xff] %vm256_vm0, %v4343_v1 }
  0x4f   : > { %295 = vst.msk [vmem:[#allocation3 + $0x30] sm:$0xff] %vm256_vm0, %v4343_v1  ;;  %296 = vst.msk [vmem:[#allocation3 + $0x38] sm:$0xff] %vm256_vm0, %v4343_v1 }
  0x50   : > { %297 = vst.msk [vmem:[#allocation3 + $0x40] sm:$0xff] %vm256_vm0, %v4343_v1  ;;  %298 = vst.msk [vmem:[#allocation3 + $0x48] sm:$0xff] %vm256_vm0, %v4343_v1 }
  0x51   : > { %299 = vst.msk [vmem:[#allocation3 + $0x50] sm:$0xff] %vm256_vm0, %v4343_v1  ;;  %300 = vst.msk [vmem:[#allocation3 + $0x58] sm:$0xff] %vm256_vm0, %v4343_v1 }
  0x52   : > { %301 = vst.msk [vmem:[#allocation3 + $0x60] sm:$0xff] %vm256_vm0, %v4343_v1  ;;  %302 = vst.msk [vmem:[#allocation3 + $0x68] sm:$0xff] %vm256_vm0, %v4343_v1 }
  0x53   : > { %303 = vst.msk [vmem:[#allocation3 + $0x70] sm:$0xff] %vm256_vm0, %v4343_v1  ;;  %304 = vst.msk [vmem:[#allocation3 + $0x78] sm:$0xff] %vm256_vm0, %v4343_v1 }
  0x54   : > { %305 = vst.msk [vmem:[#allocation3 + $0x80] sm:$0xff] %vm256_vm0, %v4343_v1  ;;  %306 = vst.msk [vmem:[#allocation3 + $0x88] sm:$0xff] %vm256_vm0, %v4343_v1 }
  0x55   : > { %307 = vst.msk [vmem:[#allocation3 + $0x90] sm:$0xff] %vm256_vm0, %v4343_v1  ;;  %308 = vst.msk [vmem:[#allocation3 + $0x98] sm:$0xff] %vm256_vm0, %v4343_v1 }
  0x56   : > { %309 = vst.msk [vmem:[#allocation3 + $0xa0] sm:$0xff] %vm256_vm0, %v4343_v1  ;;  %310 = vst.msk [vmem:[#allocation3 + $0xa8] sm:$0xff] %vm256_vm0, %v4343_v1 }
  0x57   : > { %311 = vst.msk [vmem:[#allocation3 + $0xb0] sm:$0xff] %vm256_vm0, %v4343_v1  ;;  %312 = vst.msk [vmem:[#allocation3 + $0xb8] sm:$0xff] %vm256_vm0, %v4343_v1 }
  0x58   : > { %313 = vst.msk [vmem:[#allocation3 + $0xc0] sm:$0xff] %vm256_vm0, %v4343_v1  ;;  %314 = vst.msk [vmem:[#allocation3 + $0xc8] sm:$0xff] %vm256_vm0, %v4343_v1 }
  0x59   : > { %315 = vst.msk [vmem:[#allocation3 + $0xd0] sm:$0xff] %vm256_vm0, %v4343_v1  ;;  %316 = vst.msk [vmem:[#allocation3 + $0xd8] sm:$0xff] %vm256_vm0, %v4343_v1 }
  0x5a   : > { %317 = vst.msk [vmem:[#allocation3 + $0xe0] sm:$0xff] %vm256_vm0, %v4343_v1  ;;  %318 = vst.msk [vmem:[#allocation3 + $0xe8] sm:$0xff] %vm256_vm0, %v4343_v1 }
  0x5b   : > { %319 = vst.msk [vmem:[#allocation3 + $0xf0] sm:$0xff] %vm256_vm0, %v4343_v1  ;;  %320 = vst.msk [vmem:[#allocation3 + $0xf8] sm:$0xff] %vm256_vm0, %v4343_v1 }
  0x5c   : > { %321 = vst.msk [vmem:[#allocation4] sm:$0xff] %vm256_vm0, %v4343_v1  ;;  %322 = vst.msk [vmem:[#allocation4 + $0x8] sm:$0xff] %vm256_vm0, %v4343_v1 }
  0x5d   : > { %323 = vst.msk [vmem:[#allocation4 + $0x10] sm:$0xff] %vm256_vm0, %v4343_v1  ;;  %324 = vst.msk [vmem:[#allocation4 + $0x18] sm:$0xff] %vm256_vm0, %v4343_v1 }
  0x5e   : > { %325 = vst.msk [vmem:[#allocation4 + $0x20] sm:$0xff] %vm256_vm0, %v4343_v1  ;;  %326 = vst.msk [vmem:[#allocation4 + $0x28] sm:$0xff] %vm256_vm0, %v4343_v1 }
  0x5f   : > { %327 = vst.msk [vmem:[#allocation4 + $0x30] sm:$0xff] %vm256_vm0, %v4343_v1  ;;  %328 = vst.msk [vmem:[#allocation4 + $0x38] sm:$0xff] %vm256_vm0, %v4343_v1 }
  0x60   : > { %329 = vst.msk [vmem:[#allocation4 + $0x40] sm:$0xff] %vm256_vm0, %v4343_v1  ;;  %330 = vst.msk [vmem:[#allocation4 + $0x48] sm:$0xff] %vm256_vm0, %v4343_v1 }
  0x61   : > { %331 = vst.msk [vmem:[#allocation4 + $0x50] sm:$0xff] %vm256_vm0, %v4343_v1  ;;  %332 = vst.msk [vmem:[#allocation4 + $0x58] sm:$0xff] %vm256_vm0, %v4343_v1 }
  0x62   : > { %333 = vst.msk [vmem:[#allocation4 + $0x60] sm:$0xff] %vm256_vm0, %v4343_v1  ;;  %334 = vst.msk [vmem:[#allocation4 + $0x68] sm:$0xff] %vm256_vm0, %v4343_v1 }
  0x63   : > { %335 = vst.msk [vmem:[#allocation4 + $0x70] sm:$0xff] %vm256_vm0, %v4343_v1  ;;  %336 = vst.msk [vmem:[#allocation4 + $0x78] sm:$0xff] %vm256_vm0, %v4343_v1 }
  0x64   : > { %337 = vst.msk [vmem:[#allocation4 + $0x80] sm:$0xff] %vm256_vm0, %v4343_v1  ;;  %338 = vst.msk [vmem:[#allocation4 + $0x88] sm:$0xff] %vm256_vm0, %v4343_v1 }
  0x65   : > { %339 = vst.msk [vmem:[#allocation4 + $0x90] sm:$0xff] %vm256_vm0, %v4343_v1  ;;  %340 = vst.msk [vmem:[#allocation4 + $0x98] sm:$0xff] %vm256_vm0, %v4343_v1 }
  0x66   : > { %341 = vst.msk [vmem:[#allocation4 + $0xa0] sm:$0xff] %vm256_vm0, %v4343_v1  ;;  %342 = vst.msk [vmem:[#allocation4 + $0xa8] sm:$0xff] %vm256_vm0, %v4343_v1 }
  0x67   : > { %343 = vst.msk [vmem:[#allocation4 + $0xb0] sm:$0xff] %vm256_vm0, %v4343_v1  ;;  %344 = vst.msk [vmem:[#allocation4 + $0xb8] sm:$0xff] %vm256_vm0, %v4343_v1 }
  0x68   : > { %345 = vst.msk [vmem:[#allocation4 + $0xc0] sm:$0xff] %vm256_vm0, %v4343_v1  ;;  %346 = vst.msk [vmem:[#allocation4 + $0xc8] sm:$0xff] %vm256_vm0, %v4343_v1 }
  0x69   : > { %347 = vst.msk [vmem:[#allocation4 + $0xd0] sm:$0xff] %vm256_vm0, %v4343_v1  ;;  %348 = vst.msk [vmem:[#allocation4 + $0xd8] sm:$0xff] %vm256_vm0, %v4343_v1 }
  0x6a   : > { %349 = vst.msk [vmem:[#allocation4 + $0xe0] sm:$0xff] %vm256_vm0, %v4343_v1  ;;  %350 = vst.msk [vmem:[#allocation4 + $0xe8] sm:$0xff] %vm256_vm0, %v4343_v1 }
  0x6b   : > { %351 = vst.msk [vmem:[#allocation4 + $0xf0] sm:$0xff] %vm256_vm0, %v4343_v1  ;;  %352 = vst.msk [vmem:[#allocation4 + $0xf8] sm:$0xff] %vm256_vm0, %v4343_v1 }
  0x6c PF: > { %v3712_v2 = vld [vmem:[%s4478_s24 + $0x4] ss:$16 sps:$4 sm:$0xff]   ;;  %v3714_v3 = vld [vmem:[%s4478_s24 + $0xc] ss:$16 sps:$4 sm:$0xff]   ;;  %v4344_v4 = vmov 0   ;;  %s3627_s16 = sshll.u32 %s4320_s15, 9 }
  0x6d   : > { %3710 = vset.pattern.permute.xlu0 %v4344_v4  ;;  %3711 = vset.pattern.permute.xlu1 %v4344_v4  ;;  %v3716_v5 = vld [vmem:[%s4478_s24] ss:$16 sps:$4 sm:$0xff]   ;;  %v3717_v6 = vld [vmem:[%s4478_s24 + $0x8] ss:$16 sps:$4 sm:$0xff]   ;;  %v3718_v7 = vld [vmem:[%s4478_s24 + $0x24] ss:$16 sps:$4 sm:$0xff]  }
  0x6e   : > { %929 = vmatprep.subr.bf16.mxu0 %v3712_v2  ;;  %1122 = vmatprep.subr.bf16.mxu1 %v3714_v3  ;;  %v3720_v8 = vld [vmem:[%s4478_s24 + $0x2c] ss:$16 sps:$4 sm:$0xff]   ;;  %v3722_v9 = vld [vmem:[%s4478_s24 + $0x20] ss:$16 sps:$4 sm:$0xff]   ;;  %v3723_v10 = vld [vmem:[%s4478_s24 + $0x28] ss:$16 sps:$4 sm:$0xff]  }
  0x6f   : > { %930 = vmatpush1.bf16.msra.mxu0 %v3716_v5  ;;  %1123 = vmatpush1.bf16.msra.mxu1 %v3717_v6  ;;  %v3724_v11 = vld [vmem:[%s4478_s24 + $0x44] ss:$16 sps:$4 sm:$0xff]   ;;  %v3726_v12 = vld [vmem:[%s4478_s24 + $0x4c] ss:$16 sps:$4 sm:$0xff]   ;;  %v3728_v13 = vld [vmem:[%s4478_s24 + $0x40] ss:$16 sps:$4 sm:$0xff]  }
  0x70   : > { %931 = vmatprep.subr.bf16.mxu0 %v3718_v7  ;;  %1124 = vmatprep.subr.bf16.mxu1 %v3720_v8  ;;  %v3729_v14 = vld [vmem:[%s4478_s24 + $0x48] ss:$16 sps:$4 sm:$0xff]   ;;  %v3730_v15 = vld [vmem:[%s4478_s24 + $0x64] ss:$16 sps:$4 sm:$0xff]   ;;  %v3732_v16 = vld [vmem:[%s4478_s24 + $0x6c] ss:$16 sps:$4 sm:$0xff]  }
  0x71   : > { %v3734_v17 = vld [vmem:[%s4478_s24 + $0x60] ss:$16 sps:$4 sm:$0xff]   ;;  %v3735_v18 = vld [vmem:[%s4478_s24 + $0x68] ss:$16 sps:$4 sm:$0xff]   ;;  %v3736_v19 = vld [vmem:[%s4478_s24 + $0x84] ss:$16 sps:$4 sm:$0xff]  }
  0x72   : > { %v3738_v20 = vld [vmem:[%s4478_s24 + $0x8c] ss:$16 sps:$4 sm:$0xff]   ;;  %v3740_v21 = vld [vmem:[%s4478_s24 + $0x80] ss:$16 sps:$4 sm:$0xff]   ;;  %v3741_v22 = vld [vmem:[%s4478_s24 + $0x88] ss:$16 sps:$4 sm:$0xff]  }
  0x73   : > { %932 = vmatpush1.bf16.msra.mxu0 %v3722_v9  ;;  %1125 = vmatpush1.bf16.msra.mxu1 %v3723_v10  ;;  %v3742_v23 = vld [vmem:[%s4478_s24 + $0xa4] ss:$16 sps:$4 sm:$0xff]   ;;  %v3744_v24 = vld [vmem:[%s4478_s24 + $0xac] ss:$16 sps:$4 sm:$0xff]   ;;  %v3746_v25 = vld [vmem:[%s4478_s24 + $0xa0] ss:$16 sps:$4 sm:$0xff]  }
  0x74   : > { %933 = vmatprep.subr.bf16.mxu0 %v3724_v11  ;;  %1126 = vmatprep.subr.bf16.mxu1 %v3726_v12  ;;  %v3747_v26 = vld [vmem:[%s4478_s24 + $0xa8] ss:$16 sps:$4 sm:$0xff]   ;;  %v3748_v27 = vld [vmem:[%s4478_s24 + $0xc4] ss:$16 sps:$4 sm:$0xff]   ;;  %v3750_v28 = vld [vmem:[%s4478_s24 + $0xcc] ss:$16 sps:$4 sm:$0xff]  }
  0x75   : > { %v3752_v29 = vld [vmem:[%s4478_s24 + $0xc0] ss:$16 sps:$4 sm:$0xff]   ;;  %v3753_v30 = vld [vmem:[%s4478_s24 + $0xc8] ss:$16 sps:$4 sm:$0xff]   ;;  %v3754_v31 = vld [vmem:[%s4478_s24 + $0xe4] ss:$16 sps:$4 sm:$0xff]  }
  0x76   : > { %v3756_v32 = vld [vmem:[%s4478_s24 + $0xec] ss:$16 sps:$4 sm:$0xff]   ;;  %v3758_v33 = vld [vmem:[%s4478_s24 + $0xe0] ss:$16 sps:$4 sm:$0xff]   ;;  %v3759_v34 = vld [vmem:[%s4478_s24 + $0xe8] ss:$16 sps:$4 sm:$0xff]  }
  0x77   : > { %934 = vmatpush1.bf16.msra.mxu0 %v3728_v13  ;;  %1127 = vmatpush1.bf16.msra.mxu1 %v3729_v14  ;;  %v3760_v35 = vld [vmem:[%s4478_s24 + $0x104] ss:$16 sps:$4 sm:$0xff]   ;;  %v3762_v36 = vld [vmem:[%s4478_s24 + $0x10c] ss:$16 sps:$4 sm:$0xff]   ;;  %v3764_v37 = vld [vmem:[%s4478_s24 + $0x100] ss:$16 sps:$4 sm:$0xff]  }
  0x78   : > { %935 = vmatprep.subr.bf16.mxu0 %v3730_v15  ;;  %1128 = vmatprep.subr.bf16.mxu1 %v3732_v16  ;;  %v3765_v38 = vld [vmem:[%s4478_s24 + $0x108] ss:$16 sps:$4 sm:$0xff]   ;;  %v3766_v39 = vld [vmem:[%s4478_s24 + $0x124] ss:$16 sps:$4 sm:$0xff]   ;;  %v3768_v40 = vld [vmem:[%s4478_s24 + $0x12c] ss:$16 sps:$4 sm:$0xff]  }
  0x79   : > { %v3770_v41 = vld [vmem:[%s4478_s24 + $0x120] ss:$16 sps:$4 sm:$0xff]   ;;  %v3771_v42 = vld [vmem:[%s4478_s24 + $0x128] ss:$16 sps:$4 sm:$0xff]   ;;  %v3772_v43 = vld [vmem:[%s4478_s24 + $0x144] ss:$16 sps:$4 sm:$0xff]  }
  0x7a   : > { %v3774_v44 = vld [vmem:[%s4478_s24 + $0x14c] ss:$16 sps:$4 sm:$0xff]   ;;  %v3776_v45 = vld [vmem:[%s4478_s24 + $0x140] ss:$16 sps:$4 sm:$0xff]   ;;  %v3777_v46 = vld [vmem:[%s4478_s24 + $0x148] ss:$16 sps:$4 sm:$0xff]  }
  0x7b   : > { %936 = vmatpush1.bf16.msra.mxu0 %v3734_v17  ;;  %1129 = vmatpush1.bf16.msra.mxu1 %v3735_v18  ;;  %v3778_v47 = vld [vmem:[%s4478_s24 + $0x164] ss:$16 sps:$4 sm:$0xff]   ;;  %v3780_v48 = vld [vmem:[%s4478_s24 + $0x16c] ss:$16 sps:$4 sm:$0xff]   ;;  %v3782_v49 = vld [vmem:[%s4478_s24 + $0x160] ss:$16 sps:$4 sm:$0xff]  }
  0x7c   : > { %937 = vmatprep.subr.bf16.mxu0 %v3736_v19  ;;  %1130 = vmatprep.subr.bf16.mxu1 %v3738_v20  ;;  %v3783_v50 = vld [vmem:[%s4478_s24 + $0x168] ss:$16 sps:$4 sm:$0xff]   ;;  %v3810_v51 = vld [vmem:[%s4488_s10 + $0x4] ss:$8 sps:$4 sm:$0xff]   ;;  %v3788_v54 = vld [vmem:[%s4478_s24 + $0x180] ss:$16 sps:$4 sm:$0xff]  }
  0x7d   : > { %v3784_v52 = vld [vmem:[%s4478_s24 + $0x184] ss:$16 sps:$4 sm:$0xff]   ;;  %v3786_v53 = vld [vmem:[%s4478_s24 + $0x18c] ss:$16 sps:$4 sm:$0xff]   ;;  %961 = vmatprep.mubr.bf16.mxu0 %v3810_v51  ;;  %1154 = vmatprep.mubr.bf16.mxu1 %v3810_v51  ;;  %v3789_v55 = vld [vmem:[%s4478_s24 + $0x188] ss:$16 sps:$4 sm:$0xff]  }
  0x7e   : > { %v3790_v56 = vld [vmem:[%s4478_s24 + $0x1a4] ss:$16 sps:$4 sm:$0xff]   ;;  %v3792_v57 = vld [vmem:[%s4478_s24 + $0x1ac] ss:$16 sps:$4 sm:$0xff]   ;;  %v3794_v60 = vld [vmem:[%s4478_s24 + $0x1a0] ss:$16 sps:$4 sm:$0xff]  }
  0x7f   : > { %938 = vmatpush1.bf16.msra.mxu0 %v3740_v21  ;;  %1131 = vmatpush1.bf16.msra.mxu1 %v3741_v22  ;;  %v2511_v58 = vld [vmem:[%s4493_s30] sm:$0xff]  ;;  %v2514_v59 = vld [vmem:[%s4493_s30 + $0x18] sm:$0xff]  ;;  %v2516_v0 = vld [vmem:[%s4493_s30 + $0x28] sm:$0xff]  ;;  %p3628_p10 = scmp.ne.s32.totalorder %s4320_s15, 1 }
  0x80   : > { %939 = vmatprep.subr.bf16.mxu0 %v3742_v23  ;;  %1132 = vmatprep.subr.bf16.mxu1 %v3744_v24  ;;  %v3795_v61 = vld [vmem:[%s4478_s24 + $0x1a8] ss:$16 sps:$4 sm:$0xff]   ;;  %v3796_v62 = vld [vmem:[%s4478_s24 + $0x1c4] ss:$16 sps:$4 sm:$0xff]   ;;  %v3798_v63 = vld [vmem:[%s4478_s24 + $0x1cc] ss:$16 sps:$4 sm:$0xff]  }
  0x81   : > { %2544 = vperm.xlu0 %3710, %v2511_v58   ;;  %v3800_v1 = vld [vmem:[%s4478_s24 + $0x1c0] ss:$16 sps:$4 sm:$0xff]   ;;  %v3801_v2 = vld [vmem:[%s4478_s24 + $0x1c8] ss:$16 sps:$4 sm:$0xff]   ;;  %v3802_v3 = vld [vmem:[%s4478_s24 + $0x1e4] ss:$16 sps:$4 sm:$0xff]  }
  0x82   : > { %v3804_v4 = vld [vmem:[%s4478_s24 + $0x1ec] ss:$16 sps:$4 sm:$0xff]   ;;  %v2513_v7 = vld [vmem:[%s4493_s30 + $0x10] sm:$0xff]  ;;  %v3807_v9 = vld [vmem:[%s4478_s24 + $0x1e8] ss:$16 sps:$4 sm:$0xff]  }
  0x83   : > { %940 = vmatpush1.bf16.msra.mxu0 %v3746_v25  ;;  %1133 = vmatpush1.bf16.msra.mxu1 %v3747_v26  ;;  %v2512_v5 = vld [vmem:[%s4493_s30 + $0x8] sm:$0xff]  ;;  %v2518_v6 = vld [vmem:[%s4493_s30 + $0x38] sm:$0xff]  ;;  %v3806_v8 = vld [vmem:[%s4478_s24 + $0x1e0] ss:$16 sps:$4 sm:$0xff]  }
  0x84   : > { %941 = vmatprep.subr.bf16.mxu0 %v3748_v27  ;;  %1134 = vmatprep.subr.bf16.mxu1 %v3750_v28  ;;  %v3808_v10 = vld [vmem:[%s4488_s10] ss:$8 sps:$4 sm:$0xff]   ;;  %v3811_v13 = vld [vmem:[%s4488_s10 + $0x14] ss:$8 sps:$4 sm:$0xff]   ;;  %v3813_v16 = vld [vmem:[%s4488_s10 + $0x10] ss:$8 sps:$4 sm:$0xff]  }
  0x85   : > { %2553 = vperm.xlu0 %3710, %v2514_v59   ;;  %2547 = vperm.xlu1 %3711, %v2512_v5   ;;  %v2520_v11 = vld [vmem:[%s4493_s30 + $0x48] sm:$0xff]  ;;  %v2515_v12 = vld [vmem:[%s4493_s30 + $0x20] sm:$0xff]  ;;  %v2522_v14 = vld [vmem:[%s4493_s30 + $0x58] sm:$0xff] }
  0x86   : > { %v2517_v15 = vld [vmem:[%s4493_s30 + $0x30] sm:$0xff]  ;;  %v2524_v17 = vld [vmem:[%s4493_s30 + $0x68] sm:$0xff]  ;;  %v2519_v18 = vld [vmem:[%s4493_s30 + $0x40] sm:$0xff] }
  0x87   : > { %942 = vmatpush1.bf16.msra.mxu0 %v3752_v29  ;;  %1135 = vmatpush1.bf16.msra.mxu1 %v3753_v30  ;;  %v3814_v19 = vld [vmem:[%s4488_s10 + $0x24] ss:$8 sps:$4 sm:$0xff]   ;;  %v2526_v20 = vld [vmem:[%s4493_s30 + $0x78] sm:$0xff]  ;;  %v2521_v21 = vld [vmem:[%s4493_s30 + $0x50] sm:$0xff] }
  0x88   : > { %943 = vmatprep.subr.bf16.mxu0 %v3754_v31  ;;  %1136 = vmatprep.subr.bf16.mxu1 %v3756_v32  ;;  %v3816_v22 = vld [vmem:[%s4488_s10 + $0x20] ss:$8 sps:$4 sm:$0xff]   ;;  %v3817_v25 = vld [vmem:[%s4488_s10 + $0x34] ss:$8 sps:$4 sm:$0xff]   ;;  %v3819_v28 = vld [vmem:[%s4488_s10 + $0x30] ss:$8 sps:$4 sm:$0xff]  }
  0x89   : > { %2559 = vperm.xlu0 %3710, %v2516_v0   ;;  %2550 = vperm.xlu1 %3711, %v2513_v7   ;;  %v2528_v23 = vld [vmem:[%s4493_s30 + $0x88] sm:$0xff]  ;;  %v2523_v24 = vld [vmem:[%s4493_s30 + $0x60] sm:$0xff]  ;;  %v2530_v26 = vld [vmem:[%s4493_s30 + $0x98] sm:$0xff] }
  0x8a   : > { %v2525_v27 = vld [vmem:[%s4493_s30 + $0x70] sm:$0xff]  ;;  %v2532_v29 = vld [vmem:[%s4493_s30 + $0xa8] sm:$0xff]  ;;  %v2527_v30 = vld [vmem:[%s4493_s30 + $0x80] sm:$0xff] }
  0x8b   : > { %944 = vmatpush1.bf16.msra.mxu0 %v3758_v33  ;;  %1137 = vmatpush1.bf16.msra.mxu1 %v3759_v34  ;;  %v3820_v31 = vld [vmem:[%s4488_s10 + $0x44] ss:$8 sps:$4 sm:$0xff]   ;;  %v2534_v32 = vld [vmem:[%s4493_s30 + $0xb8] sm:$0xff]  ;;  %v2529_v33 = vld [vmem:[%s4493_s30 + $0x90] sm:$0xff] }
  0x8c   : > { %945 = vmatprep.subr.bf16.mxu0 %v3760_v35  ;;  %1138 = vmatprep.subr.bf16.mxu1 %v3762_v36  ;;  %v3822_v34 = vld [vmem:[%s4488_s10 + $0x40] ss:$8 sps:$4 sm:$0xff]   ;;  %v3835_v51 = vld [vmem:[%s4488_s10 + $0x94] ss:$8 sps:$4 sm:$0xff]   ;;  %v3855_v0 = vld [vmem:[%s4488_s10 + $0xf0] ss:$8 sps:$4 sm:$0xff]  }
  0x8d   : > { %2565 = vperm.xlu0 %3710, %v2518_v6   ;;  %2556 = vperm.xlu1 %3711, %v2515_v12   ;;  %v2536_v35 = vld [vmem:[%s4493_s30 + $0xc8] sm:$0xff]  ;;  %v2531_v36 = vld [vmem:[%s4493_s30 + $0xa0] sm:$0xff]  ;;  %v3847_v59 = vld [vmem:[%s4488_s10 + $0xd4] ss:$8 sps:$4 sm:$0xff]  }
  0x8e   : > { %v3846_v58 = vld [vmem:[%s4488_s10 + $0xc0] ss:$8 sps:$4 sm:$0xff]  }
  0x8f   : > { %946 = vmatpush1.bf16.msra.mxu0 %v3764_v37  ;;  %1139 = vmatpush1.bf16.msra.mxu1 %v3765_v38  ;;  %v3823_v37 = vld [vmem:[%s4488_s10 + $0x54] ss:$8 sps:$4 sm:$0xff]  }
  0x90   : > { %947 = vmatprep.subr.bf16.mxu0 %v3766_v39  ;;  %1140 = vmatprep.subr.bf16.mxu1 %v3768_v40  ;;  %v2538_v38 = vld [vmem:[%s4493_s30 + $0xd8] sm:$0xff]  ;;  %v2533_v39 = vld [vmem:[%s4493_s30 + $0xb0] sm:$0xff] }
  0x91   : > { %2571 = vperm.xlu0 %3710, %v2520_v11   ;;  %2562 = vperm.xlu1 %3711, %v2517_v15   ;;  %v3825_v40 = vld [vmem:[%s4488_s10 + $0x50] ss:$8 sps:$4 sm:$0xff]  }
  0x93   : > { %948 = vmatpush1.bf16.msra.mxu0 %v3770_v41  ;;  %1141 = vmatpush1.bf16.msra.mxu1 %v3771_v42  ;;  %v2535_v41 = vld [vmem:[%s4493_s30 + $0xc0] sm:$0xff] }
  0x94   : > { %949 = vmatprep.subr.bf16.mxu0 %v3772_v43  ;;  %1142 = vmatprep.subr.bf16.mxu1 %v3774_v44  ;;  %v3826_v42 = vld [vmem:[%s4488_s10 + $0x64] ss:$8 sps:$4 sm:$0xff]   ;;  %v2537_v43 = vld [vmem:[%s4493_s30 + $0xd0] sm:$0xff]  ;;  %v3828_v44 = vld [vmem:[%s4488_s10 + $0x60] ss:$8 sps:$4 sm:$0xff]  }
  0x95   : > { %2577 = vperm.xlu0 %3710, %v2522_v14   ;;  %2568 = vperm.xlu1 %3711, %v2519_v18  }
  0x97   : > { %950 = vmatpush1.bf16.msra.mxu0 %v3776_v45  ;;  %1143 = vmatpush1.bf16.msra.mxu1 %v3777_v46  ;;  %v2539_v45 = vld [vmem:[%s4493_s30 + $0xe0] sm:$0xff]  ;;  %v3829_v46 = vld [vmem:[%s4488_s10 + $0x74] ss:$8 sps:$4 sm:$0xff]  }
  0x98   : > { %951 = vmatprep.subr.bf16.mxu0 %v3778_v47  ;;  %1144 = vmatprep.subr.bf16.mxu1 %v3780_v48  ;;  %v2541_v47 = vld [vmem:[%s4493_s30 + $0xf0] sm:$0xff] }
  0x99   : > { %2583 = vperm.xlu0 %3710, %v2524_v17   ;;  %2574 = vperm.xlu1 %3711, %v2521_v21   ;;  %v3831_v48 = vld [vmem:[%s4488_s10 + $0x70] ss:$8 sps:$4 sm:$0xff]  }
  0x9b   : > { %952 = vmatpush1.bf16.msra.mxu0 %v3782_v49  ;;  %1145 = vmatpush1.bf16.msra.mxu1 %v3783_v50  ;;  %v3832_v49 = vld [vmem:[%s4488_s10 + $0x84] ss:$8 sps:$4 sm:$0xff]   ;;  %v3834_v50 = vld [vmem:[%s4488_s10 + $0x80] ss:$8 sps:$4 sm:$0xff]  }
  0x9c   : > { %953 = vmatprep.subr.bf16.mxu0 %v3784_v52  ;;  %1146 = vmatprep.subr.bf16.mxu1 %v3786_v53  ;;  %v3837_v52 = vld [vmem:[%s4488_s10 + $0x90] ss:$8 sps:$4 sm:$0xff]   ;;  %v3838_v53 = vld [vmem:[%s4488_s10 + $0xa4] ss:$8 sps:$4 sm:$0xff]  }
  0x9d   : > { %2589 = vperm.xlu0 %3710, %v2526_v20   ;;  %2580 = vperm.xlu1 %3711, %v2523_v24  }
  0x9f   : > { %954 = vmatpush1.bf16.msra.mxu0 %v3788_v54  ;;  %1147 = vmatpush1.bf16.msra.mxu1 %v3789_v55  ;;  %v3840_v54 = vld [vmem:[%s4488_s10 + $0xa0] ss:$8 sps:$4 sm:$0xff]   ;;  %v3841_v55 = vld [vmem:[%s4488_s10 + $0xb4] ss:$8 sps:$4 sm:$0xff]  }
  0xa0   : > { %955 = vmatprep.subr.bf16.mxu0 %v3790_v56  ;;  %1148 = vmatprep.subr.bf16.mxu1 %v3792_v57  ;;  %v3843_v56 = vld [vmem:[%s4488_s10 + $0xb0] ss:$8 sps:$4 sm:$0xff]   ;;  %v3844_v57 = vld [vmem:[%s4488_s10 + $0xc4] ss:$8 sps:$4 sm:$0xff]  }
  0xa1   : > { %2595 = vperm.xlu0 %3710, %v2528_v23   ;;  %2586 = vperm.xlu1 %3711, %v2525_v27  }
  0xa3   : > { %956 = vmatpush1.bf16.msra.mxu0 %v3794_v60  ;;  %1149 = vmatpush1.bf16.msra.mxu1 %v3795_v61  ;;  %v3849_v60 = vld [vmem:[%s4488_s10 + $0xd0] ss:$8 sps:$4 sm:$0xff]   ;;  %v3850_v61 = vld [vmem:[%s4488_s10 + $0xe4] ss:$8 sps:$4 sm:$0xff]  }
  0xa4   : > { %957 = vmatprep.subr.bf16.mxu0 %v3796_v62  ;;  %1150 = vmatprep.subr.bf16.mxu1 %v3798_v63  ;;  %v3852_v62 = vld [vmem:[%s4488_s10 + $0xe0] ss:$8 sps:$4 sm:$0xff]   ;;  %v3853_v63 = vld [vmem:[%s4488_s10 + $0xf4] ss:$8 sps:$4 sm:$0xff]  }
  0xa5   : > { %2601 = vperm.xlu0 %3710, %v2530_v26   ;;  %2592 = vperm.xlu1 %3711, %v2527_v30  }
  0xa7   : > { %958 = vmatpush1.bf16.msra.mxu0 %v3800_v1  ;;  %1151 = vmatpush1.bf16.msra.mxu1 %v3801_v2  ;;  %v2500_v1 = vlaneseq }
  0xa8   : > { %959 = vmatprep.subr.bf16.mxu0 %v3802_v3  ;;  %1152 = vmatprep.subr.bf16.mxu1 %v3804_v4  ;;  %v2506_v3 = vstv %s3627_s16 }
  0xa9   : > { %2607 = vperm.xlu0 %3710, %v2532_v29   ;;  %2598 = vperm.xlu1 %3711, %v2529_v33   ;;  %v2501_v2 = vand.u32 127, %v2500_v1 }
  0xab   : > { %960 = vmatpush1.bf16.msra.mxu0 %v3806_v8  ;;  %1153 = vmatpush1.bf16.msra.mxu1 %v3807_v9  ;;  %v2503_v4 = vadd.s32 256, %v2501_v2  ;;  %v2502_v5 = vadd.s32 128, %v2501_v2  ;;  %v4788_v6 = vadd.s32 %v2506_v3, %v2501_v2  ;;  %v2504_v9 = vadd.s32 384, %v2501_v2 }
  0xad   : > { %2613 = vperm.xlu0 %3710, %v2534_v32   ;;  %2604 = vperm.xlu1 %3711, %v2531_v36   ;;  %6406 = vst [vmem:[#allocation8_spill] sm:$0xff] %v4788_v6  ;;  %v4790_v7 = vadd.s32 %v2506_v3, %v2503_v4  ;;  %v4792_v8 = vadd.s32 %v2506_v3, %v2502_v5 }
  0xae   : > { %962 = vmatmul.mubr.bf16.vlgmr.msra.gmra.mrb[0].mxu0 %v3808_v10  ;;  %1155 = vmatmul.mubr.bf16.vlgmr.msra.gmra.mrb[0].mxu1 %v3808_v10  ;;  %v4797_v12 = vadd.s32 %v2506_v3, %v2504_v9 }
  0xaf   : > { %971 = vmatprep.mubr.bf16.mxu0 %v3811_v13  ;;  %1164 = vmatprep.mubr.bf16.mxu1 %v3811_v13  ;;  %6407 = vst [vmem:[#allocation9_spill] sm:$0xff] %v4790_v7  ;;  %6408 = vst [vmem:[#allocation10_spill] sm:$0xff] %v4792_v8 }
  0xb1   : > { %2619 = vperm.xlu0 %3710, %v2536_v35   ;;  %2610 = vperm.xlu1 %3711, %v2533_v39  }
  0xb5   : > { %2625 = vperm.xlu0 %3710, %v2538_v38   ;;  %2616 = vperm.xlu1 %3711, %v2535_v41  }
  0xb6   : > { %972 = vmatmul.mubr.bf16.gmra.mrb[4].mxu0 %v3813_v16  ;;  %1165 = vmatmul.mubr.bf16.gmra.mrb[4].mxu1 %v3813_v16 }
  0xb7   : > { %981 = vmatprep.mubr.bf16.mxu0 %v3814_v19  ;;  %1174 = vmatprep.mubr.bf16.mxu1 %v3814_v19 }
  0xb9   : > { %2622 = vperm.xlu1 %3711, %v2537_v43  }
  0xbd   : > { %2628 = vperm.xlu1 %3711, %v2539_v45  }
  0xbe   : > { %982 = vmatmul.mubr.bf16.gmra.mrb[8].mxu0 %v3816_v22  ;;  %1175 = vmatmul.mubr.bf16.gmra.mrb[8].mxu1 %v3816_v22 }
  0xbf   : > { %991 = vmatprep.mubr.bf16.mxu0 %v3817_v25  ;;  %1184 = vmatprep.mubr.bf16.mxu1 %v3817_v25 }
  0xc1   : > { %2634 = vperm.xlu1 %3711, %v2541_v47  }
  0xc6   : > { %992 = vmatmul.mubr.bf16.gmra.mrb[12].mxu0 %v3819_v28  ;;  %1185 = vmatmul.mubr.bf16.gmra.mrb[12].mxu1 %v3819_v28 }
  0xc7   : > { %1001 = vmatprep.mubr.bf16.mxu0 %v3820_v31  ;;  %1194 = vmatprep.mubr.bf16.mxu1 %v3820_v31 }
  0xce   : > { %1002 = vmatmul.mubr.bf16.gmra.mrb[16].mxu0 %v3822_v34  ;;  %1195 = vmatmul.mubr.bf16.gmra.mrb[16].mxu1 %v3822_v34 }
  0xcf   : > { %1011 = vmatprep.mubr.bf16.mxu0 %v3823_v37  ;;  %1204 = vmatprep.mubr.bf16.mxu1 %v3823_v37 }
  0xd6   : > { %1012 = vmatmul.mubr.bf16.gmra.mrb[20].mxu0 %v3825_v40  ;;  %1205 = vmatmul.mubr.bf16.gmra.mrb[20].mxu1 %v3825_v40 }
  0xd7   : > { %1021 = vmatprep.mubr.bf16.mxu0 %v3826_v42  ;;  %1214 = vmatprep.mubr.bf16.mxu1 %v3826_v42 }
  0xde   : > { %1022 = vmatmul.mubr.bf16.gmra.mrb[24].mxu0 %v3828_v44  ;;  %1215 = vmatmul.mubr.bf16.gmra.mrb[24].mxu1 %v3828_v44 }
  0xdf   : > { %1031 = vmatprep.mubr.bf16.mxu0 %v3829_v46  ;;  %1224 = vmatprep.mubr.bf16.mxu1 %v3829_v46 }
  0xe6   : > { %1032 = vmatmul.mubr.bf16.gmra.mrb[28].mxu0 %v3831_v48  ;;  %1225 = vmatmul.mubr.bf16.gmra.mrb[28].mxu1 %v3831_v48 }
  0xe7   : > { %1041 = vmatprep.mubr.bf16.mxu0 %v3832_v49  ;;  %1234 = vmatprep.mubr.bf16.mxu1 %v3832_v49 }
  0xee   : > { %1042 = vmatmul.mubr.bf16.gmra.mrb[32].mxu0 %v3834_v50  ;;  %1235 = vmatmul.mubr.bf16.gmra.mrb[32].mxu1 %v3834_v50 }
  0xef   : > { %1051 = vmatprep.mubr.bf16.mxu0 %v3835_v51  ;;  %1244 = vmatprep.mubr.bf16.mxu1 %v3835_v51 }
  0xf6   : > { %1052 = vmatmul.mubr.bf16.gmra.mrb[36].mxu0 %v3837_v52  ;;  %1245 = vmatmul.mubr.bf16.gmra.mrb[36].mxu1 %v3837_v52 }
  0xf7   : > { %1061 = vmatprep.mubr.bf16.mxu0 %v3838_v53  ;;  %1254 = vmatprep.mubr.bf16.mxu1 %v3838_v53 }
  0xfe   : > { %1062 = vmatmul.mubr.bf16.gmra.mrb[40].mxu0 %v3840_v54  ;;  %1255 = vmatmul.mubr.bf16.gmra.mrb[40].mxu1 %v3840_v54 }
  0xff   : > { %1071 = vmatprep.mubr.bf16.mxu0 %v3841_v55  ;;  %1264 = vmatprep.mubr.bf16.mxu1 %v3841_v55 }
 0x100   : > { %v2545_v10 = vpop.permute.xlu0 %2544 }
 0x101   : > { %vm2639_vm1 = vcmp.eq.s32.totalorder %v4788_v6, %v2545_v10  ;;  %vm2641_vm2 = vcmp.eq.s32.totalorder %v4790_v7, %v2545_v10  ;;  %vm2640_vm3 = vcmp.eq.s32.totalorder %v4792_v8, %v2545_v10  ;;  %vm2642_vm7 = vcmp.eq.s32.totalorder %v4797_v12, %v2545_v10 }
 0x104   : > { %v2548_v11 = vpop.permute.xlu1 %2547  ;;  %v2554_v37 = vpop.permute.xlu0 %2553 }
 0x105   : > { %vm2643_vm4 = vcmp.eq.s32.totalorder %v4788_v6, %v2548_v11  ;;  %vm2644_vm5 = vcmp.eq.s32.totalorder %v4792_v8, %v2548_v11  ;;  %vm2645_vm6 = vcmp.eq.s32.totalorder %v4790_v7, %v2548_v11  ;;  %vm2646_vm9 = vcmp.eq.s32.totalorder %v4797_v12, %v2548_v11 }
 0x106   : > { %1072 = vmatmul.mubr.bf16.gmra.mrb[44].mxu0 %v3843_v56  ;;  %1265 = vmatmul.mubr.bf16.gmra.mrb[44].mxu1 %v3843_v56  ;;  %vm2651_vm12 = vcmp.eq.s32.totalorder %v4788_v6, %v2554_v37  ;;  %vm2652_vm13 = vcmp.eq.s32.totalorder %v4792_v8, %v2554_v37  ;;  %vm2653_vm15 = vcmp.eq.s32.totalorder %v4790_v7, %v2554_v37 }
 0x107   : > { %1081 = vmatprep.mubr.bf16.mxu0 %v3844_v57  ;;  %1274 = vmatprep.mubr.bf16.mxu1 %v3844_v57 }
 0x108   : > { %v2551_v27 = vpop.permute.xlu1 %2550  ;;  %v2560_v3 = vpop.permute.xlu0 %2559 }
 0x109   : > { %vm2647_vm8 = vcmp.eq.s32.totalorder %v4788_v6, %v2551_v27  ;;  %vm2649_vm10 = vcmp.eq.s32.totalorder %v4790_v7, %v2551_v27  ;;  %vm2648_vm11 = vcmp.eq.s32.totalorder %v4792_v8, %v2551_v27  ;;  %vm2650_vm14 = vcmp.eq.s32.totalorder %v4797_v12, %v2551_v27 }
 0x10c   : > { %v2557_v57 = vpop.permute.xlu1 %2556 }
 0x10d   : > { %vm2655_vm0 = vcmp.eq.s32.totalorder %v4788_v6, %v2557_v57 }
 0x10e   : > { %1082 = vmatmul.mubr.bf16.gmra.mrb[48].mxu0 %v3846_v58  ;;  %1275 = vmatmul.mubr.bf16.gmra.mrb[48].mxu1 %v3846_v58 }
 0x10f   : > { %1091 = vmatprep.mubr.bf16.mxu0 %v3847_v59  ;;  %1284 = vmatprep.mubr.bf16.mxu1 %v3847_v59 }
 0x116   : > { %1092 = vmatmul.mubr.bf16.gmra.mrb[52].mxu0 %v3849_v60  ;;  %1285 = vmatmul.mubr.bf16.gmra.mrb[52].mxu1 %v3849_v60 }
 0x117   : > { %1101 = vmatprep.mubr.bf16.mxu0 %v3850_v61  ;;  %1294 = vmatprep.mubr.bf16.mxu1 %v3850_v61 }
 0x11e   : > { %1102 = vmatmul.mubr.bf16.gmra.mrb[56].mxu0 %v3852_v62  ;;  %1295 = vmatmul.mubr.bf16.gmra.mrb[56].mxu1 %v3852_v62 }
 0x11f   : > { %1111 = vmatprep.mubr.bf16.mxu0 %v3853_v63  ;;  %1304 = vmatprep.mubr.bf16.mxu1 %v3853_v63 }
 0x126   : > { %1112 = vmatmul.mubr.bf16.gmra.mrb[60].mxu0 %v3855_v0  ;;  %1305 = vmatmul.mubr.bf16.gmra.mrb[60].mxu1 %v3855_v0 }
 0x181   : > { %v4799_v13 = vpop.f32.mrb[0].mxu0  ;;  %v4801_v14 = vpop.f32.mrb[0].mxu1 }
 0x182   : > { %v2799_v15 = vsel %vm2639_vm1, %v4799_v13, 0.0  ;;  %v4805_v16 = vpop.f32.mrb[1].mxu0  ;;  %v4807_v17 = vpop.f32.mrb[1].mxu1  ;;  %v2801_v18 = vsel %vm2641_vm2, %v4801_v14, 0.0  ;;  %vm2654_vm1 = vcmp.eq.s32.totalorder %v4797_v12, %v2554_v37  ;;  %vm2657_vm2 = vcmp.eq.s32.totalorder %v4790_v7, %v2557_v57 }
 0x183   : > { %v1347_v19 = vmax.f32 %v4799_v13, %v4805_v16  ;;  %v2800_v20 = vsel %vm2640_vm3, %v4805_v16, 0.0  ;;  %v4814_v21 = vpop.f32.mrb[2].mxu0  ;;  %v4816_v22 = vpop.f32.mrb[2].mxu1  ;;  %v2802_v35 = vsel %vm2642_vm7, %v4807_v17, 0.0  ;;  %vm2656_vm3 = vcmp.eq.s32.totalorder %v4792_v8, %v2557_v57 }
 0x184   : > { %v2927_v23 = vadd.f32 %v2800_v20, %v2799_v15  ;;  %v2803_v24 = vsel %vm2643_vm4, %v4814_v21, 0.0  ;;  %v4820_v25 = vpop.f32.mrb[3].mxu0  ;;  %v4822_v26 = vpop.f32.mrb[3].mxu1  ;;  %v2805_v33 = vsel %vm2645_vm6, %v4816_v22, 0.0  ;;  %vm2659_vm4 = vcmp.eq.s32.totalorder %v4788_v6, %v2560_v3 }
 0x185   : > { %v1352_v28 = vmax.f32 %v4814_v21, %v4820_v25  ;;  %v2804_v29 = vsel %vm2644_vm5, %v4820_v25, 0.0  ;;  %v1348_v30 = vmax.f32 %v1347_v19, %v4801_v14  ;;  %v2806_v43 = vsel %vm2646_vm9, %v4822_v26, 0.0 }
 0x186   : > { %v2932_v31 = vadd.f32 %v2804_v29, %v2803_v24  ;;  %v2928_v32 = vadd.f32 %v2927_v23, %v2801_v18  ;;  %vm2660_vm5 = vcmp.eq.s32.totalorder %v4792_v8, %v2560_v3  ;;  %vm2658_vm6 = vcmp.eq.s32.totalorder %v4797_v12, %v2557_v57 }
 0x187   : > { %v1349_v34 = vmax.f32 %v1348_v30, %v4807_v17  ;;  %v1353_v36 = vmax.f32 %v1352_v28, %v4816_v22  ;;  %vm2661_vm7 = vcmp.eq.s32.totalorder %v4790_v7, %v2560_v3  ;;  %vm2662_vm9 = vcmp.eq.s32.totalorder %v4797_v12, %v2560_v3 }
 0x188   : > { %v2929_v38 = vadd.f32 %v2928_v32, %v2802_v35  ;;  %v2933_v39 = vadd.f32 %v2932_v31, %v2805_v33  ;;  %v2563_v35 = vpop.permute.xlu1 %2562 }
 0x189   : > { %v4837_v40 = vpop.f32.mrb[4].mxu1  ;;  %1350 = vmax.xlane.f32.xlu0 %v1349_v34  ;;  %v4839_v41 = vpop.f32.mrb[4].mxu0  ;;  %v1354_v42 = vmax.f32 %v1353_v36, %v4822_v26 }
 0x18a   : > { %v2807_v44 = vsel %vm2647_vm8, %v4839_v41, 0.0  ;;  %v4846_v45 = vpop.f32.mrb[5].mxu1  ;;  %2930 = vadd.xlane.f32.xlu1 %v2929_v38  ;;  %v4848_v46 = vpop.f32.mrb[5].mxu0  ;;  %v2934_v47 = vadd.f32 %v2933_v39, %v2806_v43  ;;  %v2809_v48 = vsel %vm2649_vm10, %v4837_v40, 0.0  ;;  %vm2663_vm8 = vcmp.eq.s32.totalorder %v4788_v6, %v2563_v35 }
 0x18b   : > { %v1357_v49 = vmax.f32 %v4839_v41, %v4848_v46  ;;  %v2808_v50 = vsel %vm2648_vm11, %v4848_v46, 0.0  ;;  %v4854_v51 = vpop.f32.mrb[6].mxu0  ;;  %v4857_v52 = vpop.f32.mrb[6].mxu1  ;;  %v2810_v1 = vsel %vm2650_vm14, %v4846_v45, 0.0  ;;  %vm2665_vm10 = vcmp.eq.s32.totalorder %v4790_v7, %v2563_v35 }
 0x18c   : > { %v2937_v53 = vadd.f32 %v2808_v50, %v2807_v44  ;;  %v2811_v54 = vsel %vm2651_vm12, %v4854_v51, 0.0  ;;  %v4860_v55 = vpop.f32.mrb[7].mxu0  ;;  %v4863_v56 = vpop.f32.mrb[7].mxu1  ;;  %v2813_v63 = vsel %vm2653_vm15, %v4857_v52, 0.0  ;;  %vm2664_vm11 = vcmp.eq.s32.totalorder %v4792_v8, %v2563_v35 }
 0x18d   : > { %v1362_v58 = vmax.f32 %v4854_v51, %v4860_v55  ;;  %v2812_v59 = vsel %vm2652_vm13, %v4860_v55, 0.0  ;;  %1355 = vmax.xlane.f32.xlu0 %v1354_v42  ;;  %v1358_v60 = vmax.f32 %v1357_v49, %v4837_v40  ;;  %v2814_v15 = vsel %vm2654_vm1, %v4863_v56, 0.0  ;;  %v2566_v49 = vpop.permute.xlu0 %2565 }
 0x18e   : > { %v2942_v61 = vadd.f32 %v2812_v59, %v2811_v54  ;;  %v2938_v62 = vadd.f32 %v2937_v53, %v2809_v48  ;;  %vm2667_vm12 = vcmp.eq.s32.totalorder %v4788_v6, %v2566_v49  ;;  %vm2668_vm13 = vcmp.eq.s32.totalorder %v4792_v8, %v2566_v49 }
 0x18f   : > { %v1359_v0 = vmax.f32 %v1358_v60, %v4846_v45  ;;  %v1363_v2 = vmax.f32 %v1362_v58, %v4857_v52  ;;  %vm2666_vm14 = vcmp.eq.s32.totalorder %v4797_v12, %v2563_v35  ;;  %vm2669_vm15 = vcmp.eq.s32.totalorder %v4790_v7, %v2566_v49 }
 0x190   : > { %v2939_v4 = vadd.f32 %v2938_v62, %v2810_v1  ;;  %v2943_v5 = vadd.f32 %v2942_v61, %v2813_v63  ;;  %vm2670_vm1 = vcmp.eq.s32.totalorder %v4797_v12, %v2566_v49 }
 0x191   : > { %v4879_v9 = vpop.f32.mrb[8].mxu1  ;;  %2935 = vadd.xlane.f32.xlu0 %v2934_v47  ;;  %1360 = vmax.xlane.f32.xlu1 %v1359_v0  ;;  %v4881_v10 = vpop.f32.mrb[8].mxu0  ;;  %v1364_v11 = vmax.f32 %v1363_v2, %v4863_v56 }
 0x192   : > { %v2815_v18 = vsel %vm2655_vm0, %v4881_v10, 0.0  ;;  %v4888_v19 = vpop.f32.mrb[9].mxu0  ;;  %v4890_v20 = vpop.f32.mrb[9].mxu1  ;;  %v2944_v23 = vadd.f32 %v2943_v5, %v2814_v15  ;;  %v2817_v24 = vsel %vm2657_vm2, %v4879_v9, 0.0 }
 0x193   : > { %v1367_v27 = vmax.f32 %v4881_v10, %v4888_v19  ;;  %v2816_v28 = vsel %vm2656_vm3, %v4888_v19, 0.0  ;;  %v4896_v29 = vpop.f32.mrb[10].mxu0  ;;  %v4899_v30 = vpop.f32.mrb[10].mxu1  ;;  %v2818_v47 = vsel %vm2658_vm6, %v4890_v20, 0.0 }
 0x194   : > { %v2947_v31 = vadd.f32 %v2816_v28, %v2815_v18  ;;  %v2819_v32 = vsel %vm2659_vm4, %v4896_v29, 0.0  ;;  %v4902_v33 = vpop.f32.mrb[11].mxu0  ;;  %v4905_v34 = vpop.f32.mrb[11].mxu1  ;;  %v2821_v43 = vsel %vm2661_vm7, %v4899_v30, 0.0 }
 0x195   : > { %v1372_v36 = vmax.f32 %v4896_v29, %v4902_v33  ;;  %v2820_v37 = vsel %vm2660_vm5, %v4902_v33, 0.0  ;;  %2940 = vadd.xlane.f32.xlu0 %v2939_v4  ;;  %1365 = vmax.xlane.f32.xlu1 %v1364_v11  ;;  %v1368_v38 = vmax.f32 %v1367_v27, %v4879_v9  ;;  %v2822_v59 = vsel %vm2662_vm9, %v4905_v34, 0.0 }
 0x196   : > { %v2952_v39 = vadd.f32 %v2820_v37, %v2819_v32  ;;  %v2948_v42 = vadd.f32 %v2947_v31, %v2817_v24 }
 0x197   : > { %v1369_v44 = vmax.f32 %v1368_v38, %v4890_v20  ;;  %v1373_v48 = vmax.f32 %v1372_v36, %v4899_v30 }
 0x198   : > { %v2949_v50 = vadd.f32 %v2948_v42, %v2818_v47  ;;  %v2953_v53 = vadd.f32 %v2952_v39, %v2821_v43  ;;  %v2572_v39 = vpop.permute.xlu0 %2571 }
 0x199   : > { %v4921_v54 = vpop.f32.mrb[12].mxu1  ;;  %2945 = vadd.xlane.f32.xlu1 %v2944_v23  ;;  %1370 = vmax.xlane.f32.xlu0 %v1369_v44  ;;  %v4923_v57 = vpop.f32.mrb[12].mxu0  ;;  %v1374_v58 = vmax.f32 %v1373_v48, %v4905_v34  ;;  %vm2675_vm4 = vcmp.eq.s32.totalorder %v4788_v6, %v2572_v39  ;;  %vm2676_vm5 = vcmp.eq.s32.totalorder %v4792_v8, %v2572_v39 }
 0x19a   : > { %v2823_v60 = vsel %vm2663_vm8, %v4923_v57, 0.0  ;;  %v4930_v61 = vpop.f32.mrb[13].mxu0  ;;  %v4932_v62 = vpop.f32.mrb[13].mxu1  ;;  %v2954_v63 = vadd.f32 %v2953_v53, %v2822_v59  ;;  %v2825_v0 = vsel %vm2665_vm10, %v4921_v54, 0.0  ;;  %vm2677_vm7 = vcmp.eq.s32.totalorder %v4790_v7, %v2572_v39 }
 0x19b   : > { %v1377_v1 = vmax.f32 %v4923_v57, %v4930_v61  ;;  %v2824_v2 = vsel %vm2664_vm11, %v4930_v61, 0.0  ;;  %v4938_v3 = vpop.f32.mrb[14].mxu0  ;;  %v4941_v4 = vpop.f32.mrb[14].mxu1  ;;  %v2826_v37 = vsel %vm2666_vm14, %v4932_v62, 0.0  ;;  %vm2678_vm9 = vcmp.eq.s32.totalorder %v4797_v12, %v2572_v39 }
 0x19c   : > { %v2957_v5 = vadd.f32 %v2824_v2, %v2823_v60  ;;  %v2827_v11 = vsel %vm2667_vm12, %v4938_v3, 0.0  ;;  %v4944_v15 = vpop.f32.mrb[15].mxu0  ;;  %v4947_v18 = vpop.f32.mrb[15].mxu1  ;;  %v2829_v35 = vsel %vm2669_vm15, %v4941_v4, 0.0 }
 0x19d   : > { %v2569_v23 = vpop.permute.xlu1 %2568  ;;  %v1382_v24 = vmax.f32 %v4938_v3, %v4944_v15  ;;  %v2828_v27 = vsel %vm2668_vm13, %v4944_v15, 0.0  ;;  %2950 = vadd.xlane.f32.xlu0 %v2949_v50  ;;  %1375 = vmax.xlane.f32.xlu1 %v1374_v58  ;;  %v1378_v28 = vmax.f32 %v1377_v1, %v4921_v54  ;;  %v2830_v49 = vsel %vm2670_vm1, %v4947_v18, 0.0 }
 0x19e   : > { %v2962_v31 = vadd.f32 %v2828_v27, %v2827_v11  ;;  %vm2671_vm0 = vcmp.eq.s32.totalorder %v4788_v6, %v2569_v23  ;;  %v2958_v32 = vadd.f32 %v2957_v5, %v2825_v0  ;;  %vm2673_vm2 = vcmp.eq.s32.totalorder %v4790_v7, %v2569_v23 }
 0x19f   : > { %v1379_v36 = vmax.f32 %v1378_v28, %v4932_v62  ;;  %v1383_v38 = vmax.f32 %v1382_v24, %v4941_v4  ;;  %vm2672_vm3 = vcmp.eq.s32.totalorder %v4792_v8, %v2569_v23  ;;  %vm2674_vm6 = vcmp.eq.s32.totalorder %v4797_v12, %v2569_v23 }
 0x1a0   : > { %v2959_v42 = vadd.f32 %v2958_v32, %v2826_v37  ;;  %v2963_v43 = vadd.f32 %v2962_v31, %v2829_v35 }
 0x1a1   : > { %v4963_v44 = vpop.f32.mrb[16].mxu1  ;;  %2955 = vadd.xlane.f32.xlu1 %v2954_v63  ;;  %1380 = vmax.xlane.f32.xlu0 %v1379_v36  ;;  %v4965_v47 = vpop.f32.mrb[16].mxu0  ;;  %v1384_v48 = vmax.f32 %v1383_v38, %v4947_v18 }
 0x1a2   : > { %v2831_v50 = vsel %vm2671_vm0, %v4965_v47, 0.0  ;;  %v4972_v53 = vpop.f32.mrb[17].mxu0  ;;  %v4974_v58 = vpop.f32.mrb[17].mxu1  ;;  %v2964_v59 = vadd.f32 %v2963_v43, %v2830_v49  ;;  %v2833_v60 = vsel %vm2673_vm2, %v4963_v44, 0.0 }
 0x1a3   : > { %6409 = vst [vmem:[#allocation11_spill] sm:$0xff] %v4974_v58  ;;  %v1387_v63 = vmax.f32 %v4965_v47, %v4972_v53  ;;  %v2832_v0 = vsel %vm2672_vm3, %v4972_v53, 0.0  ;;  %v4980_v1 = vpop.f32.mrb[18].mxu0  ;;  %v4983_v2 = vpop.f32.mrb[18].mxu1  ;;  %v2834_v43 = vsel %vm2674_vm6, %v4974_v58, 0.0 }
 0x1a4   : > { %6410 = vst [vmem:[#allocation12_spill] sm:$0xff] %v4980_v1  ;;  %6411 = vst [vmem:[#allocation13_spill] sm:$0xff] %v4983_v2  ;;  %v2967_v5 = vadd.f32 %v2832_v0, %v2831_v50  ;;  %v2835_v11 = vsel %vm2675_vm4, %v4980_v1, 0.0  ;;  %v4986_v24 = vpop.f32.mrb[19].mxu0  ;;  %v4989_v27 = vpop.f32.mrb[19].mxu1  ;;  %v2837_v23 = vsel %vm2677_vm7, %v4983_v2, 0.0 }
 0x1a5   : > { %6412 = vst [vmem:[#allocation14_spill] sm:$0xff] %v4986_v24  ;;  %6413 = vst [vmem:[#allocation15_spill] sm:$0xff] %v4989_v27  ;;  %v2575_v28 = vpop.permute.xlu1 %2574  ;;  %v1392_v31 = vmax.f32 %v4980_v1, %v4986_v24  ;;  %v2836_v32 = vsel %vm2676_vm5, %v4986_v24, 0.0  ;;  %2960 = vadd.xlane.f32.xlu0 %v2959_v42  ;;  %1385 = vmax.xlane.f32.xlu1 %v1384_v48  ;;  %v1388_v35 = vmax.f32 %v1387_v63, %v4963_v44  ;;  %v2578_v50 = vpop.permute.xlu0 %2577 }
 0x1a6   : > { %v2972_v36 = vadd.f32 %v2836_v32, %v2835_v11  ;;  %vm2679_vm8 = vcmp.eq.s32.totalorder %v4788_v6, %v2575_v28  ;;  %v2968_v37 = vadd.f32 %v2967_v5, %v2833_v60  ;;  %vm2681_vm10 = vcmp.eq.s32.totalorder %v4790_v7, %v2575_v28 }
 0x1a7   : > { %v1389_v38 = vmax.f32 %v1388_v35, %v4974_v58  ;;  %v1393_v49 = vmax.f32 %v1392_v31, %v4983_v2  ;;  %vm2680_vm11 = vcmp.eq.s32.totalorder %v4792_v8, %v2575_v28  ;;  %v2838_v0 = vsel %vm2678_vm9, %v4989_v27, 0.0 }
 0x1a8   : > { %v2969_v42 = vadd.f32 %v2968_v37, %v2834_v43  ;;  %v2973_v48 = vadd.f32 %v2972_v36, %v2837_v23  ;;  %vm2683_vm12 = vcmp.eq.s32.totalorder %v4788_v6, %v2578_v50  ;;  %vm2684_vm13 = vcmp.eq.s32.totalorder %v4792_v8, %v2578_v50 }
 0x1a9   : > { %v5005_v63 = vpop.f32.mrb[20].mxu1  ;;  %2965 = vadd.xlane.f32.xlu1 %v2964_v59  ;;  %1390 = vmax.xlane.f32.xlu0 %v1389_v38  ;;  %v5007_v39 = vpop.f32.mrb[20].mxu0  ;;  %v1394_v60 = vmax.f32 %v1393_v49, %v4989_v27  ;;  %vm2682_vm14 = vcmp.eq.s32.totalorder %v4797_v12, %v2575_v28  ;;  %vm2685_vm15 = vcmp.eq.s32.totalorder %v4790_v7, %v2578_v50 }
 0x1aa   : > { %6414 = vst [vmem:[#allocation16_spill] sm:$0xff] %v5007_v39  ;;  %v2839_v5 = vsel %vm2679_vm8, %v5007_v39, 0.0  ;;  %v5014_v11 = vpop.f32.mrb[21].mxu0  ;;  %v5016_v31 = vpop.f32.mrb[21].mxu1  ;;  %v2974_v32 = vadd.f32 %v2973_v48, %v2838_v0  ;;  %v2841_v35 = vsel %vm2681_vm10, %v5005_v63, 0.0  ;;  %vm2686_vm0 = vcmp.eq.s32.totalorder %v4797_v12, %v2578_v50 }
 0x1ab   : > { %6415 = vst [vmem:[#allocation17_spill] sm:$0xff] %v5014_v11  ;;  %6416 = vst [vmem:[#allocation18_spill] sm:$0xff] %v5016_v31  ;;  %v1397_v59 = vmax.f32 %v5007_v39, %v5014_v11  ;;  %v2840_v36 = vsel %vm2680_vm11, %v5014_v11, 0.0  ;;  %v5022_v37 = vpop.f32.mrb[22].mxu0  ;;  %v5025_v23 = vpop.f32.mrb[22].mxu1  ;;  %v2842_v24 = vsel %vm2682_vm14, %v5016_v31, 0.0 }
 0x1ac   : > { %6417 = vst [vmem:[#allocation19_spill] sm:$0xff] %v5022_v37  ;;  %6418 = vst [vmem:[#allocation20_spill] sm:$0xff] %v5025_v23  ;;  %v2977_v38 = vadd.f32 %v2840_v36, %v2839_v5  ;;  %v2843_v43 = vsel %vm2683_vm12, %v5022_v37, 0.0  ;;  %v5028_v49 = vpop.f32.mrb[23].mxu0  ;;  %v5031_v48 = vpop.f32.mrb[23].mxu1  ;;  %v2845_v27 = vsel %vm2685_vm15, %v5025_v23, 0.0 }
 0x1ad   : > { %6419 = vst [vmem:[#allocation21_spill] sm:$0xff] %v5028_v49  ;;  %6420 = vst [vmem:[#allocation22_spill] sm:$0xff] %v5031_v48  ;;  %v1402_v0 = vmax.f32 %v5022_v37, %v5028_v49  ;;  %v2844_v11 = vsel %vm2684_vm13, %v5028_v49, 0.0  ;;  %2970 = vadd.xlane.f32.xlu0 %v2969_v42  ;;  %1395 = vmax.xlane.f32.xlu1 %v1394_v60  ;;  %v1398_v39 = vmax.f32 %v1397_v59, %v5005_v63  ;;  %v2584_v1 = vpop.permute.xlu0 %2583  ;;  %v2581_v37 = vpop.permute.xlu1 %2580 }
 0x1ae   : > { %v2982_v5 = vadd.f32 %v2844_v11, %v2843_v43  ;;  %v2978_v36 = vadd.f32 %v2977_v38, %v2841_v35  ;;  %vm2687_vm1 = vcmp.eq.s32.totalorder %v4788_v6, %v2581_v37  ;;  %v2846_v35 = vsel %vm2686_vm0, %v5031_v48, 0.0 }
 0x1af   : > { %v1399_v2 = vmax.f32 %v1398_v39, %v5016_v31  ;;  %v1403_v28 = vmax.f32 %v1402_v0, %v5025_v23  ;;  %vm2688_vm2 = vcmp.eq.s32.totalorder %v4792_v8, %v2581_v37  ;;  %vm2691_vm3 = vcmp.eq.s32.totalorder %v4788_v6, %v2584_v1 }
 0x1b0   : > { %v2979_v58 = vadd.f32 %v2978_v36, %v2842_v24  ;;  %v2983_v42 = vadd.f32 %v2982_v5, %v2845_v27  ;;  %vm2689_vm4 = vcmp.eq.s32.totalorder %v4790_v7, %v2581_v37  ;;  %vm2692_vm5 = vcmp.eq.s32.totalorder %v4792_v8, %v2584_v1 }
 0x1b1   : > { %v5044_v60 = vpop.f32.mrb[24].mxu1  ;;  %2975 = vadd.xlane.f32.xlu1 %v2974_v32  ;;  %1400 = vmax.xlane.f32.xlu0 %v1399_v2  ;;  %v5046_v11 = vpop.f32.mrb[24].mxu0  ;;  %v1404_v39 = vmax.f32 %v1403_v28, %v5031_v48  ;;  %vm2693_vm6 = vcmp.eq.s32.totalorder %v4790_v7, %v2584_v1  ;;  %vm2690_vm7 = vcmp.eq.s32.totalorder %v4797_v12, %v2581_v37 }
 0x1b2   : > { %6421 = vst [vmem:[#allocation23_spill] sm:$0xff] %v5044_v60  ;;  %6422 = vst [vmem:[#allocation24_spill] sm:$0xff] %v5046_v11  ;;  %v2847_v59 = vsel %vm2687_vm1, %v5046_v11, 0.0  ;;  %v5052_v38 = vpop.f32.mrb[25].mxu0  ;;  %v5055_v24 = vpop.f32.mrb[25].mxu1  ;;  %v2984_v27 = vadd.f32 %v2983_v42, %v2846_v35  ;;  %v2849_v42 = vsel %vm2689_vm4, %v5044_v60, 0.0  ;;  %vm2694_vm8 = vcmp.eq.s32.totalorder %v4797_v12, %v2584_v1 }
 0x1b3   : > { %6423 = vst [vmem:[#allocation25_spill] sm:$0xff] %v5052_v38  ;;  %6424 = vst [vmem:[#allocation26_spill] sm:$0xff] %v5055_v24  ;;  %v1407_v2 = vmax.f32 %v5046_v11, %v5052_v38  ;;  %v2848_v50 = vsel %vm2688_vm2, %v5052_v38, 0.0  ;;  %v5060_v32 = vpop.f32.mrb[26].mxu0  ;;  %v5063_v43 = vpop.f32.mrb[26].mxu1  ;;  %v2850_v49 = vsel %vm2690_vm7, %v5055_v24, 0.0 }
 0x1b4   : > { %6425 = vst [vmem:[#allocation27_spill] sm:$0xff] %v5060_v32  ;;  %6426 = vst [vmem:[#allocation28_spill] sm:$0xff] %v5063_v43  ;;  %v2987_v0 = vadd.f32 %v2848_v50, %v2847_v59  ;;  %v2851_v5 = vsel %vm2691_vm3, %v5060_v32, 0.0  ;;  %v5067_v36 = vpop.f32.mrb[27].mxu0  ;;  %v5070_v28 = vpop.f32.mrb[27].mxu1  ;;  %v2853_v48 = vsel %vm2693_vm6, %v5063_v43, 0.0 }
 0x1b5   : > { %6427 = vst [vmem:[#allocation29_spill] sm:$0xff] %v5067_v36  ;;  %6428 = vst [vmem:[#allocation30_spill] sm:$0xff] %v5070_v28  ;;  %v1412_v35 = vmax.f32 %v5060_v32, %v5067_v36  ;;  %v2852_v38 = vsel %vm2692_vm5, %v5067_v36, 0.0  ;;  %2980 = vadd.xlane.f32.xlu0 %v2979_v58  ;;  %1405 = vmax.xlane.f32.xlu1 %v1404_v39  ;;  %v1408_v11 = vmax.f32 %v1407_v2, %v5044_v60  ;;  %v2590_v31 = vpop.permute.xlu0 %2589  ;;  %v2587_v36 = vpop.permute.xlu1 %2586 }
 0x1b6   : > { %v2992_v59 = vadd.f32 %v2852_v38, %v2851_v5  ;;  %v2988_v50 = vadd.f32 %v2987_v0, %v2849_v42  ;;  %vm2695_vm9 = vcmp.eq.s32.totalorder %v4788_v6, %v2587_v36  ;;  %v2854_v38 = vsel %vm2694_vm8, %v5070_v28, 0.0 }
 0x1b7   : > { %v1409_v23 = vmax.f32 %v1408_v11, %v5055_v24  ;;  %v1413_v32 = vmax.f32 %v1412_v35, %v5063_v43  ;;  %vm2696_vm10 = vcmp.eq.s32.totalorder %v4792_v8, %v2587_v36  ;;  %vm2699_vm11 = vcmp.eq.s32.totalorder %v4788_v6, %v2590_v31 }
 0x1b8   : > { %v2989_v58 = vadd.f32 %v2988_v50, %v2850_v49  ;;  %v2993_v39 = vadd.f32 %v2992_v59, %v2853_v48  ;;  %vm2697_vm12 = vcmp.eq.s32.totalorder %v4790_v7, %v2587_v36  ;;  %vm2700_vm13 = vcmp.eq.s32.totalorder %v4792_v8, %v2590_v31 }
 0x1b9   : > { %v5084_v2 = vpop.f32.mrb[28].mxu1  ;;  %2985 = vadd.xlane.f32.xlu1 %v2984_v27  ;;  %1410 = vmax.xlane.f32.xlu0 %v1409_v23  ;;  %v5086_v37 = vpop.f32.mrb[28].mxu0  ;;  %v1414_v11 = vmax.f32 %v1413_v32, %v5070_v28  ;;  %vm2701_vm14 = vcmp.eq.s32.totalorder %v4790_v7, %v2590_v31  ;;  %vm2698_vm15 = vcmp.eq.s32.totalorder %v4797_v12, %v2587_v36 }
 0x1ba   : > { %6429 = vst [vmem:[#allocation31_spill] sm:$0xff] %v5084_v2  ;;  %6430 = vst [vmem:[#allocation32_spill] sm:$0xff] %v5086_v37  ;;  %v2855_v0 = vsel %vm2695_vm9, %v5086_v37, 0.0  ;;  %v5092_v5 = vpop.f32.mrb[29].mxu0  ;;  %v5095_v1 = vpop.f32.mrb[29].mxu1  ;;  %v2994_v49 = vadd.f32 %v2993_v39, %v2854_v38  ;;  %v2857_v39 = vsel %vm2697_vm12, %v5084_v2, 0.0  ;;  %vm2702_vm0 = vcmp.eq.s32.totalorder %v4797_v12, %v2590_v31 }
 0x1bb   : > { %6431 = vst [vmem:[#allocation33_spill] sm:$0xff] %v5092_v5  ;;  %6432 = vst [vmem:[#allocation34_spill] sm:$0xff] %v5095_v1  ;;  %v1417_v23 = vmax.f32 %v5086_v37, %v5092_v5  ;;  %v2856_v48 = vsel %vm2696_vm10, %v5092_v5, 0.0  ;;  %v5100_v27 = vpop.f32.mrb[30].mxu0  ;;  %v5103_v32 = vpop.f32.mrb[30].mxu1  ;;  %v2858_v24 = vsel %vm2698_vm15, %v5095_v1, 0.0 }
 0x1bc   : > { %6433 = vst [vmem:[#allocation35_spill] sm:$0xff] %v5100_v27  ;;  %6434 = vst [vmem:[#allocation36_spill] sm:$0xff] %v5103_v32  ;;  %v2997_v42 = vadd.f32 %v2856_v48, %v2855_v0  ;;  %v2859_v35 = vsel %vm2699_vm11, %v5100_v27, 0.0  ;;  %v5107_v59 = vpop.f32.mrb[31].mxu0  ;;  %v5110_v50 = vpop.f32.mrb[31].mxu1  ;;  %v2861_v28 = vsel %vm2701_vm14, %v5103_v32, 0.0 }
 0x1bd   : > { %6435 = vst [vmem:[#allocation37_spill] sm:$0xff] %v5107_v59  ;;  %6436 = vst [vmem:[#allocation38_spill] sm:$0xff] %v5110_v50  ;;  %v1422_v38 = vmax.f32 %v5100_v27, %v5107_v59  ;;  %v2860_v5 = vsel %vm2700_vm13, %v5107_v59, 0.0  ;;  %2990 = vadd.xlane.f32.xlu0 %v2989_v58  ;;  %1415 = vmax.xlane.f32.xlu1 %v1414_v11  ;;  %v1418_v37 = vmax.f32 %v1417_v23, %v5084_v2  ;;  %v2596_v60 = vpop.permute.xlu0 %2595  ;;  %v2593_v59 = vpop.permute.xlu1 %2592 }
 0x1be   : > { %v3002_v0 = vadd.f32 %v2860_v5, %v2859_v35  ;;  %v2998_v48 = vadd.f32 %v2997_v42, %v2857_v39  ;;  %vm2703_vm1 = vcmp.eq.s32.totalorder %v4788_v6, %v2593_v59  ;;  %v2862_v5 = vsel %vm2702_vm0, %v5110_v50, 0.0 }
 0x1bf   : > { %v1419_v43 = vmax.f32 %v1418_v37, %v5095_v1  ;;  %v1423_v27 = vmax.f32 %v1422_v38, %v5103_v32  ;;  %vm2704_vm2 = vcmp.eq.s32.totalorder %v4792_v8, %v2593_v59  ;;  %vm2707_vm3 = vcmp.eq.s32.totalorder %v4788_v6, %v2596_v60 }
 0x1c0   : > { %v2999_v58 = vadd.f32 %v2998_v48, %v2858_v24  ;;  %v3003_v11 = vadd.f32 %v3002_v0, %v2861_v28  ;;  %vm2705_vm4 = vcmp.eq.s32.totalorder %v4790_v7, %v2593_v59  ;;  %vm2708_vm5 = vcmp.eq.s32.totalorder %v4792_v8, %v2596_v60 }
 0x1c1   : > { %v5124_v23 = vpop.f32.mrb[32].mxu1  ;;  %2995 = vadd.xlane.f32.xlu1 %v2994_v49  ;;  %1420 = vmax.xlane.f32.xlu0 %v1419_v43  ;;  %v5126_v36 = vpop.f32.mrb[32].mxu0  ;;  %v1424_v37 = vmax.f32 %v1423_v27, %v5110_v50  ;;  %vm2709_vm6 = vcmp.eq.s32.totalorder %v4790_v7, %v2596_v60  ;;  %vm2706_vm7 = vcmp.eq.s32.totalorder %v4797_v12, %v2593_v59 }
 0x1c2   : > { %6437 = vst [vmem:[#allocation39_spill] sm:$0xff] %v5124_v23  ;;  %6438 = vst [vmem:[#allocation40_spill] sm:$0xff] %v5126_v36  ;;  %v2863_v42 = vsel %vm2703_vm1, %v5126_v36, 0.0  ;;  %v5132_v35 = vpop.f32.mrb[33].mxu0  ;;  %v5135_v31 = vpop.f32.mrb[33].mxu1  ;;  %v3004_v24 = vadd.f32 %v3003_v11, %v2862_v5  ;;  %v2865_v11 = vsel %vm2705_vm4, %v5124_v23, 0.0  ;;  %vm2710_vm8 = vcmp.eq.s32.totalorder %v4797_v12, %v2596_v60 }
 0x1c3   : > { %6439 = vst [vmem:[#allocation41_spill] sm:$0xff] %v5132_v35  ;;  %6440 = vst [vmem:[#allocation42_spill] sm:$0xff] %v5135_v31  ;;  %v1427_v43 = vmax.f32 %v5126_v36, %v5132_v35  ;;  %v2864_v28 = vsel %vm2704_vm2, %v5132_v35, 0.0  ;;  %v5140_v49 = vpop.f32.mrb[34].mxu0  ;;  %v5143_v27 = vpop.f32.mrb[34].mxu1  ;;  %v2866_v1 = vsel %vm2706_vm7, %v5135_v31, 0.0 }
 0x1c4   : > { %6441 = vst [vmem:[#allocation43_spill] sm:$0xff] %v5140_v49  ;;  %6442 = vst [vmem:[#allocation44_spill] sm:$0xff] %v5143_v27  ;;  %v3007_v39 = vadd.f32 %v2864_v28, %v2863_v42  ;;  %v2867_v38 = vsel %vm2707_vm3, %v5140_v49, 0.0  ;;  %v5147_v0 = vpop.f32.mrb[35].mxu0  ;;  %v5150_v48 = vpop.f32.mrb[35].mxu1  ;;  %v2869_v50 = vsel %vm2709_vm6, %v5143_v27, 0.0 }
 0x1c5   : > { %6443 = vst [vmem:[#allocation45_spill] sm:$0xff] %v5147_v0  ;;  %6444 = vst [vmem:[#allocation46_spill] sm:$0xff] %v5150_v48  ;;  %v1432_v5 = vmax.f32 %v5140_v49, %v5147_v0  ;;  %v2868_v35 = vsel %vm2708_vm5, %v5147_v0, 0.0  ;;  %3000 = vadd.xlane.f32.xlu0 %v2999_v58  ;;  %1425 = vmax.xlane.f32.xlu1 %v1424_v37  ;;  %v1428_v36 = vmax.f32 %v1427_v43, %v5124_v23  ;;  %v2602_v2 = vpop.permute.xlu0 %2601  ;;  %v2599_v0 = vpop.permute.xlu1 %2598 }
 0x1c6   : > { %v3012_v42 = vadd.f32 %v2868_v35, %v2867_v38  ;;  %v3008_v28 = vadd.f32 %v3007_v39, %v2865_v11  ;;  %vm2711_vm9 = vcmp.eq.s32.totalorder %v4788_v6, %v2599_v0  ;;  %v2870_v35 = vsel %vm2710_vm8, %v5150_v48, 0.0 }
 0x1c7   : > { %v1429_v32 = vmax.f32 %v1428_v36, %v5135_v31  ;;  %v1433_v49 = vmax.f32 %v1432_v5, %v5143_v27  ;;  %vm2712_vm10 = vcmp.eq.s32.totalorder %v4792_v8, %v2599_v0  ;;  %vm2715_vm11 = vcmp.eq.s32.totalorder %v4788_v6, %v2602_v2 }
 0x1c8   : > { %v3009_v58 = vadd.f32 %v3008_v28, %v2866_v1  ;;  %v3013_v37 = vadd.f32 %v3012_v42, %v2869_v50  ;;  %vm2713_vm12 = vcmp.eq.s32.totalorder %v4790_v7, %v2599_v0  ;;  %vm2716_vm13 = vcmp.eq.s32.totalorder %v4792_v8, %v2602_v2 }
 0x1c9   : > { %v5164_v43 = vpop.f32.mrb[36].mxu1  ;;  %3005 = vadd.xlane.f32.xlu1 %v3004_v24  ;;  %1430 = vmax.xlane.f32.xlu0 %v1429_v32  ;;  %v5166_v59 = vpop.f32.mrb[36].mxu0  ;;  %v1434_v36 = vmax.f32 %v1433_v49, %v5150_v48  ;;  %vm2717_vm14 = vcmp.eq.s32.totalorder %v4790_v7, %v2602_v2  ;;  %vm2714_vm15 = vcmp.eq.s32.totalorder %v4797_v12, %v2599_v0 }
 0x1ca   : > { %6445 = vst [vmem:[#allocation47_spill] sm:$0xff] %v5164_v43  ;;  %6446 = vst [vmem:[#allocation48_spill] sm:$0xff] %v5166_v59  ;;  %v2871_v39 = vsel %vm2711_vm9, %v5166_v59, 0.0  ;;  %v5172_v38 = vpop.f32.mrb[37].mxu0  ;;  %v5175_v60 = vpop.f32.mrb[37].mxu1  ;;  %v3014_v1 = vadd.f32 %v3013_v37, %v2870_v35  ;;  %v2873_v37 = vsel %vm2713_vm12, %v5164_v43, 0.0  ;;  %vm2718_vm0 = vcmp.eq.s32.totalorder %v4797_v12, %v2602_v2 }
 0x1cb   : > { %6447 = vst [vmem:[#allocation49_spill] sm:$0xff] %v5172_v38  ;;  %6448 = vst [vmem:[#allocation50_spill] sm:$0xff] %v5175_v60  ;;  %v1437_v32 = vmax.f32 %v5166_v59, %v5172_v38  ;;  %v2872_v50 = vsel %vm2712_vm10, %v5172_v38, 0.0  ;;  %v5180_v24 = vpop.f32.mrb[38].mxu0  ;;  %v5183_v49 = vpop.f32.mrb[38].mxu1  ;;  %v2874_v31 = vsel %vm2714_vm15, %v5175_v60, 0.0 }
 0x1cc   : > { %6449 = vst [vmem:[#allocation51_spill] sm:$0xff] %v5180_v24  ;;  %6450 = vst [vmem:[#allocation52_spill] sm:$0xff] %v5183_v49  ;;  %v3017_v11 = vadd.f32 %v2872_v50, %v2871_v39  ;;  %v2875_v5 = vsel %vm2715_vm11, %v5180_v24, 0.0  ;;  %v5187_v42 = vpop.f32.mrb[39].mxu0  ;;  %v5190_v28 = vpop.f32.mrb[39].mxu1  ;;  %v2877_v48 = vsel %vm2717_vm14, %v5183_v49, 0.0 }
 0x1cd   : > { %6451 = vst [vmem:[#allocation53_spill] sm:$0xff] %v5187_v42  ;;  %6452 = vst [vmem:[#allocation54_spill] sm:$0xff] %v5190_v28  ;;  %v1442_v35 = vmax.f32 %v5180_v24, %v5187_v42  ;;  %v2876_v38 = vsel %vm2716_vm13, %v5187_v42, 0.0  ;;  %3010 = vadd.xlane.f32.xlu0 %v3009_v58  ;;  %1435 = vmax.xlane.f32.xlu1 %v1434_v36  ;;  %v1438_v59 = vmax.f32 %v1437_v32, %v5164_v43  ;;  %v2608_v23 = vpop.permute.xlu0 %2607  ;;  %v2605_v42 = vpop.permute.xlu1 %2604 }
 0x1ce   : > { %v3022_v39 = vadd.f32 %v2876_v38, %v2875_v5  ;;  %v3018_v50 = vadd.f32 %v3017_v11, %v2873_v37  ;;  %vm2719_vm1 = vcmp.eq.s32.totalorder %v4788_v6, %v2605_v42  ;;  %v2878_v38 = vsel %vm2718_vm0, %v5190_v28, 0.0 }
 0x1cf   : > { %v1439_v27 = vmax.f32 %v1438_v59, %v5175_v60  ;;  %v1443_v24 = vmax.f32 %v1442_v35, %v5183_v49  ;;  %vm2720_vm2 = vcmp.eq.s32.totalorder %v4792_v8, %v2605_v42  ;;  %vm2723_vm3 = vcmp.eq.s32.totalorder %v4788_v6, %v2608_v23 }
 0x1d0   : > { %v3019_v58 = vadd.f32 %v3018_v50, %v2874_v31  ;;  %v3023_v36 = vadd.f32 %v3022_v39, %v2877_v48  ;;  %vm2721_vm4 = vcmp.eq.s32.totalorder %v4790_v7, %v2605_v42  ;;  %vm2724_vm5 = vcmp.eq.s32.totalorder %v4792_v8, %v2608_v23 }
 0x1d1   : > { %v5204_v32 = vpop.f32.mrb[40].mxu1  ;;  %3015 = vadd.xlane.f32.xlu1 %v3014_v1  ;;  %1440 = vmax.xlane.f32.xlu0 %v1439_v27  ;;  %v5206_v0 = vpop.f32.mrb[40].mxu0  ;;  %v1444_v59 = vmax.f32 %v1443_v24, %v5190_v28  ;;  %vm2725_vm6 = vcmp.eq.s32.totalorder %v4790_v7, %v2608_v23  ;;  %vm2722_vm7 = vcmp.eq.s32.totalorder %v4797_v12, %v2605_v42 }
 0x1d2   : > { %6453 = vst [vmem:[#allocation55_spill] sm:$0xff] %v5204_v32  ;;  %6454 = vst [vmem:[#allocation56_spill] sm:$0xff] %v5206_v0  ;;  %v2879_v11 = vsel %vm2719_vm1, %v5206_v0, 0.0  ;;  %v5212_v5 = vpop.f32.mrb[41].mxu0  ;;  %v5215_v2 = vpop.f32.mrb[41].mxu1  ;;  %v3024_v31 = vadd.f32 %v3023_v36, %v2878_v38  ;;  %v2881_v36 = vsel %vm2721_vm4, %v5204_v32, 0.0  ;;  %vm2726_vm8 = vcmp.eq.s32.totalorder %v4797_v12, %v2608_v23 }
 0x1d3   : > { %6455 = vst [vmem:[#allocation57_spill] sm:$0xff] %v5212_v5  ;;  %6456 = vst [vmem:[#allocation58_spill] sm:$0xff] %v5215_v2  ;;  %v1447_v27 = vmax.f32 %v5206_v0, %v5212_v5  ;;  %v2880_v48 = vsel %vm2720_vm2, %v5212_v5, 0.0  ;;  %v5220_v1 = vpop.f32.mrb[42].mxu0  ;;  %v5223_v24 = vpop.f32.mrb[42].mxu1  ;;  %v2882_v60 = vsel %vm2722_vm7, %v5215_v2, 0.0 }
 0x1d4   : > { %6457 = vst [vmem:[#allocation59_spill] sm:$0xff] %v5220_v1  ;;  %6458 = vst [vmem:[#allocation60_spill] sm:$0xff] %v5223_v24  ;;  %v3027_v37 = vadd.f32 %v2880_v48, %v2879_v11  ;;  %v2883_v35 = vsel %vm2723_vm3, %v5220_v1, 0.0  ;;  %v5227_v39 = vpop.f32.mrb[43].mxu0  ;;  %v5230_v50 = vpop.f32.mrb[43].mxu1  ;;  %v2885_v28 = vsel %vm2725_vm6, %v5223_v24, 0.0 }
 0x1d5   : > { %6459 = vst [vmem:[#allocation61_spill] sm:$0xff] %v5227_v39  ;;  %6460 = vst [vmem:[#allocation62_spill] sm:$0xff] %v5230_v50  ;;  %v1452_v38 = vmax.f32 %v5220_v1, %v5227_v39  ;;  %v2884_v5 = vsel %vm2724_vm5, %v5227_v39, 0.0  ;;  %3020 = vadd.xlane.f32.xlu0 %v3019_v58  ;;  %1445 = vmax.xlane.f32.xlu1 %v1444_v59  ;;  %v1448_v0 = vmax.f32 %v1447_v27, %v5204_v32  ;;  %v2614_v43 = vpop.permute.xlu0 %2613  ;;  %v2611_v39 = vpop.permute.xlu1 %2610 }
 0x1d6   : > { %v3032_v11 = vadd.f32 %v2884_v5, %v2883_v35  ;;  %v3028_v48 = vadd.f32 %v3027_v37, %v2881_v36  ;;  %vm2727_vm9 = vcmp.eq.s32.totalorder %v4788_v6, %v2611_v39  ;;  %v2886_v5 = vsel %vm2726_vm8, %v5230_v50, 0.0 }
 0x1d7   : > { %v1449_v49 = vmax.f32 %v1448_v0, %v5215_v2  ;;  %v1453_v1 = vmax.f32 %v1452_v38, %v5223_v24  ;;  %vm2728_vm10 = vcmp.eq.s32.totalorder %v4792_v8, %v2611_v39  ;;  %vm2731_vm11 = vcmp.eq.s32.totalorder %v4788_v6, %v2614_v43 }
 0x1d8   : > { %v3029_v58 = vadd.f32 %v3028_v48, %v2882_v60  ;;  %v3033_v59 = vadd.f32 %v3032_v11, %v2885_v28  ;;  %vm2729_vm12 = vcmp.eq.s32.totalorder %v4790_v7, %v2611_v39  ;;  %vm2732_vm13 = vcmp.eq.s32.totalorder %v4792_v8, %v2614_v43 }
 0x1d9   : > { %v5244_v27 = vpop.f32.mrb[44].mxu1  ;;  %3025 = vadd.xlane.f32.xlu1 %v3024_v31  ;;  %1450 = vmax.xlane.f32.xlu0 %v1449_v49  ;;  %v5246_v42 = vpop.f32.mrb[44].mxu0  ;;  %v1454_v0 = vmax.f32 %v1453_v1, %v5230_v50  ;;  %vm2733_vm14 = vcmp.eq.s32.totalorder %v4790_v7, %v2614_v43  ;;  %vm2730_vm15 = vcmp.eq.s32.totalorder %v4797_v12, %v2611_v39 }
 0x1da   : > { %6461 = vst [vmem:[#allocation63_spill] sm:$0xff] %v5244_v27  ;;  %6462 = vst [vmem:[#allocation64_spill] sm:$0xff] %v5246_v42  ;;  %v2887_v37 = vsel %vm2727_vm9, %v5246_v42, 0.0  ;;  %v5252_v35 = vpop.f32.mrb[45].mxu0  ;;  %v5255_v23 = vpop.f32.mrb[45].mxu1  ;;  %v3034_v60 = vadd.f32 %v3033_v59, %v2886_v5  ;;  %v2889_v59 = vsel %vm2729_vm12, %v5244_v27, 0.0  ;;  %vm2734_vm0 = vcmp.eq.s32.totalorder %v4797_v12, %v2614_v43 }
 0x1db   : > { %6463 = vst [vmem:[#allocation65_spill] sm:$0xff] %v5252_v35  ;;  %6464 = vst [vmem:[#allocation66_spill] sm:$0xff] %v5255_v23  ;;  %v1457_v49 = vmax.f32 %v5246_v42, %v5252_v35  ;;  %v2888_v28 = vsel %vm2728_vm10, %v5252_v35, 0.0  ;;  %v5260_v31 = vpop.f32.mrb[46].mxu0  ;;  %v5263_v1 = vpop.f32.mrb[46].mxu1  ;;  %v2890_v2 = vsel %vm2730_vm15, %v5255_v23, 0.0 }
 0x1dc   : > { %6465 = vst [vmem:[#allocation67_spill] sm:$0xff] %v5260_v31  ;;  %6466 = vst [vmem:[#allocation68_spill] sm:$0xff] %v5263_v1  ;;  %v3037_v36 = vadd.f32 %v2888_v28, %v2887_v37  ;;  %v2891_v38 = vsel %vm2731_vm11, %v5260_v31, 0.0  ;;  %v5267_v11 = vpop.f32.mrb[47].mxu0  ;;  %v5270_v48 = vpop.f32.mrb[47].mxu1  ;;  %v2893_v50 = vsel %vm2733_vm14, %v5263_v1, 0.0 }
 0x1dd   : > { %6467 = vst [vmem:[#allocation69_spill] sm:$0xff] %v5267_v11  ;;  %6468 = vst [vmem:[#allocation70_spill] sm:$0xff] %v5270_v48  ;;  %v1462_v5 = vmax.f32 %v5260_v31, %v5267_v11  ;;  %v2892_v35 = vsel %vm2732_vm13, %v5267_v11, 0.0  ;;  %3030 = vadd.xlane.f32.xlu0 %v3029_v58  ;;  %1455 = vmax.xlane.f32.xlu1 %v1454_v0  ;;  %v1458_v42 = vmax.f32 %v1457_v49, %v5244_v27  ;;  %v2620_v32 = vpop.permute.xlu0 %2619  ;;  %v2617_v11 = vpop.permute.xlu1 %2616 }
 0x1de   : > { %v3042_v37 = vadd.f32 %v2892_v35, %v2891_v38  ;;  %v3038_v28 = vadd.f32 %v3037_v36, %v2889_v59  ;;  %vm2735_vm1 = vcmp.eq.s32.totalorder %v4788_v6, %v2617_v11  ;;  %v2894_v35 = vsel %vm2734_vm0, %v5270_v48, 0.0 }
 0x1df   : > { %v1459_v24 = vmax.f32 %v1458_v42, %v5255_v23  ;;  %v1463_v31 = vmax.f32 %v1462_v5, %v5263_v1  ;;  %vm2736_vm2 = vcmp.eq.s32.totalorder %v4792_v8, %v2617_v11  ;;  %vm2739_vm3 = vcmp.eq.s32.totalorder %v4788_v6, %v2620_v32 }
 0x1e0   : > { %v3039_v58 = vadd.f32 %v3038_v28, %v2890_v2  ;;  %v3043_v0 = vadd.f32 %v3042_v37, %v2893_v50  ;;  %vm2737_vm4 = vcmp.eq.s32.totalorder %v4790_v7, %v2617_v11  ;;  %vm2740_vm5 = vcmp.eq.s32.totalorder %v4792_v8, %v2620_v32 }
 0x1e1   : > { %v5284_v49 = vpop.f32.mrb[48].mxu1  ;;  %3035 = vadd.xlane.f32.xlu1 %v3034_v60  ;;  %1460 = vmax.xlane.f32.xlu0 %v1459_v24  ;;  %v5286_v39 = vpop.f32.mrb[48].mxu0  ;;  %v1464_v42 = vmax.f32 %v1463_v31, %v5270_v48  ;;  %vm2741_vm6 = vcmp.eq.s32.totalorder %v4790_v7, %v2620_v32  ;;  %vm2738_vm7 = vcmp.eq.s32.totalorder %v4797_v12, %v2617_v11 }
 0x1e2   : > { %6469 = vst [vmem:[#allocation71_spill] sm:$0xff] %v5284_v49  ;;  %6470 = vst [vmem:[#allocation72_spill] sm:$0xff] %v5286_v39  ;;  %v2895_v36 = vsel %vm2735_vm1, %v5286_v39, 0.0  ;;  %v5292_v38 = vpop.f32.mrb[49].mxu0  ;;  %v5295_v43 = vpop.f32.mrb[49].mxu1  ;;  %v3044_v2 = vadd.f32 %v3043_v0, %v2894_v35  ;;  %v2897_v0 = vsel %vm2737_vm4, %v5284_v49, 0.0  ;;  %vm2742_vm8 = vcmp.eq.s32.totalorder %v4797_v12, %v2620_v32 }
 0x1e3   : > { %6471 = vst [vmem:[#allocation73_spill] sm:$0xff] %v5292_v38  ;;  %6472 = vst [vmem:[#allocation74_spill] sm:$0xff] %v5295_v43  ;;  %v1467_v24 = vmax.f32 %v5286_v39, %v5292_v38  ;;  %v2896_v50 = vsel %vm2736_vm2, %v5292_v38, 0.0  ;;  %v5300_v60 = vpop.f32.mrb[50].mxu0  ;;  %v5303_v31 = vpop.f32.mrb[50].mxu1  ;;  %v2898_v23 = vsel %vm2738_vm7, %v5295_v43, 0.0 }
 0x1e4   : > { %6473 = vst [vmem:[#allocation75_spill] sm:$0xff] %v5300_v60  ;;  %6474 = vst [vmem:[#allocation76_spill] sm:$0xff] %v5303_v31  ;;  %v3047_v59 = vadd.f32 %v2896_v50, %v2895_v36  ;;  %v2899_v5 = vsel %vm2739_vm3, %v5300_v60, 0.0  ;;  %v5307_v37 = vpop.f32.mrb[51].mxu0  ;;  %v5310_v28 = vpop.f32.mrb[51].mxu1  ;;  %v2901_v48 = vsel %vm2741_vm6, %v5303_v31, 0.0 }
 0x1e5   : > { %6475 = vst [vmem:[#allocation77_spill] sm:$0xff] %v5307_v37  ;;  %6476 = vst [vmem:[#allocation78_spill] sm:$0xff] %v5310_v28  ;;  %v1472_v35 = vmax.f32 %v5300_v60, %v5307_v37  ;;  %v2900_v38 = vsel %vm2740_vm5, %v5307_v37, 0.0  ;;  %3040 = vadd.xlane.f32.xlu0 %v3039_v58  ;;  %1465 = vmax.xlane.f32.xlu1 %v1464_v42  ;;  %v1468_v39 = vmax.f32 %v1467_v24, %v5284_v49  ;;  %v2626_v27 = vpop.permute.xlu0 %2625  ;;  %v2623_v37 = vpop.permute.xlu1 %2622 }
 0x1e6   : > { %v3052_v36 = vadd.f32 %v2900_v38, %v2899_v5  ;;  %v3048_v50 = vadd.f32 %v3047_v59, %v2897_v0  ;;  %vm2743_vm9 = vcmp.eq.s32.totalorder %v4788_v6, %v2623_v37  ;;  %v2902_v38 = vsel %vm2742_vm8, %v5310_v28, 0.0 }
 0x1e7   : > { %v1469_v1 = vmax.f32 %v1468_v39, %v5295_v43  ;;  %v1473_v60 = vmax.f32 %v1472_v35, %v5303_v31  ;;  %vm2744_vm10 = vcmp.eq.s32.totalorder %v4792_v8, %v2623_v37  ;;  %vm2747_vm11 = vcmp.eq.s32.totalorder %v4788_v6, %v2626_v27 }
 0x1e8   : > { %v3049_v58 = vadd.f32 %v3048_v50, %v2898_v23  ;;  %v3053_v42 = vadd.f32 %v3052_v36, %v2901_v48  ;;  %vm2745_vm12 = vcmp.eq.s32.totalorder %v4790_v7, %v2623_v37  ;;  %vm2748_vm13 = vcmp.eq.s32.totalorder %v4792_v8, %v2626_v27 }
 0x1e9   : > { %v5324_v24 = vpop.f32.mrb[52].mxu1  ;;  %3045 = vadd.xlane.f32.xlu1 %v3044_v2  ;;  %1470 = vmax.xlane.f32.xlu0 %v1469_v1  ;;  %v5326_v11 = vpop.f32.mrb[52].mxu0  ;;  %v1474_v39 = vmax.f32 %v1473_v60, %v5310_v28  ;;  %vm2749_vm14 = vcmp.eq.s32.totalorder %v4790_v7, %v2626_v27  ;;  %vm2746_vm15 = vcmp.eq.s32.totalorder %v4797_v12, %v2623_v37 }
 0x1ea   : > { %6477 = vst [vmem:[#allocation79_spill] sm:$0xff] %v5326_v11  ;;  %v2903_v59 = vsel %vm2743_vm9, %v5326_v11, 0.0  ;;  %v5332_v5 = vpop.f32.mrb[53].mxu0  ;;  %v5335_v32 = vpop.f32.mrb[53].mxu1  ;;  %v3054_v23 = vadd.f32 %v3053_v42, %v2902_v38  ;;  %v2905_v42 = vsel %vm2745_vm12, %v5324_v24, 0.0  ;;  %vm2750_vm0 = vcmp.eq.s32.totalorder %v4797_v12, %v2626_v27 }
 0x1eb   : > { %6478 = vst [vmem:[#allocation80_spill] sm:$0xff] %v5332_v5  ;;  %v1477_v1 = vmax.f32 %v5326_v11, %v5332_v5  ;;  %v2904_v48 = vsel %vm2744_vm10, %v5332_v5, 0.0  ;;  %v5340_v2 = vpop.f32.mrb[54].mxu0  ;;  %v5343_v60 = vpop.f32.mrb[54].mxu1  ;;  %v2906_v43 = vsel %vm2746_vm15, %v5335_v32, 0.0  ;;  %vm2435_vm9 = vcmask 7168  }
 0x1ec   : > { %6479 = vst [vmem:[#allocation81_spill] sm:$0xff] %v5340_v2  ;;  %6480 = vst [vmem:[#allocation82_spill] sm:$0xff] %v5343_v60  ;;  %v3057_v0 = vadd.f32 %v2904_v48, %v2903_v59  ;;  %v2907_v35 = vsel %vm2747_vm11, %v5340_v2, 0.0  ;;  %v5347_v36 = vpop.f32.mrb[55].mxu0  ;;  %v5350_v50 = vpop.f32.mrb[55].mxu1  ;;  %v2909_v28 = vsel %vm2749_vm14, %v5343_v60, 0.0 }
 0x1ed   : > { %6481 = vst [vmem:[#allocation83_spill] sm:$0xff] %v5347_v36  ;;  %6482 = vst [vmem:[#allocation84_spill] sm:$0xff] %v5350_v50  ;;  %v1482_v38 = vmax.f32 %v5340_v2, %v5347_v36  ;;  %v2908_v5 = vsel %vm2748_vm13, %v5347_v36, 0.0  ;;  %3050 = vadd.xlane.f32.xlu0 %v3049_v58  ;;  %1475 = vmax.xlane.f32.xlu1 %v1474_v39  ;;  %v1478_v11 = vmax.f32 %v1477_v1, %v5324_v24  ;;  %v2629_v49 = vpop.permute.xlu1 %2628 }
 0x1ee   : > { %v3062_v59 = vadd.f32 %v2908_v5, %v2907_v35  ;;  %v3058_v48 = vadd.f32 %v3057_v0, %v2905_v42  ;;  %v2910_v1 = vsel %vm2750_vm0, %v5350_v50, 0.0  ;;  %vm2751_vm1 = vcmp.eq.s32.totalorder %v4788_v6, %v2629_v49 }
 0x1ef   : > { %v1479_v31 = vmax.f32 %v1478_v11, %v5335_v32  ;;  %v1483_v2 = vmax.f32 %v1482_v38, %v5343_v60  ;;  %vm2752_vm2 = vcmp.eq.s32.totalorder %v4792_v8, %v2629_v49  ;;  %vm2753_vm3 = vcmp.eq.s32.totalorder %v4790_v7, %v2629_v49 }
 0x1f0   : > { %v3059_v58 = vadd.f32 %v3058_v48, %v2906_v43  ;;  %v3063_v39 = vadd.f32 %v3062_v59, %v2909_v28  ;;  %vm2754_vm4 = vcmp.eq.s32.totalorder %v4797_v12, %v2629_v49 }
 0x1f1   : > { %v5365_v36 = vpop.f32.mrb[56].mxu1  ;;  %3055 = vadd.xlane.f32.xlu1 %v3054_v23  ;;  %1480 = vmax.xlane.f32.xlu0 %v1479_v31  ;;  %v5367_v37 = vpop.f32.mrb[56].mxu0  ;;  %v1484_v11 = vmax.f32 %v1483_v2, %v5350_v50 }
 0x1f2   : > { %6483 = vst [vmem:[#allocation85_spill] sm:$0xff] %v5367_v37  ;;  %v2911_v5 = vsel %vm2751_vm1, %v5367_v37, 0.0  ;;  %v5372_v0 = vpop.f32.mrb[57].mxu0  ;;  %v5375_v27 = vpop.f32.mrb[57].mxu1  ;;  %v5377_v43 = vadd.f32 %v3063_v39, %v2910_v1  ;;  %v2913_v59 = vsel %vm2753_vm3, %v5365_v36, 0.0 }
 0x1f3   : > { %6484 = vst [vmem:[#allocation86_spill] sm:$0xff] %v5372_v0  ;;  %v1487_v28 = vmax.f32 %v5367_v37, %v5372_v0  ;;  %v2912_v31 = vsel %vm2752_vm2, %v5372_v0, 0.0  ;;  %v5382_v23 = vpop.f32.mrb[58].mxu0  ;;  %v5384_v35 = vpop.f32.mrb[58].mxu1  ;;  %v2914_v37 = vsel %vm2754_vm4, %v5375_v27, 0.0 }
 0x1f4   : > { %v3067_v2 = vadd.f32 %v2912_v31, %v2911_v5  ;;  %v5387_v42 = vpop.f32.mrb[59].mxu0  ;;  %v5389_v38 = vpop.f32.mrb[59].mxu1 }
 0x1f5   : > { %6485 = vst [vmem:[#allocation87_spill] sm:$0xff] %v5387_v42  ;;  %6486 = vst [vmem:[#allocation88_spill] sm:$0xff] %v5389_v38  ;;  %v1492_v48 = vmax.f32 %v5382_v23, %v5387_v42  ;;  %3060 = vadd.xlane.f32.xlu0 %v3059_v58  ;;  %1485 = vmax.xlane.f32.xlu1 %v1484_v11  ;;  %v1488_v39 = vmax.f32 %v1487_v28, %v5365_v36  ;;  %v2635_v1 = vpop.permute.xlu1 %2634 }
 0x1f6   : > { %v3068_v0 = vadd.f32 %v3067_v2, %v2913_v59  ;;  %vm2759_vm5 = vcmp.eq.s32.totalorder %v4788_v6, %v2635_v1  ;;  %vm2760_vm6 = vcmp.eq.s32.totalorder %v4792_v8, %v2635_v1  ;;  %vm2761_vm7 = vcmp.eq.s32.totalorder %v4790_v7, %v2635_v1 }
 0x1f7   : > { %v1489_v5 = vmax.f32 %v1488_v39, %v5375_v27  ;;  %v1493_v31 = vmax.f32 %v1492_v48, %v5384_v35  ;;  %vm2762_vm8 = vcmp.eq.s32.totalorder %v4797_v12, %v2635_v1 }
 0x1f8   : > { %v5399_v50 = vadd.f32 %v3068_v0, %v2914_v37 }
 0x1f9   : > { %v5401_v60 = vpop.f32.mrb[60].mxu1  ;;  %1490 = vmax.xlane.f32.xlu0 %v1489_v5  ;;  %v5403_v42 = vpop.f32.mrb[60].mxu0  ;;  %v1494_v58 = vmax.f32 %v1493_v31, %v5389_v38  ;;  %v5436_v38 = vld [vmem:[#allocation2] sm:$0xff] }
 0x1fa   : > { %6487 = vst [vmem:[#allocation89_spill] sm:$0xff] %v5403_v42  ;;  %v2919_v49 = vsel %vm2759_vm5, %v5403_v42, 0.0  ;;  %v5408_v11 = vpop.f32.mrb[61].mxu0  ;;  %v5411_v28 = vpop.f32.mrb[61].mxu1  ;;  %v2921_v31 = vsel %vm2761_vm7, %v5401_v60, 0.0  ;;  %6492 = vst [vmem:[#allocation94_spill] sm:$0xff] %v5436_v38 }
 0x1fb   : > { %6488 = vst [vmem:[#allocation90_spill] sm:$0xff] %v5408_v11  ;;  %v1497_v37 = vmax.f32 %v5403_v42, %v5408_v11  ;;  %v2920_v0 = vsel %vm2760_vm6, %v5408_v11, 0.0  ;;  %1495 = vmax.xlane.f32.xlu1 %v1494_v58  ;;  %v5416_v2 = vpop.f32.mrb[62].mxu0  ;;  %v5418_v59 = vpop.f32.mrb[62].mxu1  ;;  %v2922_v11 = vsel %vm2762_vm8, %v5411_v28, 0.0 }
 0x1fc   : > { %6489 = vst [vmem:[#allocation91_spill] sm:$0xff] %v5416_v2  ;;  %v3077_v48 = vadd.f32 %v2920_v0, %v2919_v49  ;;  %v5421_v39 = vpop.f32.mrb[63].mxu0  ;;  %v5423_v5 = vpop.f32.mrb[63].mxu1 }
 0x1fd   : > { %6490 = vst [vmem:[#allocation92_spill] sm:$0xff] %v5421_v39  ;;  %6491 = vst [vmem:[#allocation93_spill] sm:$0xff] %v5423_v5  ;;  %v1498_v8 = vmax.f32 %v1497_v37, %v5401_v60  ;;  %v1502_v6 = vmax.f32 %v5416_v2, %v5421_v39  ;;  %v2767_v37 = vld [vmem:[#allocation4] sm:$0xff]  ;;  %v5441_v2 = vld [vmem:[#allocation2 + $0x8] sm:$0xff] }
 0x1fe   : > { %v3078_v58 = vadd.f32 %v3077_v48, %v2921_v31  ;;  %6494 = vst [vmem:[#allocation96_spill] sm:$0xff] %v5441_v2 }
 0x1ff   : > { %v1499_v42 = vmax.f32 %v1498_v8, %v5411_v28  ;;  %v1503_v49 = vmax.f32 %v1502_v6, %v5418_v59 }
 0x200   : > { %v5433_v0 = vadd.f32 %v3078_v58, %v2922_v11  ;;  %v5452_v11 = vld [vmem:[#allocation2 + $0x10] sm:$0xff] }
 0x201   : > { %1500 = vmax.xlane.f32.xlu0 %v1499_v42  ;;  %v1504_v7 = vmax.f32 %v1503_v49, %v5423_v5  ;;  %v2768_v42 = vld [vmem:[#allocation4 + $0x8] sm:$0xff]  ;;  %6496 = vst [vmem:[#allocation98_spill] sm:$0xff] %v5452_v11 }
 0x203   : > { %1505 = vmax.xlane.f32.xlu1 %v1504_v7 }
 0x216   : > { %v1351_v39 = vpop.xlane.xlu0 %1350 }
 0x217   : > { %v5439_v1 = vmax.f32 %v5436_v38, %v1351_v39  ;;  %v2931_v48 = vpop.xlane.xlu1 %2930 }
 0x218   : > { %v3087_v31 = vadd.f32 %v2931_v48, %v2767_v37 }
 0x219   : > { %6493 = vst [vmem:[#allocation95_spill] sm:$0xff] %v5439_v1  ;;  %2468 = vst.msk [vmem:[#allocation2] sm:$0xff] %vm2435_vm9, %v5439_v1  ;;  %1701 = vperm.xlu0 %3710, %v5439_v1  }
 0x21a   : > { %3119 = vst.msk [vmem:[#allocation4] sm:$0xff] %vm2435_vm9, %v3087_v31  ;;  %v1356_v7 = vpop.xlane.xlu0 %1355  ;;  %v2769_v31 = vld [vmem:[#allocation4 + $0x10] sm:$0xff] }
 0x21b   : > { %v5450_v8 = vmax.f32 %v5441_v2, %v1356_v7  ;;  %v5462_v7 = vld [vmem:[#allocation2 + $0x18] sm:$0xff] }
 0x21c   : > { %6498 = vst [vmem:[#allocation100_spill] sm:$0xff] %v5462_v7 }
 0x21d   : > { %6495 = vst [vmem:[#allocation97_spill] sm:$0xff] %v5450_v8  ;;  %2469 = vst.msk [vmem:[#allocation2 + $0x8] sm:$0xff] %vm2435_vm9, %v5450_v8  ;;  %1706 = vperm.xlu1 %3711, %v5450_v8  }
 0x21e   : > { %v2936_v58 = vpop.xlane.xlu0 %2935  ;;  %v1361_v49 = vpop.xlane.xlu1 %1360 }
 0x21f   : > { %v3088_v37 = vadd.f32 %v2936_v58, %v2768_v42  ;;  %v5460_v48 = vmax.f32 %v5452_v11, %v1361_v49  ;;  %v2770_v58 = vld [vmem:[#allocation4 + $0x18] sm:$0xff]  ;;  %v5473_v49 = vld [vmem:[#allocation2 + $0x20] sm:$0xff] }
 0x220   : > { %6500 = vst [vmem:[#allocation102_spill] sm:$0xff] %v5473_v49 }
 0x221   : > { %6497 = vst [vmem:[#allocation99_spill] sm:$0xff] %v5460_v48  ;;  %3120 = vst.msk [vmem:[#allocation4 + $0x8] sm:$0xff] %vm2435_vm9, %v3088_v37  ;;  %1711 = vperm.xlu1 %3711, %v5460_v48  }
 0x222   : > { %2470 = vst.msk [vmem:[#allocation2 + $0x10] sm:$0xff] %vm2435_vm9, %v5460_v48  ;;  %v2941_v39 = vpop.xlane.xlu0 %2940  ;;  %v1366_v1 = vpop.xlane.xlu1 %1365 }
 0x223   : > { %v3089_v38 = vadd.f32 %v2941_v39, %v2769_v31  ;;  %v5471_v42 = vmax.f32 %v5462_v7, %v1366_v1  ;;  %v2771_v1 = vld [vmem:[#allocation4 + $0x20] sm:$0xff]  ;;  %v5484_v31 = vld [vmem:[#allocation2 + $0x28] sm:$0xff] }
 0x224   : > { %6502 = vst [vmem:[#allocation104_spill] sm:$0xff] %v5484_v31 }
 0x225   : > { %6499 = vst [vmem:[#allocation101_spill] sm:$0xff] %v5471_v42  ;;  %3121 = vst.msk [vmem:[#allocation4 + $0x10] sm:$0xff] %vm2435_vm9, %v3089_v38  ;;  %1716 = vperm.xlu1 %3711, %v5471_v42  }
 0x226   : > { %2471 = vst.msk [vmem:[#allocation2 + $0x18] sm:$0xff] %vm2435_vm9, %v5471_v42  ;;  %v2946_v6 = vpop.xlane.xlu1 %2945  ;;  %v1371_v48 = vpop.xlane.xlu0 %1370 }
 0x227   : > { %v3090_v11 = vadd.f32 %v2946_v6, %v2770_v58  ;;  %v5482_v39 = vmax.f32 %v5473_v49, %v1371_v48  ;;  %v2772_v48 = vld [vmem:[#allocation4 + $0x28] sm:$0xff]  ;;  %v5495_v58 = vld [vmem:[#allocation2 + $0x30] sm:$0xff] }
 0x228   : > { %6504 = vst [vmem:[#allocation106_spill] sm:$0xff] %v5495_v58 }
 0x229   : > { %6501 = vst [vmem:[#allocation103_spill] sm:$0xff] %v5482_v39  ;;  %3122 = vst.msk [vmem:[#allocation4 + $0x18] sm:$0xff] %vm2435_vm9, %v3090_v11  ;;  %1721 = vperm.xlu1 %3711, %v5482_v39  }
 0x22a   : > { %2472 = vst.msk [vmem:[#allocation2 + $0x20] sm:$0xff] %vm2435_vm9, %v5482_v39  ;;  %v2951_v37 = vpop.xlane.xlu0 %2950  ;;  %v1376_v42 = vpop.xlane.xlu1 %1375 }
 0x22b   : > { %v3091_v7 = vadd.f32 %v2951_v37, %v2771_v1  ;;  %v5493_v6 = vmax.f32 %v5484_v31, %v1376_v42  ;;  %v2773_v42 = vld [vmem:[#allocation4 + $0x30] sm:$0xff]  ;;  %v5506_v1 = vld [vmem:[#allocation2 + $0x38] sm:$0xff] }
 0x22c   : > { %6506 = vst [vmem:[#allocation108_spill] sm:$0xff] %v5506_v1 }
 0x22d   : > { %6503 = vst [vmem:[#allocation105_spill] sm:$0xff] %v5493_v6  ;;  %3123 = vst.msk [vmem:[#allocation4 + $0x20] sm:$0xff] %vm2435_vm9, %v3091_v7  ;;  %1726 = vperm.xlu1 %3711, %v5493_v6  }
 0x22e   : > { %2473 = vst.msk [vmem:[#allocation2 + $0x28] sm:$0xff] %vm2435_vm9, %v5493_v6  ;;  %v2956_v38 = vpop.xlane.xlu1 %2955  ;;  %v1381_v39 = vpop.xlane.xlu0 %1380 }
 0x22f   : > { %v3092_v49 = vadd.f32 %v2956_v38, %v2772_v48  ;;  %v5504_v37 = vmax.f32 %v5495_v58, %v1381_v39  ;;  %v2774_v39 = vld [vmem:[#allocation4 + $0x38] sm:$0xff]  ;;  %v5517_v48 = vld [vmem:[#allocation2 + $0x40] sm:$0xff] }
 0x230   : > { %6508 = vst [vmem:[#allocation110_spill] sm:$0xff] %v5517_v48 }
 0x231   : > { %6505 = vst [vmem:[#allocation107_spill] sm:$0xff] %v5504_v37  ;;  %3124 = vst.msk [vmem:[#allocation4 + $0x28] sm:$0xff] %vm2435_vm9, %v3092_v49  ;;  %1731 = vperm.xlu1 %3711, %v5504_v37  }
 0x232   : > { %2474 = vst.msk [vmem:[#allocation2 + $0x30] sm:$0xff] %vm2435_vm9, %v5504_v37  ;;  %v2961_v11 = vpop.xlane.xlu0 %2960  ;;  %v1386_v6 = vpop.xlane.xlu1 %1385 }
 0x233   : > { %v3093_v31 = vadd.f32 %v2961_v11, %v2773_v42  ;;  %v5515_v38 = vmax.f32 %v5506_v1, %v1386_v6  ;;  %v2775_v6 = vld [vmem:[#allocation4 + $0x40] sm:$0xff]  ;;  %v5528_v42 = vld [vmem:[#allocation2 + $0x48] sm:$0xff] }
 0x234   : > { %6510 = vst [vmem:[#allocation112_spill] sm:$0xff] %v5528_v42 }
 0x235   : > { %6507 = vst [vmem:[#allocation109_spill] sm:$0xff] %v5515_v38  ;;  %3125 = vst.msk [vmem:[#allocation4 + $0x30] sm:$0xff] %vm2435_vm9, %v3093_v31  ;;  %1736 = vperm.xlu1 %3711, %v5515_v38  }
 0x236   : > { %2475 = vst.msk [vmem:[#allocation2 + $0x38] sm:$0xff] %vm2435_vm9, %v5515_v38  ;;  %v2966_v7 = vpop.xlane.xlu1 %2965  ;;  %v1391_v37 = vpop.xlane.xlu0 %1390 }
 0x237   : > { %v3094_v58 = vadd.f32 %v2966_v7, %v2774_v39  ;;  %v5526_v11 = vmax.f32 %v5517_v48, %v1391_v37  ;;  %v2776_v37 = vld [vmem:[#allocation4 + $0x48] sm:$0xff]  ;;  %v5539_v39 = vld [vmem:[#allocation2 + $0x50] sm:$0xff] }
 0x238   : > { %6512 = vst [vmem:[#allocation114_spill] sm:$0xff] %v5539_v39 }
 0x239   : > { %6509 = vst [vmem:[#allocation111_spill] sm:$0xff] %v5526_v11  ;;  %3126 = vst.msk [vmem:[#allocation4 + $0x38] sm:$0xff] %vm2435_vm9, %v3094_v58  ;;  %1741 = vperm.xlu1 %3711, %v5526_v11  }
 0x23a   : > { %2476 = vst.msk [vmem:[#allocation2 + $0x40] sm:$0xff] %vm2435_vm9, %v5526_v11  ;;  %v2971_v49 = vpop.xlane.xlu0 %2970  ;;  %v1396_v38 = vpop.xlane.xlu1 %1395 }
 0x23b   : > { %v3095_v1 = vadd.f32 %v2971_v49, %v2775_v6  ;;  %v5537_v7 = vmax.f32 %v5528_v42, %v1396_v38  ;;  %v2777_v38 = vld [vmem:[#allocation4 + $0x50] sm:$0xff]  ;;  %v5550_v6 = vld [vmem:[#allocation2 + $0x58] sm:$0xff] }
 0x23c   : > { %6514 = vst [vmem:[#allocation116_spill] sm:$0xff] %v5550_v6 }
 0x23d   : > { %6511 = vst [vmem:[#allocation113_spill] sm:$0xff] %v5537_v7  ;;  %3127 = vst.msk [vmem:[#allocation4 + $0x40] sm:$0xff] %vm2435_vm9, %v3095_v1  ;;  %1746 = vperm.xlu0 %3710, %v5537_v7  }
 0x23e   : > { %2477 = vst.msk [vmem:[#allocation2 + $0x48] sm:$0xff] %vm2435_vm9, %v5537_v7  ;;  %v2976_v31 = vpop.xlane.xlu1 %2975  ;;  %v1401_v11 = vpop.xlane.xlu0 %1400 }
 0x23f   : > { %v3096_v48 = vadd.f32 %v2976_v31, %v2776_v37  ;;  %v5548_v49 = vmax.f32 %v5539_v39, %v1401_v11  ;;  %v2778_v11 = vld [vmem:[#allocation4 + $0x58] sm:$0xff]  ;;  %v5561_v37 = vld [vmem:[#allocation2 + $0x60] sm:$0xff] }
 0x240   : > { %6516 = vst [vmem:[#allocation118_spill] sm:$0xff] %v5561_v37 }
 0x241   : > { %6513 = vst [vmem:[#allocation115_spill] sm:$0xff] %v5548_v49  ;;  %3128 = vst.msk [vmem:[#allocation4 + $0x48] sm:$0xff] %vm2435_vm9, %v3096_v48  ;;  %1751 = vperm.xlu1 %3711, %v5548_v49  }
 0x242   : > { %2478 = vst.msk [vmem:[#allocation2 + $0x50] sm:$0xff] %vm2435_vm9, %v5548_v49  ;;  %v2981_v58 = vpop.xlane.xlu0 %2980  ;;  %v1406_v7 = vpop.xlane.xlu1 %1405 }
 0x243   : > { %v3097_v42 = vadd.f32 %v2981_v58, %v2777_v38  ;;  %v5559_v31 = vmax.f32 %v5550_v6, %v1406_v7  ;;  %v2779_v7 = vld [vmem:[#allocation4 + $0x60] sm:$0xff]  ;;  %v5572_v38 = vld [vmem:[#allocation2 + $0x68] sm:$0xff] }
 0x244   : > { %6518 = vst [vmem:[#allocation120_spill] sm:$0xff] %v5572_v38 }
 0x245   : > { %6515 = vst [vmem:[#allocation117_spill] sm:$0xff] %v5559_v31  ;;  %3129 = vst.msk [vmem:[#allocation4 + $0x50] sm:$0xff] %vm2435_vm9, %v3097_v42  ;;  %1756 = vperm.xlu0 %3710, %v5559_v31  }
 0x246   : > { %2479 = vst.msk [vmem:[#allocation2 + $0x58] sm:$0xff] %vm2435_vm9, %v5559_v31  ;;  %v2986_v1 = vpop.xlane.xlu1 %2985  ;;  %v1411_v49 = vpop.xlane.xlu0 %1410 }
 0x247   : > { %v3098_v39 = vadd.f32 %v2986_v1, %v2778_v11  ;;  %v5570_v58 = vmax.f32 %v5561_v37, %v1411_v49  ;;  %v2780_v49 = vld [vmem:[#allocation4 + $0x68] sm:$0xff]  ;;  %v5583_v11 = vld [vmem:[#allocation2 + $0x70] sm:$0xff] }
 0x248   : > { %6520 = vst [vmem:[#allocation122_spill] sm:$0xff] %v5583_v11 }
 0x249   : > { %6517 = vst [vmem:[#allocation119_spill] sm:$0xff] %v5570_v58  ;;  %3130 = vst.msk [vmem:[#allocation4 + $0x58] sm:$0xff] %vm2435_vm9, %v3098_v39  ;;  %1761 = vperm.xlu1 %3711, %v5570_v58  }
 0x24a   : > { %2480 = vst.msk [vmem:[#allocation2 + $0x60] sm:$0xff] %vm2435_vm9, %v5570_v58  ;;  %v2991_v48 = vpop.xlane.xlu0 %2990  ;;  %v1416_v31 = vpop.xlane.xlu1 %1415 }
 0x24b   : > { %v3099_v6 = vadd.f32 %v2991_v48, %v2779_v7  ;;  %v5581_v1 = vmax.f32 %v5572_v38, %v1416_v31  ;;  %v2781_v31 = vld [vmem:[#allocation4 + $0x70] sm:$0xff]  ;;  %v5594_v7 = vld [vmem:[#allocation2 + $0x78] sm:$0xff] }
 0x24c   : > { %6522 = vst [vmem:[#allocation124_spill] sm:$0xff] %v5594_v7 }
 0x24d   : > { %6519 = vst [vmem:[#allocation121_spill] sm:$0xff] %v5581_v1  ;;  %3131 = vst.msk [vmem:[#allocation4 + $0x60] sm:$0xff] %vm2435_vm9, %v3099_v6  ;;  %1766 = vperm.xlu0 %3710, %v5581_v1  }
 0x24e   : > { %2481 = vst.msk [vmem:[#allocation2 + $0x68] sm:$0xff] %vm2435_vm9, %v5581_v1  ;;  %v2996_v42 = vpop.xlane.xlu1 %2995  ;;  %v1421_v58 = vpop.xlane.xlu0 %1420 }
 0x24f   : > { %v3100_v37 = vadd.f32 %v2996_v42, %v2780_v49  ;;  %v5592_v48 = vmax.f32 %v5583_v11, %v1421_v58  ;;  %v2782_v58 = vld [vmem:[#allocation4 + $0x78] sm:$0xff]  ;;  %v5605_v49 = vld [vmem:[#allocation2 + $0x80] sm:$0xff] }
 0x250   : > { %6524 = vst [vmem:[#allocation126_spill] sm:$0xff] %v5605_v49 }
 0x251   : > { %6521 = vst [vmem:[#allocation123_spill] sm:$0xff] %v5592_v48  ;;  %3132 = vst.msk [vmem:[#allocation4 + $0x68] sm:$0xff] %vm2435_vm9, %v3100_v37  ;;  %1771 = vperm.xlu1 %3711, %v5592_v48  }
 0x252   : > { %2482 = vst.msk [vmem:[#allocation2 + $0x70] sm:$0xff] %vm2435_vm9, %v5592_v48  ;;  %v3001_v39 = vpop.xlane.xlu0 %3000  ;;  %v1426_v1 = vpop.xlane.xlu1 %1425 }
 0x253   : > { %v3101_v38 = vadd.f32 %v3001_v39, %v2781_v31  ;;  %v5603_v42 = vmax.f32 %v5594_v7, %v1426_v1  ;;  %v2783_v1 = vld [vmem:[#allocation4 + $0x80] sm:$0xff]  ;;  %v5616_v31 = vld [vmem:[#allocation2 + $0x88] sm:$0xff] }
 0x254   : > { %6526 = vst [vmem:[#allocation128_spill] sm:$0xff] %v5616_v31 }
 0x255   : > { %6523 = vst [vmem:[#allocation125_spill] sm:$0xff] %v5603_v42  ;;  %3133 = vst.msk [vmem:[#allocation4 + $0x70] sm:$0xff] %vm2435_vm9, %v3101_v38  ;;  %1776 = vperm.xlu0 %3710, %v5603_v42  }
 0x256   : > { %2483 = vst.msk [vmem:[#allocation2 + $0x78] sm:$0xff] %vm2435_vm9, %v5603_v42  ;;  %v3006_v6 = vpop.xlane.xlu1 %3005  ;;  %v1431_v48 = vpop.xlane.xlu0 %1430 }
 0x257   : > { %v3102_v11 = vadd.f32 %v3006_v6, %v2782_v58  ;;  %v5614_v39 = vmax.f32 %v5605_v49, %v1431_v48  ;;  %v2784_v48 = vld [vmem:[#allocation4 + $0x88] sm:$0xff]  ;;  %v5627_v58 = vld [vmem:[#allocation2 + $0x90] sm:$0xff] }
 0x258   : > { %6528 = vst [vmem:[#allocation130_spill] sm:$0xff] %v5627_v58 }
 0x259   : > { %6525 = vst [vmem:[#allocation127_spill] sm:$0xff] %v5614_v39  ;;  %3134 = vst.msk [vmem:[#allocation4 + $0x78] sm:$0xff] %vm2435_vm9, %v3102_v11  ;;  %1781 = vperm.xlu1 %3711, %v5614_v39  }
 0x25a   : > { %2484 = vst.msk [vmem:[#allocation2 + $0x80] sm:$0xff] %vm2435_vm9, %v5614_v39  ;;  %v3011_v37 = vpop.xlane.xlu0 %3010  ;;  %v1436_v42 = vpop.xlane.xlu1 %1435 }
 0x25b   : > { %v3103_v7 = vadd.f32 %v3011_v37, %v2783_v1  ;;  %v5625_v6 = vmax.f32 %v5616_v31, %v1436_v42  ;;  %v2785_v42 = vld [vmem:[#allocation4 + $0x90] sm:$0xff]  ;;  %v5638_v1 = vld [vmem:[#allocation2 + $0x98] sm:$0xff] }
 0x25c   : > { %6530 = vst [vmem:[#allocation132_spill] sm:$0xff] %v5638_v1 }
 0x25d   : > { %6527 = vst [vmem:[#allocation129_spill] sm:$0xff] %v5625_v6  ;;  %3135 = vst.msk [vmem:[#allocation4 + $0x80] sm:$0xff] %vm2435_vm9, %v3103_v7  ;;  %1786 = vperm.xlu0 %3710, %v5625_v6  }
 0x25e   : > { %2485 = vst.msk [vmem:[#allocation2 + $0x88] sm:$0xff] %vm2435_vm9, %v5625_v6  ;;  %v3016_v38 = vpop.xlane.xlu1 %3015  ;;  %v1441_v39 = vpop.xlane.xlu0 %1440 }
 0x25f   : > { %v3104_v49 = vadd.f32 %v3016_v38, %v2784_v48  ;;  %v5636_v37 = vmax.f32 %v5627_v58, %v1441_v39  ;;  %v2786_v39 = vld [vmem:[#allocation4 + $0x98] sm:$0xff]  ;;  %v5649_v48 = vld [vmem:[#allocation2 + $0xa0] sm:$0xff] }
 0x260   : > { %6532 = vst [vmem:[#allocation134_spill] sm:$0xff] %v5649_v48 }
 0x261   : > { %6529 = vst [vmem:[#allocation131_spill] sm:$0xff] %v5636_v37  ;;  %3136 = vst.msk [vmem:[#allocation4 + $0x88] sm:$0xff] %vm2435_vm9, %v3104_v49  ;;  %1791 = vperm.xlu1 %3711, %v5636_v37  }
 0x262   : > { %2486 = vst.msk [vmem:[#allocation2 + $0x90] sm:$0xff] %vm2435_vm9, %v5636_v37  ;;  %v3021_v11 = vpop.xlane.xlu0 %3020  ;;  %v1446_v6 = vpop.xlane.xlu1 %1445 }
 0x263   : > { %v3105_v31 = vadd.f32 %v3021_v11, %v2785_v42  ;;  %v5647_v38 = vmax.f32 %v5638_v1, %v1446_v6  ;;  %v2787_v6 = vld [vmem:[#allocation4 + $0xa0] sm:$0xff]  ;;  %v5660_v42 = vld [vmem:[#allocation2 + $0xa8] sm:$0xff] }
 0x264   : > { %6534 = vst [vmem:[#allocation136_spill] sm:$0xff] %v5660_v42 }
 0x265   : > { %6531 = vst [vmem:[#allocation133_spill] sm:$0xff] %v5647_v38  ;;  %3137 = vst.msk [vmem:[#allocation4 + $0x90] sm:$0xff] %vm2435_vm9, %v3105_v31  ;;  %1796 = vperm.xlu0 %3710, %v5647_v38  }
 0x266   : > { %2487 = vst.msk [vmem:[#allocation2 + $0x98] sm:$0xff] %vm2435_vm9, %v5647_v38  ;;  %v3026_v7 = vpop.xlane.xlu1 %3025  ;;  %v1451_v37 = vpop.xlane.xlu0 %1450 }
 0x267   : > { %v3106_v58 = vadd.f32 %v3026_v7, %v2786_v39  ;;  %v5658_v11 = vmax.f32 %v5649_v48, %v1451_v37  ;;  %v2788_v37 = vld [vmem:[#allocation4 + $0xa8] sm:$0xff]  ;;  %v5671_v39 = vld [vmem:[#allocation2 + $0xb0] sm:$0xff] }
 0x268   : > { %6536 = vst [vmem:[#allocation138_spill] sm:$0xff] %v5671_v39 }
 0x269   : > { %6533 = vst [vmem:[#allocation135_spill] sm:$0xff] %v5658_v11  ;;  %3138 = vst.msk [vmem:[#allocation4 + $0x98] sm:$0xff] %vm2435_vm9, %v3106_v58  ;;  %1801 = vperm.xlu1 %3711, %v5658_v11  }
 0x26a   : > { %2488 = vst.msk [vmem:[#allocation2 + $0xa0] sm:$0xff] %vm2435_vm9, %v5658_v11  ;;  %v3031_v49 = vpop.xlane.xlu0 %3030  ;;  %v1456_v38 = vpop.xlane.xlu1 %1455 }
 0x26b   : > { %v3107_v1 = vadd.f32 %v3031_v49, %v2787_v6  ;;  %v5669_v7 = vmax.f32 %v5660_v42, %v1456_v38  ;;  %v2789_v38 = vld [vmem:[#allocation4 + $0xb0] sm:$0xff]  ;;  %v5682_v6 = vld [vmem:[#allocation2 + $0xb8] sm:$0xff] }
 0x26c   : > { %6538 = vst [vmem:[#allocation140_spill] sm:$0xff] %v5682_v6 }
 0x26d   : > { %6535 = vst [vmem:[#allocation137_spill] sm:$0xff] %v5669_v7  ;;  %3139 = vst.msk [vmem:[#allocation4 + $0xa0] sm:$0xff] %vm2435_vm9, %v3107_v1  ;;  %1806 = vperm.xlu0 %3710, %v5669_v7  }
 0x26e   : > { %2489 = vst.msk [vmem:[#allocation2 + $0xa8] sm:$0xff] %vm2435_vm9, %v5669_v7  ;;  %v3036_v31 = vpop.xlane.xlu1 %3035  ;;  %v1461_v11 = vpop.xlane.xlu0 %1460 }
 0x26f   : > { %v3108_v48 = vadd.f32 %v3036_v31, %v2788_v37  ;;  %v5680_v49 = vmax.f32 %v5671_v39, %v1461_v11  ;;  %v2790_v11 = vld [vmem:[#allocation4 + $0xb8] sm:$0xff]  ;;  %v5693_v37 = vld [vmem:[#allocation2 + $0xc0] sm:$0xff] }
 0x270   : > { %6540 = vst [vmem:[#allocation142_spill] sm:$0xff] %v5693_v37 }
 0x271   : > { %6537 = vst [vmem:[#allocation139_spill] sm:$0xff] %v5680_v49  ;;  %3140 = vst.msk [vmem:[#allocation4 + $0xa8] sm:$0xff] %vm2435_vm9, %v3108_v48  ;;  %1811 = vperm.xlu1 %3711, %v5680_v49  }
 0x272   : > { %2490 = vst.msk [vmem:[#allocation2 + $0xb0] sm:$0xff] %vm2435_vm9, %v5680_v49  ;;  %v3041_v58 = vpop.xlane.xlu0 %3040  ;;  %v1466_v7 = vpop.xlane.xlu1 %1465 }
 0x273   : > { %v3109_v42 = vadd.f32 %v3041_v58, %v2789_v38  ;;  %v5691_v31 = vmax.f32 %v5682_v6, %v1466_v7  ;;  %v2791_v7 = vld [vmem:[#allocation4 + $0xc0] sm:$0xff]  ;;  %v5704_v38 = vld [vmem:[#allocation2 + $0xc8] sm:$0xff] }
 0x274   : > { %6542 = vst [vmem:[#allocation144_spill] sm:$0xff] %v5704_v38 }
 0x275   : > { %6539 = vst [vmem:[#allocation141_spill] sm:$0xff] %v5691_v31  ;;  %3141 = vst.msk [vmem:[#allocation4 + $0xb0] sm:$0xff] %vm2435_vm9, %v3109_v42  ;;  %1816 = vperm.xlu0 %3710, %v5691_v31  }
 0x276   : > { %2491 = vst.msk [vmem:[#allocation2 + $0xb8] sm:$0xff] %vm2435_vm9, %v5691_v31  ;;  %v3046_v1 = vpop.xlane.xlu1 %3045  ;;  %v1471_v49 = vpop.xlane.xlu0 %1470 }
 0x277   : > { %v3110_v39 = vadd.f32 %v3046_v1, %v2790_v11  ;;  %v5702_v58 = vmax.f32 %v5693_v37, %v1471_v49  ;;  %v2792_v49 = vld [vmem:[#allocation4 + $0xc8] sm:$0xff]  ;;  %v5715_v11 = vld [vmem:[#allocation2 + $0xd0] sm:$0xff] }
 0x278   : > { %6544 = vst [vmem:[#allocation146_spill] sm:$0xff] %v5715_v11 }
 0x279   : > { %6541 = vst [vmem:[#allocation143_spill] sm:$0xff] %v5702_v58  ;;  %3142 = vst.msk [vmem:[#allocation4 + $0xb8] sm:$0xff] %vm2435_vm9, %v3110_v39  ;;  %1821 = vperm.xlu1 %3711, %v5702_v58  }
 0x27a   : > { %2492 = vst.msk [vmem:[#allocation2 + $0xc0] sm:$0xff] %vm2435_vm9, %v5702_v58  ;;  %v3051_v48 = vpop.xlane.xlu0 %3050  ;;  %v1476_v31 = vpop.xlane.xlu1 %1475 }
 0x27b   : > { %v3111_v6 = vadd.f32 %v3051_v48, %v2791_v7  ;;  %v5713_v1 = vmax.f32 %v5704_v38, %v1476_v31  ;;  %v2793_v31 = vld [vmem:[#allocation4 + $0xd0] sm:$0xff]  ;;  %v5726_v7 = vld [vmem:[#allocation2 + $0xd8] sm:$0xff] }
 0x27c   : > { %6546 = vst [vmem:[#allocation148_spill] sm:$0xff] %v5726_v7 }
 0x27d   : > { %6543 = vst [vmem:[#allocation145_spill] sm:$0xff] %v5713_v1  ;;  %3143 = vst.msk [vmem:[#allocation4 + $0xc0] sm:$0xff] %vm2435_vm9, %v3111_v6  ;;  %1826 = vperm.xlu0 %3710, %v5713_v1   ;;  %v5745_v6 = vld [vmem:[#allocation2 + $0xe8] sm:$0xff] }
 0x27e   : > { %2493 = vst.msk [vmem:[#allocation2 + $0xc8] sm:$0xff] %vm2435_vm9, %v5713_v1  ;;  %v3056_v42 = vpop.xlane.xlu1 %3055  ;;  %v1481_v58 = vpop.xlane.xlu0 %1480  ;;  %6549 = vst [vmem:[#allocation151_spill] sm:$0xff] %v5745_v6 }
 0x27f   : > { %v3112_v37 = vadd.f32 %v3056_v42, %v2792_v49  ;;  %v5724_v48 = vmax.f32 %v5715_v11, %v1481_v58  ;;  %v5737_v58 = vld [vmem:[#allocation2 + $0xe0] sm:$0xff] }
 0x280   : > { %6548 = vst [vmem:[#allocation150_spill] sm:$0xff] %v5737_v58 }
 0x281   : > { %6545 = vst [vmem:[#allocation147_spill] sm:$0xff] %v5724_v48  ;;  %3144 = vst.msk [vmem:[#allocation4 + $0xc8] sm:$0xff] %vm2435_vm9, %v3112_v37  ;;  %1831 = vperm.xlu1 %3711, %v5724_v48  }
 0x282   : > { %2494 = vst.msk [vmem:[#allocation2 + $0xd0] sm:$0xff] %vm2435_vm9, %v5724_v48  ;;  %v3061_v39 = vpop.xlane.xlu0 %3060  ;;  %v1486_v1 = vpop.xlane.xlu1 %1485 }
 0x283   : > { %v3113_v38 = vadd.f32 %v3061_v39, %v2793_v31  ;;  %v5735_v42 = vmax.f32 %v5726_v7, %v1486_v1  ;;  %v5765_v31 = vld [vmem:[#allocation2 + $0xf8] sm:$0xff] }
 0x284   : > { %6553 = vst [vmem:[#allocation155_spill] sm:$0xff] %v5765_v31 }
 0x285   : > { %6547 = vst [vmem:[#allocation149_spill] sm:$0xff] %v5735_v42  ;;  %3145 = vst.msk [vmem:[#allocation4 + $0xd0] sm:$0xff] %vm2435_vm9, %v3113_v38  ;;  %1836 = vperm.xlu0 %3710, %v5735_v42  }
 0x286   : > { %2495 = vst.msk [vmem:[#allocation2 + $0xd8] sm:$0xff] %vm2435_vm9, %v5735_v42  ;;  %v1491_v49 = vpop.xlane.xlu0 %1490 }
 0x287   : > { %v5748_v39 = vmax.f32 %v5737_v58, %v1491_v49  ;;  %v5763_v49 = vld [vmem:[#allocation2 + $0xf0] sm:$0xff] }
 0x288   : > { %v1496_v1 = vpop.xlane.xlu1 %1495  ;;  %6552 = vst [vmem:[#allocation154_spill] sm:$0xff] %v5763_v49 }
 0x289   : > { %6550 = vst [vmem:[#allocation152_spill] sm:$0xff] %v5748_v39  ;;  %2496 = vst.msk [vmem:[#allocation2 + $0xe0] sm:$0xff] %vm2435_vm9, %v5748_v39  ;;  %v5755_v38 = vmax.f32 %v5745_v6, %v1496_v1  ;;  %1841 = vperm.xlu1 %3711, %v5748_v39  }
 0x28b   : > { %6551 = vst [vmem:[#allocation153_spill] sm:$0xff] %v5755_v38  ;;  %2497 = vst.msk [vmem:[#allocation2 + $0xe8] sm:$0xff] %vm2435_vm9, %v5755_v38  ;;  %1846 = vperm.xlu0 %3710, %v5755_v38  }
 0x28e   : > { %v1501_v42 = vpop.xlane.xlu0 %1500 }
 0x28f   : > { %v5768_v7 = vmax.f32 %v5763_v49, %v1501_v42 }
 0x290   : > { %v1506_v1 = vpop.xlane.xlu1 %1505 }
 0x291   : > { %6554 = vst [vmem:[#allocation156_spill] sm:$0xff] %v5768_v7  ;;  %2498 = vst.msk [vmem:[#allocation2 + $0xf0] sm:$0xff] %vm2435_vm9, %v5768_v7  ;;  %1851 = vperm.xlu1 %3711, %v5768_v7   ;;  %v5776_v37 = vmax.f32 %v5765_v31, %v1506_v1 }
 0x293   : > { %2499 = vst.msk [vmem:[#allocation2 + $0xf8] sm:$0xff] %vm2435_vm9, %v5776_v37 }
 0x298   : > { %v1702_v42 = vpop.permute.xlu0 %1701 }
 0x299   : > { %v1859_v6 = vsub.f32 %v4799_v13, %v1702_v42  ;;  %v1860_v58 = vsub.f32 %v4805_v16, %v1702_v42  ;;  %v1861_v39 = vsub.f32 %v4801_v14, %v1702_v42  ;;  %v1862_v49 = vsub.f32 %v4807_v17, %v1702_v42 }
 0x29b   : > { %v1987_v48 = vmul.f32 1.442695, %v1859_v6  ;;  %v1989_v7 = vmul.f32 1.442695, %v1860_v58  ;;  %v1991_v11 = vmul.f32 1.442695, %v1861_v39 }
 0x29c   : > { %v1993_v1 = vmul.f32 1.442695, %v1862_v49  ;;  %v1707_v8 = vpop.permute.xlu1 %1706 }
 0x29d   : > { %3856 = vpow2.f32 %v1987_v48  ;;  %v1863_v38 = vsub.f32 %v4814_v21, %v1707_v8  ;;  %v1864_v31 = vsub.f32 %v4820_v25, %v1707_v8  ;;  %v1865_v2 = vsub.f32 %v4816_v22, %v1707_v8 }
 0x29e   : > { %3858 = vpow2.f32 %v1989_v7  ;;  %v1866_v13 = vsub.f32 %v4822_v26, %v1707_v8 }
 0x29f   : > { %3860 = vpow2.f32 %v1991_v11  ;;  %v1995_v16 = vmul.f32 1.442695, %v1863_v38  ;;  %v1997_v14 = vmul.f32 1.442695, %v1864_v31  ;;  %v1999_v5 = vmul.f32 1.442695, %v1865_v2 }
 0x2a0   : > { %3862 = vpow2.f32 %v1993_v1  ;;  %v2001_v17 = vmul.f32 1.442695, %v1866_v13  ;;  %v1712_v6 = vpop.permute.xlu1 %1711 }
 0x2a1   : > { %3864 = vpow2.f32 %v1995_v16  ;;  %v1867_v58 = vsub.f32 %v4839_v41, %v1712_v6  ;;  %v1868_v48 = vsub.f32 %v4848_v46, %v1712_v6  ;;  %v1869_v21 = vsub.f32 %v4837_v40, %v1712_v6 }
 0x2a2   : > { %3866 = vpow2.f32 %v1997_v14  ;;  %v1870_v22 = vsub.f32 %v4846_v45, %v1712_v6 }
 0x2a3   : > { %3868 = vpow2.f32 %v1999_v5  ;;  %v2003_v25 = vmul.f32 1.442695, %v1867_v58  ;;  %v2005_v26 = vmul.f32 1.442695, %v1868_v48  ;;  %v2007_v8 = vmul.f32 1.442695, %v1869_v21 }
 0x2a4   : > { %3870 = vpow2.f32 %v2001_v17  ;;  %v2009_v11 = vmul.f32 1.442695, %v1870_v22  ;;  %v1717_v2 = vpop.permute.xlu1 %1716 }
 0x2a5   : > { %3872 = vpow2.f32 %v2003_v25  ;;  %v1871_v7 = vsub.f32 %v4854_v51, %v1717_v2  ;;  %v1872_v39 = vsub.f32 %v4860_v55, %v1717_v2  ;;  %v1873_v41 = vsub.f32 %v4857_v52, %v1717_v2 }
 0x2a6   : > { %3874 = vpow2.f32 %v2005_v26  ;;  %v1874_v40 = vsub.f32 %v4863_v56, %v1717_v2 }
 0x2a7   : > { %v3857_v46 = vpop.eup %3856  ;;  %3876 = vpow2.f32 %v2007_v8  ;;  %v2011_v45 = vmul.f32 1.442695, %v1871_v7  ;;  %v2013_v5 = vmul.f32 1.442695, %v1872_v39  ;;  %v2015_v31 = vmul.f32 1.442695, %v1873_v41 }
 0x2a8   : > { %v3859_v38 = vpop.eup %3858  ;;  %3878 = vpow2.f32 %v2009_v11  ;;  %v2017_v49 = vmul.f32 1.442695, %v1874_v40  ;;  %v1722_v42 = vpop.permute.xlu1 %1721 }
 0x2a9   : > { %v3861_v1 = vpop.eup %3860  ;;  %3880 = vpow2.f32 %v2011_v45  ;;  %v1875_v51 = vsub.f32 %v4881_v10, %v1722_v42  ;;  %v1876_v55 = vsub.f32 %v4888_v19, %v1722_v42  ;;  %v1877_v52 = vsub.f32 %v4879_v9, %v1722_v42 }
 0x2aa   : > { %v3863_v13 = vpop.eup %3862  ;;  %3882 = vpow2.f32 %v2013_v5  ;;  %v1878_v56 = vsub.f32 %v4890_v20, %v1722_v42  ;;  %3070 = vadd.xlane.f32.xlu0 %v5399_v50  ;;  %v2243_v16 = vadd.f32 %v3859_v38, %v3857_v46 }
 0x2ab   : > { %v3865_v14 = vpop.eup %3864  ;;  %3884 = vpow2.f32 %v2015_v31  ;;  %v2019_v17 = vmul.f32 1.442695, %v1875_v51  ;;  %v2021_v6 = vmul.f32 1.442695, %v1876_v55  ;;  %v2023_v58 = vmul.f32 1.442695, %v1877_v52 }
 0x2ac   : > { %v3867_v48 = vpop.eup %3866  ;;  %3886 = vpow2.f32 %v2017_v49  ;;  %v2025_v21 = vmul.f32 1.442695, %v1878_v56  ;;  %v1727_v10 = vpop.permute.xlu1 %1726  ;;  %v2244_v22 = vadd.f32 %v3861_v1, %v2243_v16 }
 0x2ad   : > { %v3869_v19 = vpop.eup %3868  ;;  %3888 = vpow2.f32 %v2019_v17  ;;  %v1879_v9 = vsub.f32 %v4896_v29, %v1727_v10  ;;  %v1880_v25 = vsub.f32 %v4902_v33, %v1727_v10  ;;  %v1881_v20 = vsub.f32 %v4899_v30, %v1727_v10 }
 0x2ae   : > { %v3871_v50 = vpop.eup %3870  ;;  %3890 = vpow2.f32 %v2021_v6  ;;  %v1882_v26 = vsub.f32 %v4905_v34, %v1727_v10  ;;  %v2248_v8 = vadd.f32 %v3867_v48, %v3865_v14  ;;  %v5807_v11 = vadd.f32 %v3863_v13, %v2244_v22 }
 0x2af   : > { %v3873_v2 = vpop.eup %3872  ;;  %3892 = vpow2.f32 %v2023_v58  ;;  %v2027_v7 = vmul.f32 1.442695, %v1879_v9  ;;  %v2029_v39 = vmul.f32 1.442695, %v1880_v25  ;;  %v2031_v41 = vmul.f32 1.442695, %v1881_v20 }
 0x2b0   : > { %v3875_v40 = vpop.eup %3874  ;;  %3894 = vpow2.f32 %v2025_v21  ;;  %v2033_v46 = vmul.f32 1.442695, %v1882_v26  ;;  %v1732_v29 = vpop.permute.xlu1 %1731  ;;  %v2249_v45 = vadd.f32 %v3869_v19, %v2248_v8  ;;  %v6555_v26 = vld [vmem:[#allocation11_spill] sm:$0xff] }
 0x2b1   : > { %v3877_v33 = vpop.eup %3876  ;;  %3896 = vpow2.f32 %v2027_v7  ;;  %v1883_v30 = vsub.f32 %v4923_v57, %v1732_v29  ;;  %v1884_v5 = vsub.f32 %v4930_v61, %v1732_v29  ;;  %v1885_v34 = vsub.f32 %v4921_v54, %v1732_v29 }
 0x2b2   : > { %v3879_v31 = vpop.eup %3878  ;;  %3898 = vpow2.f32 %v2029_v39  ;;  %v1886_v38 = vsub.f32 %v4932_v62, %v1732_v29  ;;  %v5813_v49 = vadd.f32 %v3871_v50, %v2249_v45  ;;  %v2253_v42 = vadd.f32 %v3875_v40, %v3873_v2 }
 0x2b3   : > { %v3881_v1 = vpop.eup %3880  ;;  %3900 = vpow2.f32 %v2031_v41  ;;  %v2035_v51 = vmul.f32 1.442695, %v1883_v30  ;;  %v2037_v55 = vmul.f32 1.442695, %v1884_v5  ;;  %v2039_v52 = vmul.f32 1.442695, %v1885_v34 }
 0x2b4   : > { %v3883_v13 = vpop.eup %3882  ;;  %3902 = vpow2.f32 %v2033_v46  ;;  %v2041_v56 = vmul.f32 1.442695, %v1886_v38  ;;  %v1737_v57 = vpop.permute.xlu1 %1736  ;;  %v2254_v16 = vadd.f32 %v3877_v33, %v2253_v42  ;;  %v6557_v5 = vld [vmem:[#allocation14_spill] sm:$0xff]  ;;  %v2540_v42 = vld [vmem:[%s4493_s30 + $0xe8] sm:$0xff] }
 0x2b5   : > { %v3885_v61 = vpop.eup %3884  ;;  %3904 = vpow2.f32 %v2035_v51  ;;  %v1887_v54 = vsub.f32 %v4938_v3, %v1737_v57  ;;  %v1888_v14 = vsub.f32 %v4944_v15, %v1737_v57  ;;  %v1889_v62 = vsub.f32 %v4941_v4, %v1737_v57  ;;  %3065 = vadd.xlane.f32.xlu1 %v5377_v43  ;;  %v6559_v51 = vld [vmem:[#allocation15_spill] sm:$0xff] }
 0x2b6   : > { %v3887_v17 = vpop.eup %3886  ;;  %3906 = vpow2.f32 %v2037_v55  ;;  %v1890_v6 = vsub.f32 %v4947_v18, %v1737_v57  ;;  %v5820_v58 = vadd.f32 %v3879_v31, %v2254_v16  ;;  %v2258_v48 = vadd.f32 %v3883_v13, %v3881_v1  ;;  %v6558_v31 = vld [vmem:[#allocation13_spill] sm:$0xff] }
 0x2b7   : > { %v3889_v21 = vpop.eup %3888  ;;  %3908 = vpow2.f32 %v2039_v52  ;;  %v2043_v10 = vmul.f32 1.442695, %v1887_v54  ;;  %v2045_v22 = vmul.f32 1.442695, %v1888_v14  ;;  %v2047_v19 = vmul.f32 1.442695, %v1889_v62 }
 0x2b8   : > { %v3891_v9 = vpop.eup %3890  ;;  %3910 = vpow2.f32 %v2041_v56  ;;  %v2049_v3 = vmul.f32 1.442695, %v1890_v6  ;;  %v1742_v15 = vpop.permute.xlu1 %1741  ;;  %v2259_v25 = vadd.f32 %v3885_v61, %v2258_v48  ;;  %v6560_v48 = vld [vmem:[#allocation16_spill] sm:$0xff] }
 0x2b9   : > { %v3893_v4 = vpop.eup %3892  ;;  %3912 = vpow2.f32 %v2043_v10  ;;  %v1891_v43 = vsub.f32 %v4965_v47, %v1742_v15  ;;  %v1892_v20 = vsub.f32 %v4972_v53, %v1742_v15  ;;  %v1893_v18 = vsub.f32 %v4963_v44, %v1742_v15  ;;  %v6556_v44 = vld [vmem:[#allocation12_spill] sm:$0xff]  ;;  %v6561_v10 = vld [vmem:[#allocation17_spill] sm:$0xff] }
 0x2ba   : > { %v3895_v50 = vpop.eup %3894  ;;  %3914 = vpow2.f32 %v2045_v22  ;;  %v1894_v8 = vsub.f32 %v6555_v26, %v1742_v15  ;;  %v2263_v2 = vadd.f32 %v3891_v9, %v3889_v21  ;;  %v5826_v7 = vadd.f32 %v3887_v17, %v2259_v25  ;;  %v2542_v9 = vld [vmem:[%s4493_s30 + $0xf8] sm:$0xff]  ;;  %v6562_v15 = vld [vmem:[#allocation18_spill] sm:$0xff] }
 0x2bb   : > { %v3897_v39 = vpop.eup %3896  ;;  %3916 = vpow2.f32 %v2047_v19  ;;  %v2051_v41 = vmul.f32 1.442695, %v1891_v43  ;;  %v2053_v40 = vmul.f32 1.442695, %v1892_v20  ;;  %v2055_v46 = vmul.f32 1.442695, %v1893_v18 }
 0x2bc   : > { %v3899_v29 = vpop.eup %3898  ;;  %3918 = vpow2.f32 %v2049_v3  ;;  %v2057_v47 = vmul.f32 1.442695, %v1894_v8  ;;  %v1747_v45 = vpop.permute.xlu0 %1746  ;;  %v2264_v53 = vadd.f32 %v3893_v4, %v2263_v2 }
 0x2bd   : > { %v3901_v33 = vpop.eup %3900  ;;  %3920 = vpow2.f32 %v2051_v41  ;;  %v1895_v30 = vsub.f32 %v6556_v44, %v1747_v45  ;;  %v1896_v34 = vsub.f32 %v6557_v5, %v1747_v45  ;;  %v1897_v38 = vsub.f32 %v6558_v31, %v1747_v45  ;;  %v6566_v44 = vld [vmem:[#allocation22_spill] sm:$0xff] }
 0x2be   : > { %v3903_v1 = vpop.eup %3902  ;;  %3922 = vpow2.f32 %v2053_v40  ;;  %v1898_v55 = vsub.f32 %v6559_v51, %v1747_v45  ;;  %v5833_v52 = vadd.f32 %v3895_v50, %v2264_v53  ;;  %v2268_v13 = vadd.f32 %v3899_v29, %v3897_v39  ;;  %v6563_v40 = vld [vmem:[#allocation19_spill] sm:$0xff]  ;;  %v6564_v29 = vld [vmem:[#allocation21_spill] sm:$0xff]  ;;  %v6565_v45 = vld [vmem:[#allocation20_spill] sm:$0xff] }
 0x2bf   : > { %v3905_v56 = vpop.eup %3904  ;;  %3924 = vpow2.f32 %v2055_v46  ;;  %v2059_v57 = vmul.f32 1.442695, %v1895_v30  ;;  %v2061_v16 = vmul.f32 1.442695, %v1896_v34  ;;  %v2063_v61 = vmul.f32 1.442695, %v1897_v38 }
 0x2c0   : > { %v3907_v54 = vpop.eup %3906  ;;  %3926 = vpow2.f32 %v2057_v47  ;;  %v2065_v14 = vmul.f32 1.442695, %v1898_v55  ;;  %2631 = vperm.xlu0 %3710, %v2540_v42   ;;  %v1752_v62 = vpop.permute.xlu1 %1751  ;;  %v2269_v17 = vadd.f32 %v3901_v33, %v2268_v13 }
 0x2c1   : > { %v3909_v6 = vpop.eup %3908  ;;  %3928 = vpow2.f32 %v2059_v57  ;;  %v1899_v21 = vsub.f32 %v6560_v48, %v1752_v62  ;;  %v1900_v22 = vsub.f32 %v6561_v10, %v1752_v62  ;;  %v1901_v19 = vsub.f32 %v5005_v63, %v1752_v62  ;;  %v6570_v48 = vld [vmem:[#allocation26_spill] sm:$0xff] }
 0x2c2   : > { %v3911_v3 = vpop.eup %3910  ;;  %3930 = vpow2.f32 %v2061_v16  ;;  %v1902_v25 = vsub.f32 %v6562_v15, %v1752_v62  ;;  %v2273_v4 = vadd.f32 %v3907_v54, %v3905_v56  ;;  %v5840_v43 = vadd.f32 %v3903_v1, %v2269_v17  ;;  %v6567_v16 = vld [vmem:[#allocation24_spill] sm:$0xff]  ;;  %v6568_v54 = vld [vmem:[#allocation25_spill] sm:$0xff]  ;;  %v6569_v62 = vld [vmem:[#allocation23_spill] sm:$0xff] }
 0x2c3   : > { %v3913_v20 = vpop.eup %3912  ;;  %3932 = vpow2.f32 %v2063_v61  ;;  %v2067_v18 = vmul.f32 1.442695, %v1899_v21  ;;  %v2069_v50 = vmul.f32 1.442695, %v1900_v22  ;;  %v2071_v26 = vmul.f32 1.442695, %v1901_v19 }
 0x2c4   : > { %v3915_v8 = vpop.eup %3914  ;;  %3934 = vpow2.f32 %v2065_v14  ;;  %v2073_v2 = vmul.f32 1.442695, %v1902_v25  ;;  %2637 = vperm.xlu0 %3710, %v2542_v9   ;;  %v1757_v39 = vpop.permute.xlu0 %1756  ;;  %v2274_v41 = vadd.f32 %v3909_v6, %v2273_v4 }
 0x2c5   : > { %v3917_v63 = vpop.eup %3916  ;;  %3936 = vpow2.f32 %v2067_v18  ;;  %v1903_v46 = vsub.f32 %v6563_v40, %v1757_v39  ;;  %v1904_v47 = vsub.f32 %v6564_v29, %v1757_v39  ;;  %v1905_v53 = vsub.f32 %v6565_v45, %v1757_v39 }
 0x2c6   : > { %v3919_v33 = vpop.eup %3918  ;;  %3938 = vpow2.f32 %v2069_v50  ;;  %v1906_v30 = vsub.f32 %v6566_v44, %v1757_v39  ;;  %v5846_v5 = vadd.f32 %v3911_v3, %v2274_v41  ;;  %v2278_v34 = vadd.f32 %v3915_v8, %v3913_v20  ;;  %v6573_v41 = vld [vmem:[#allocation28_spill] sm:$0xff] }
 0x2c7   : > { %v3921_v31 = vpop.eup %3920  ;;  %3940 = vpow2.f32 %v2071_v26  ;;  %v2075_v38 = vmul.f32 1.442695, %v1903_v46  ;;  %v2077_v42 = vmul.f32 1.442695, %v1904_v47  ;;  %v2079_v1 = vmul.f32 1.442695, %v1905_v53 }
 0x2c8   : > { %v3923_v51 = vpop.eup %3922  ;;  %3942 = vpow2.f32 %v2073_v2  ;;  %v2081_v55 = vmul.f32 1.442695, %v1906_v30  ;;  %1856 = vperm.xlu0 %3710, %v5776_v37   ;;  %v1762_v13 = vpop.permute.xlu1 %1761  ;;  %v2279_v56 = vadd.f32 %v3917_v63, %v2278_v34  ;;  %v6571_v26 = vld [vmem:[#allocation27_spill] sm:$0xff]  ;;  %v6572_v2 = vld [vmem:[#allocation29_spill] sm:$0xff]  ;;  %v6574_v46 = vld [vmem:[#allocation30_spill] sm:$0xff] }
 0x2c9   : > { %v3925_v57 = vpop.eup %3924  ;;  %3944 = vpow2.f32 %v2075_v38  ;;  %v1907_v61 = vsub.f32 %v6567_v16, %v1762_v13  ;;  %v1908_v14 = vsub.f32 %v6568_v54, %v1762_v13  ;;  %v1909_v17 = vsub.f32 %v6569_v62, %v1762_v13  ;;  %v6578_v54 = vld [vmem:[#allocation34_spill] sm:$0xff] }
 0x2ca   : > { %v3927_v6 = vpop.eup %3926  ;;  %3946 = vpow2.f32 %v2077_v42  ;;  %v1910_v21 = vsub.f32 %v6570_v48, %v1762_v13  ;;  %v2283_v10 = vadd.f32 %v3923_v51, %v3921_v31  ;;  %v5853_v22 = vadd.f32 %v3919_v33, %v2279_v56  ;;  %v6575_v51 = vld [vmem:[#allocation32_spill] sm:$0xff]  ;;  %v6576_v13 = vld [vmem:[#allocation33_spill] sm:$0xff] }
 0x2cb   : > { %v3929_v19 = vpop.eup %3928  ;;  %3948 = vpow2.f32 %v2079_v1  ;;  %v2083_v9 = vmul.f32 1.442695, %v1907_v61  ;;  %v2085_v3 = vmul.f32 1.442695, %v1908_v14  ;;  %v2087_v15 = vmul.f32 1.442695, %v1909_v17 }
 0x2cc   : > { %v3931_v25 = vpop.eup %3930  ;;  %3950 = vpow2.f32 %v2081_v55  ;;  %v2089_v4 = vmul.f32 1.442695, %v1910_v21  ;;  %v1767_v20 = vpop.permute.xlu0 %1766  ;;  %v2284_v18 = vadd.f32 %v3925_v57, %v2283_v10  ;;  %v6577_v57 = vld [vmem:[#allocation31_spill] sm:$0xff] }
 0x2cd   : > { %v3933_v50 = vpop.eup %3932  ;;  %3952 = vpow2.f32 %v2083_v9  ;;  %v1911_v8 = vsub.f32 %v6571_v26, %v1767_v20  ;;  %v1912_v39 = vsub.f32 %v6572_v2, %v1767_v20  ;;  %v1913_v63 = vsub.f32 %v6573_v41, %v1767_v20  ;;  %v6581_v26 = vld [vmem:[#allocation36_spill] sm:$0xff] }
 0x2ce   : > { %v3935_v40 = vpop.eup %3934  ;;  %3954 = vpow2.f32 %v2085_v3  ;;  %v1914_v29 = vsub.f32 %v6574_v46, %v1767_v20  ;;  %v5859_v47 = vadd.f32 %v3927_v6, %v2284_v18  ;;  %v2288_v45 = vadd.f32 %v3931_v25, %v3929_v19  ;;  %v6580_v18 = vld [vmem:[#allocation37_spill] sm:$0xff] }
 0x2cf   : > { %v3937_v53 = vpop.eup %3936  ;;  %3956 = vpow2.f32 %v2087_v15  ;;  %v2091_v33 = vmul.f32 1.442695, %v1911_v8  ;;  %v2093_v44 = vmul.f32 1.442695, %v1912_v39  ;;  %v2095_v30 = vmul.f32 1.442695, %v1913_v63 }
 0x2d0   : > { %v3939_v34 = vpop.eup %3938  ;;  %3958 = vpow2.f32 %v2089_v4  ;;  %v2097_v31 = vmul.f32 1.442695, %v1914_v29  ;;  %v1772_v38 = vpop.permute.xlu1 %1771  ;;  %v2289_v42 = vadd.f32 %v3933_v50, %v2288_v45  ;;  %v6579_v4 = vld [vmem:[#allocation35_spill] sm:$0xff]  ;;  %v6582_v39 = vld [vmem:[#allocation38_spill] sm:$0xff] }
 0x2d1   : > { %v3941_v1 = vpop.eup %3940  ;;  %3960 = vpow2.f32 %v2091_v33  ;;  %v1915_v55 = vsub.f32 %v6575_v51, %v1772_v38  ;;  %v1916_v56 = vsub.f32 %v6576_v13, %v1772_v38  ;;  %v1917_v16 = vsub.f32 %v6577_v57, %v1772_v38  ;;  %v6586_v57 = vld [vmem:[#allocation42_spill] sm:$0xff] }
 0x2d2   : > { %v3943_v61 = vpop.eup %3942  ;;  %3962 = vpow2.f32 %v2093_v44  ;;  %v1918_v14 = vsub.f32 %v6578_v54, %v1772_v38  ;;  %v2293_v62 = vadd.f32 %v3939_v34, %v3937_v53  ;;  %v5865_v17 = vadd.f32 %v3935_v40, %v2289_v42  ;;  %v6583_v38 = vld [vmem:[#allocation40_spill] sm:$0xff] }
 0x2d3   : > { %v3945_v6 = vpop.eup %3944  ;;  %3964 = vpow2.f32 %v2095_v30  ;;  %v2099_v48 = vmul.f32 1.442695, %v1915_v55  ;;  %v2101_v21 = vmul.f32 1.442695, %v1916_v56  ;;  %v2103_v10 = vmul.f32 1.442695, %v1917_v16 }
 0x2d4   : > { %v3947_v19 = vpop.eup %3946  ;;  %3966 = vpow2.f32 %v2097_v31  ;;  %v2105_v9 = vmul.f32 1.442695, %v1918_v14  ;;  %v1777_v3 = vpop.permute.xlu0 %1776  ;;  %v2294_v15 = vadd.f32 %v3941_v1, %v2293_v62  ;;  %v6584_v1 = vld [vmem:[#allocation41_spill] sm:$0xff]  ;;  %v6585_v55 = vld [vmem:[#allocation39_spill] sm:$0xff] }
 0x2d5   : > { %v3949_v25 = vpop.eup %3948  ;;  %3968 = vpow2.f32 %v2099_v48  ;;  %v1919_v20 = vsub.f32 %v6579_v4, %v1777_v3  ;;  %v1920_v50 = vsub.f32 %v6580_v18, %v1777_v3  ;;  %v1921_v8 = vsub.f32 %v6581_v26, %v1777_v3  ;;  %v6588_v4 = vld [vmem:[#allocation45_spill] sm:$0xff]  ;;  %v6589_v18 = vld [vmem:[#allocation44_spill] sm:$0xff] }
 0x2d6   : > { %v3951_v2 = vpop.eup %3950  ;;  %3970 = vpow2.f32 %v2101_v21  ;;  %v1922_v41 = vsub.f32 %v6582_v39, %v1777_v3  ;;  %v5871_v63 = vadd.f32 %v3943_v61, %v2294_v15  ;;  %v2298_v40 = vadd.f32 %v3947_v19, %v3945_v6  ;;  %v6587_v15 = vld [vmem:[#allocation43_spill] sm:$0xff] }
 0x2d7   : > { %v3953_v46 = vpop.eup %3952  ;;  %3972 = vpow2.f32 %v2103_v10  ;;  %v2107_v29 = vmul.f32 1.442695, %v1919_v20  ;;  %v2109_v45 = vmul.f32 1.442695, %v1920_v50  ;;  %v2111_v53 = vmul.f32 1.442695, %v1921_v8 }
 0x2d8   : > { %v3955_v33 = vpop.eup %3954  ;;  %3974 = vpow2.f32 %v2105_v9  ;;  %v2113_v44 = vmul.f32 1.442695, %v1922_v41  ;;  %v1782_v30 = vpop.permute.xlu1 %1781  ;;  %v2299_v34 = vadd.f32 %v3949_v25, %v2298_v40  ;;  %v6590_v8 = vld [vmem:[#allocation46_spill] sm:$0xff] }
 0x2d9   : > { %v3957_v31 = vpop.eup %3956  ;;  %3976 = vpow2.f32 %v2107_v29  ;;  %v1923_v42 = vsub.f32 %v6583_v38, %v1782_v30  ;;  %v1924_v51 = vsub.f32 %v6584_v1, %v1782_v30  ;;  %v1925_v13 = vsub.f32 %v6585_v55, %v1782_v30 }
 0x2da   : > { %v3959_v56 = vpop.eup %3958  ;;  %3978 = vpow2.f32 %v2109_v45  ;;  %v1926_v16 = vsub.f32 %v6586_v57, %v1782_v30  ;;  %v2303_v61 = vadd.f32 %v3955_v33, %v3953_v46  ;;  %v5877_v54 = vadd.f32 %v3951_v2, %v2299_v34 }
 0x2db   : > { %v3961_v14 = vpop.eup %3960  ;;  %3980 = vpow2.f32 %v2111_v53  ;;  %v2115_v62 = vmul.f32 1.442695, %v1923_v42  ;;  %v2117_v6 = vmul.f32 1.442695, %v1924_v51  ;;  %v2119_v48 = vmul.f32 1.442695, %v1925_v13 }
 0x2dc   : > { %v3963_v21 = vpop.eup %3962  ;;  %3982 = vpow2.f32 %v2113_v44  ;;  %v2121_v10 = vmul.f32 1.442695, %v1926_v16  ;;  %v1787_v19 = vpop.permute.xlu0 %1786  ;;  %v2304_v9 = vadd.f32 %v3957_v31, %v2303_v61  ;;  %v6591_v31 = vld [vmem:[#allocation48_spill] sm:$0xff]  ;;  %v6592_v42 = vld [vmem:[#allocation49_spill] sm:$0xff]  ;;  %v6593_v51 = vld [vmem:[#allocation47_spill] sm:$0xff] }
 0x2dd   : > { %v3965_v3 = vpop.eup %3964  ;;  %3984 = vpow2.f32 %v2115_v62  ;;  %v1927_v25 = vsub.f32 %v6587_v15, %v1787_v19  ;;  %v1928_v20 = vsub.f32 %v6588_v4, %v1787_v19  ;;  %v1929_v50 = vsub.f32 %v6589_v18, %v1787_v19  ;;  %v6595_v15 = vld [vmem:[#allocation51_spill] sm:$0xff]  ;;  %v6596_v4 = vld [vmem:[#allocation53_spill] sm:$0xff]  ;;  %v6597_v18 = vld [vmem:[#allocation52_spill] sm:$0xff] }
 0x2de   : > { %v3967_v26 = vpop.eup %3966  ;;  %3986 = vpow2.f32 %v2117_v6  ;;  %v1930_v2 = vsub.f32 %v6590_v8, %v1787_v19  ;;  %v5883_v39 = vadd.f32 %v3959_v56, %v2304_v9  ;;  %v2308_v41 = vadd.f32 %v3963_v21, %v3961_v14  ;;  %v6594_v56 = vld [vmem:[#allocation50_spill] sm:$0xff] }
 0x2df   : > { %v3969_v40 = vpop.eup %3968  ;;  %3988 = vpow2.f32 %v2119_v48  ;;  %v2123_v46 = vmul.f32 1.442695, %v1927_v25  ;;  %v2125_v29 = vmul.f32 1.442695, %v1928_v20  ;;  %v2127_v45 = vmul.f32 1.442695, %v1929_v50 }
 0x2e0   : > { %v3971_v53 = vpop.eup %3970  ;;  %3990 = vpow2.f32 %v2121_v10  ;;  %v2129_v33 = vmul.f32 1.442695, %v1930_v2  ;;  %v1792_v44 = vpop.permute.xlu1 %1791  ;;  %v2309_v30 = vadd.f32 %v3965_v3, %v2308_v41  ;;  %v6598_v8 = vld [vmem:[#allocation54_spill] sm:$0xff] }
 0x2e1   : > { %v3973_v34 = vpop.eup %3972  ;;  %3992 = vpow2.f32 %v2123_v46  ;;  %v1931_v38 = vsub.f32 %v6591_v31, %v1792_v44  ;;  %v1932_v1 = vsub.f32 %v6592_v42, %v1792_v44  ;;  %v1933_v55 = vsub.f32 %v6593_v51, %v1792_v44 }
 0x2e2   : > { %v3975_v13 = vpop.eup %3974  ;;  %3994 = vpow2.f32 %v2125_v29  ;;  %v1934_v57 = vsub.f32 %v6594_v56, %v1792_v44  ;;  %v2313_v16 = vadd.f32 %v3971_v53, %v3969_v40  ;;  %v5889_v61 = vadd.f32 %v3967_v26, %v2309_v30 }
 0x2e3   : > { %v3977_v14 = vpop.eup %3976  ;;  %3996 = vpow2.f32 %v2127_v45  ;;  %v2131_v62 = vmul.f32 1.442695, %v1931_v38  ;;  %v2133_v6 = vmul.f32 1.442695, %v1932_v1  ;;  %v2135_v48 = vmul.f32 1.442695, %v1933_v55 }
 0x2e4   : > { %v3979_v21 = vpop.eup %3978  ;;  %3998 = vpow2.f32 %v2129_v33  ;;  %v2137_v10 = vmul.f32 1.442695, %v1934_v57  ;;  %v1797_v19 = vpop.permute.xlu0 %1796  ;;  %v2314_v9 = vadd.f32 %v3973_v34, %v2313_v16  ;;  %v6599_v38 = vld [vmem:[#allocation56_spill] sm:$0xff]  ;;  %v6600_v1 = vld [vmem:[#allocation57_spill] sm:$0xff]  ;;  %v6601_v55 = vld [vmem:[#allocation55_spill] sm:$0xff] }
 0x2e5   : > { %v3981_v3 = vpop.eup %3980  ;;  %4000 = vpow2.f32 %v2131_v62  ;;  %v1935_v25 = vsub.f32 %v6595_v15, %v1797_v19  ;;  %v1936_v20 = vsub.f32 %v6596_v4, %v1797_v19  ;;  %v1937_v50 = vsub.f32 %v6597_v18, %v1797_v19  ;;  %v6602_v57 = vld [vmem:[#allocation58_spill] sm:$0xff] }
 0x2e6   : > { %v3983_v26 = vpop.eup %3982  ;;  %4002 = vpow2.f32 %v2133_v6  ;;  %v1938_v2 = vsub.f32 %v6598_v8, %v1797_v19  ;;  %v5895_v41 = vadd.f32 %v3975_v13, %v2314_v9  ;;  %v2318_v40 = vadd.f32 %v3979_v21, %v3977_v14 }
 0x2e7   : > { %v3985_v46 = vpop.eup %3984  ;;  %4004 = vpow2.f32 %v2135_v48  ;;  %v2139_v29 = vmul.f32 1.442695, %v1935_v25  ;;  %v2141_v45 = vmul.f32 1.442695, %v1936_v20  ;;  %v2143_v53 = vmul.f32 1.442695, %v1937_v50  ;;  %2251 = vadd.xlane.f32.xlu0 %v5813_v49 }
 0x2e8   : > { %v3987_v33 = vpop.eup %3986  ;;  %4006 = vpow2.f32 %v2137_v10  ;;  %v2145_v44 = vmul.f32 1.442695, %v1938_v2  ;;  %v1802_v30 = vpop.permute.xlu1 %1801  ;;  %v2319_v34 = vadd.f32 %v3981_v3, %v2318_v40  ;;  %v6603_v25 = vld [vmem:[#allocation59_spill] sm:$0xff]  ;;  %v6604_v20 = vld [vmem:[#allocation61_spill] sm:$0xff]  ;;  %v6605_v50 = vld [vmem:[#allocation60_spill] sm:$0xff] }
 0x2e9   : > { %v3989_v31 = vpop.eup %3988  ;;  %4008 = vpow2.f32 %v2139_v29  ;;  %v1939_v42 = vsub.f32 %v6599_v38, %v1802_v30  ;;  %v1940_v51 = vsub.f32 %v6600_v1, %v1802_v30  ;;  %v1941_v13 = vsub.f32 %v6601_v55, %v1802_v30  ;;  %v6606_v2 = vld [vmem:[#allocation62_spill] sm:$0xff] }
 0x2ea   : > { %v3991_v56 = vpop.eup %3990  ;;  %4010 = vpow2.f32 %v2141_v45  ;;  %v1942_v16 = vsub.f32 %v6602_v57, %v1802_v30  ;;  %v2323_v14 = vadd.f32 %v3987_v33, %v3985_v46  ;;  %v5902_v62 = vadd.f32 %v3983_v26, %v2319_v34 }
 0x2eb   : > { %v3993_v49 = vpop.eup %3992  ;;  %4012 = vpow2.f32 %v2143_v53  ;;  %v2147_v6 = vmul.f32 1.442695, %v1939_v42  ;;  %v2149_v48 = vmul.f32 1.442695, %v1940_v51  ;;  %v2151_v21 = vmul.f32 1.442695, %v1941_v13  ;;  %2256 = vadd.xlane.f32.xlu0 %v5820_v58 }
 0x2ec   : > { %v3995_v10 = vpop.eup %3994  ;;  %4014 = vpow2.f32 %v2145_v44  ;;  %v2153_v19 = vmul.f32 1.442695, %v1942_v16  ;;  %v1807_v9 = vpop.permute.xlu0 %1806  ;;  %v2324_v3 = vadd.f32 %v3989_v31, %v2323_v14  ;;  %v6607_v42 = vld [vmem:[#allocation64_spill] sm:$0xff]  ;;  %v6608_v51 = vld [vmem:[#allocation65_spill] sm:$0xff]  ;;  %v6609_v13 = vld [vmem:[#allocation63_spill] sm:$0xff] }
 0x2ed   : > { %v3997_v15 = vpop.eup %3996  ;;  %4016 = vpow2.f32 %v2147_v6  ;;  %v1943_v4 = vsub.f32 %v6603_v25, %v1807_v9  ;;  %v1944_v18 = vsub.f32 %v6604_v20, %v1807_v9  ;;  %v1945_v26 = vsub.f32 %v6605_v50, %v1807_v9  ;;  %v6610_v16 = vld [vmem:[#allocation66_spill] sm:$0xff] }
 0x2ee   : > { %v3999_v8 = vpop.eup %3998  ;;  %4018 = vpow2.f32 %v2149_v48  ;;  %v1946_v40 = vsub.f32 %v6606_v2, %v1807_v9  ;;  %v5909_v46 = vadd.f32 %v3991_v56, %v2324_v3  ;;  %v2328_v58 = vadd.f32 %v3995_v10, %v3993_v49 }
 0x2ef   : > { %v4001_v29 = vpop.eup %4000  ;;  %4020 = vpow2.f32 %v2151_v21  ;;  %v2155_v45 = vmul.f32 1.442695, %v1943_v4  ;;  %v2157_v53 = vmul.f32 1.442695, %v1944_v18  ;;  %v2159_v33 = vmul.f32 1.442695, %v1945_v26  ;;  %2266 = vadd.xlane.f32.xlu0 %v5833_v52 }
 0x2f0   : > { %v4003_v44 = vpop.eup %4002  ;;  %4022 = vpow2.f32 %v2153_v19  ;;  %v2161_v30 = vmul.f32 1.442695, %v1946_v40  ;;  %v1812_v34 = vpop.permute.xlu1 %1811  ;;  %v2329_v31 = vadd.f32 %v3997_v15, %v2328_v58  ;;  %v6611_v4 = vld [vmem:[#allocation67_spill] sm:$0xff]  ;;  %v6612_v18 = vld [vmem:[#allocation69_spill] sm:$0xff]  ;;  %v6613_v26 = vld [vmem:[#allocation68_spill] sm:$0xff] }
 0x2f1   : > { %v4005_v38 = vpop.eup %4004  ;;  %4024 = vpow2.f32 %v2155_v45  ;;  %v1947_v1 = vsub.f32 %v6607_v42, %v1812_v34  ;;  %v1948_v55 = vsub.f32 %v6608_v51, %v1812_v34  ;;  %v1949_v56 = vsub.f32 %v6609_v13, %v1812_v34  ;;  %v6614_v40 = vld [vmem:[#allocation70_spill] sm:$0xff] }
 0x2f2   : > { %v4007_v57 = vpop.eup %4006  ;;  %4026 = vpow2.f32 %v2157_v53  ;;  %v1950_v14 = vsub.f32 %v6610_v16, %v1812_v34  ;;  %v2333_v49 = vadd.f32 %v4003_v44, %v4001_v29  ;;  %v5916_v6 = vadd.f32 %v3999_v8, %v2329_v31 }
 0x2f3   : > { %v4009_v52 = vpop.eup %4008  ;;  %4028 = vpow2.f32 %v2159_v33  ;;  %v2163_v48 = vmul.f32 1.442695, %v1947_v1  ;;  %v2165_v21 = vmul.f32 1.442695, %v1948_v55  ;;  %v2167_v10 = vmul.f32 1.442695, %v1949_v56  ;;  %2276 = vadd.xlane.f32.xlu0 %v5846_v5 }
 0x2f4   : > { %v4011_v19 = vpop.eup %4010  ;;  %4030 = vpow2.f32 %v2161_v30  ;;  %v2169_v9 = vmul.f32 1.442695, %v1950_v14  ;;  %v1817_v3 = vpop.permute.xlu0 %1816  ;;  %v2334_v15 = vadd.f32 %v4005_v38, %v2333_v49  ;;  %v6615_v1 = vld [vmem:[#allocation72_spill] sm:$0xff]  ;;  %v6616_v55 = vld [vmem:[#allocation73_spill] sm:$0xff]  ;;  %v6617_v56 = vld [vmem:[#allocation71_spill] sm:$0xff] }
 0x2f5   : > { %v4013_v25 = vpop.eup %4012  ;;  %4032 = vpow2.f32 %v2163_v48  ;;  %v1951_v20 = vsub.f32 %v6611_v4, %v1817_v3  ;;  %v1952_v50 = vsub.f32 %v6612_v18, %v1817_v3  ;;  %v1953_v8 = vsub.f32 %v6613_v26, %v1817_v3  ;;  %v6618_v14 = vld [vmem:[#allocation74_spill] sm:$0xff] }
 0x2f6   : > { %v4015_v2 = vpop.eup %4014  ;;  %4034 = vpow2.f32 %v2165_v21  ;;  %v1954_v58 = vsub.f32 %v6614_v40, %v1817_v3  ;;  %v5923_v29 = vadd.f32 %v4007_v57, %v2334_v15  ;;  %v2338_v5 = vadd.f32 %v4011_v19, %v4009_v52 }
 0x2f7   : > { %v4017_v45 = vpop.eup %4016  ;;  %4036 = vpow2.f32 %v2167_v10  ;;  %v2171_v53 = vmul.f32 1.442695, %v1951_v20  ;;  %v2173_v33 = vmul.f32 1.442695, %v1952_v50  ;;  %v2175_v44 = vmul.f32 1.442695, %v1953_v8  ;;  %2286 = vadd.xlane.f32.xlu0 %v5859_v47 }
 0x2f8   : > { %v4019_v30 = vpop.eup %4018  ;;  %4038 = vpow2.f32 %v2169_v9  ;;  %v2177_v34 = vmul.f32 1.442695, %v1954_v58  ;;  %v1822_v31 = vpop.permute.xlu1 %1821  ;;  %v2339_v38 = vadd.f32 %v4013_v25, %v2338_v5  ;;  %v6619_v20 = vld [vmem:[#allocation75_spill] sm:$0xff]  ;;  %v6620_v50 = vld [vmem:[#allocation77_spill] sm:$0xff]  ;;  %v6621_v8 = vld [vmem:[#allocation76_spill] sm:$0xff] }
 0x2f9   : > { %v4021_v42 = vpop.eup %4020  ;;  %4040 = vpow2.f32 %v2171_v53  ;;  %v1955_v51 = vsub.f32 %v6615_v1, %v1822_v31  ;;  %v1956_v13 = vsub.f32 %v6616_v55, %v1822_v31  ;;  %v1957_v57 = vsub.f32 %v6617_v56, %v1822_v31  ;;  %v6622_v58 = vld [vmem:[#allocation78_spill] sm:$0xff] }
 0x2fa   : > { %v4023_v16 = vpop.eup %4022  ;;  %4042 = vpow2.f32 %v2173_v33  ;;  %v1958_v49 = vsub.f32 %v6618_v14, %v1822_v31  ;;  %v2343_v52 = vadd.f32 %v4019_v30, %v4017_v45  ;;  %v5930_v48 = vadd.f32 %v4015_v2, %v2339_v38 }
 0x2fb   : > { %v4025_v47 = vpop.eup %4024  ;;  %4044 = vpow2.f32 %v2175_v44  ;;  %v2179_v21 = vmul.f32 1.442695, %v1955_v51  ;;  %v2181_v10 = vmul.f32 1.442695, %v1956_v13  ;;  %v2183_v19 = vmul.f32 1.442695, %v1957_v57  ;;  %2296 = vadd.xlane.f32.xlu0 %v5871_v63 }
 0x2fc   : > { %v4027_v9 = vpop.eup %4026  ;;  %4046 = vpow2.f32 %v2177_v34  ;;  %v2185_v3 = vmul.f32 1.442695, %v1958_v49  ;;  %v1827_v15 = vpop.permute.xlu0 %1826  ;;  %v2344_v25 = vadd.f32 %v4021_v42, %v2343_v52  ;;  %v6623_v51 = vld [vmem:[#allocation79_spill] sm:$0xff]  ;;  %v6624_v13 = vld [vmem:[#allocation80_spill] sm:$0xff] }
 0x2fd   : > { %v4029_v4 = vpop.eup %4028  ;;  %4048 = vpow2.f32 %v2179_v21  ;;  %v1959_v18 = vsub.f32 %v6619_v20, %v1827_v15  ;;  %v1960_v26 = vsub.f32 %v6620_v50, %v1827_v15  ;;  %v1961_v2 = vsub.f32 %v6621_v8, %v1827_v15  ;;  %v6628_v8 = vld [vmem:[#allocation84_spill] sm:$0xff] }
 0x2fe   : > { %v4031_v40 = vpop.eup %4030  ;;  %4050 = vpow2.f32 %v2181_v10  ;;  %v1962_v5 = vsub.f32 %v6622_v58, %v1827_v15  ;;  %v5937_v45 = vadd.f32 %v4023_v16, %v2344_v25  ;;  %v2348_v63 = vadd.f32 %v4027_v9, %v4025_v47  ;;  %v6625_v25 = vld [vmem:[#allocation81_spill] sm:$0xff] }
 0x2ff   : > { %v4033_v53 = vpop.eup %4032  ;;  %4052 = vpow2.f32 %v2183_v19  ;;  %v2187_v33 = vmul.f32 1.442695, %v1959_v18  ;;  %v2189_v44 = vmul.f32 1.442695, %v1960_v26  ;;  %v2191_v30 = vmul.f32 1.442695, %v1961_v2  ;;  %2306 = vadd.xlane.f32.xlu0 %v5883_v39 }
 0x300   : > { %v4035_v34 = vpop.eup %4034  ;;  %4054 = vpow2.f32 %v2185_v3  ;;  %v2193_v31 = vmul.f32 1.442695, %v1962_v5  ;;  %v1832_v38 = vpop.permute.xlu1 %1831  ;;  %v2349_v42 = vadd.f32 %v4029_v4, %v2348_v63  ;;  %v6627_v18 = vld [vmem:[#allocation82_spill] sm:$0xff] }
 0x301   : > { %v4037_v1 = vpop.eup %4036  ;;  %4056 = vpow2.f32 %v2187_v33  ;;  %v1963_v55 = vsub.f32 %v6623_v51, %v1832_v38  ;;  %v1964_v56 = vsub.f32 %v6624_v13, %v1832_v38  ;;  %v1965_v57 = vsub.f32 %v5324_v24, %v1832_v38 }
 0x302   : > { %v4039_v16 = vpop.eup %4038  ;;  %4058 = vpow2.f32 %v2189_v44  ;;  %v1966_v14 = vsub.f32 %v5335_v32, %v1832_v38  ;;  %v2353_v49 = vadd.f32 %v4035_v34, %v4033_v53  ;;  %v5944_v52 = vadd.f32 %v4031_v40, %v2349_v42  ;;  %v6626_v32 = vld [vmem:[#allocation83_spill] sm:$0xff]  ;;  %v6629_v38 = vld [vmem:[#allocation85_spill] sm:$0xff] }
 0x303   : > { %v4041_v39 = vpop.eup %4040  ;;  %4060 = vpow2.f32 %v2191_v30  ;;  %v2195_v47 = vmul.f32 1.442695, %v1963_v55  ;;  %v2197_v21 = vmul.f32 1.442695, %v1964_v56  ;;  %v2199_v10 = vmul.f32 1.442695, %v1965_v57  ;;  %2316 = vadd.xlane.f32.xlu0 %v5895_v41 }
 0x304   : > { %v4043_v19 = vpop.eup %4042  ;;  %4062 = vpow2.f32 %v2193_v31  ;;  %v2201_v9 = vmul.f32 1.442695, %v1966_v14  ;;  %v1837_v3 = vpop.permute.xlu0 %1836  ;;  %v2354_v15 = vadd.f32 %v4037_v1, %v2353_v49  ;;  %v6630_v1 = vld [vmem:[#allocation86_spill] sm:$0xff] }
 0x305   : > { %v4045_v24 = vpop.eup %4044  ;;  %4064 = vpow2.f32 %v2195_v47  ;;  %v1967_v4 = vsub.f32 %v6625_v25, %v1837_v3  ;;  %v1968_v20 = vsub.f32 %v6626_v32, %v1837_v3  ;;  %v1969_v50 = vsub.f32 %v6627_v18, %v1837_v3 }
 0x306   : > { %v4047_v26 = vpop.eup %4046  ;;  %4066 = vpow2.f32 %v2197_v21  ;;  %v1970_v2 = vsub.f32 %v6628_v8, %v1837_v3  ;;  %v5951_v40 = vadd.f32 %v4039_v16, %v2354_v15  ;;  %v2358_v41 = vadd.f32 %v4043_v19, %v4041_v39  ;;  %v6631_v19 = vld [vmem:[#allocation87_spill] sm:$0xff]  ;;  %v6632_v15 = vld [vmem:[#allocation88_spill] sm:$0xff] }
 0x307   : > { %v4049_v58 = vpop.eup %4048  ;;  %4068 = vpow2.f32 %v2199_v10  ;;  %v2203_v5 = vmul.f32 1.442695, %v1967_v4  ;;  %v2205_v63 = vmul.f32 1.442695, %v1968_v20  ;;  %v2207_v53 = vmul.f32 1.442695, %v1969_v50  ;;  %2326 = vadd.xlane.f32.xlu0 %v5909_v46 }
 0x308   : > { %v4051_v33 = vpop.eup %4050  ;;  %4070 = vpow2.f32 %v2201_v9  ;;  %v2209_v44 = vmul.f32 1.442695, %v1970_v2  ;;  %v1842_v30 = vpop.permute.xlu1 %1841  ;;  %v2359_v34 = vadd.f32 %v4045_v24, %v2358_v41 }
 0x309   : > { %v4053_v31 = vpop.eup %4052  ;;  %4072 = vpow2.f32 %v2203_v5  ;;  %v1971_v42 = vsub.f32 %v6629_v38, %v1842_v30  ;;  %v1972_v51 = vsub.f32 %v6630_v1, %v1842_v30  ;;  %v1973_v55 = vsub.f32 %v5365_v36, %v1842_v30 }
 0x30a   : > { %v4055_v13 = vpop.eup %4054  ;;  %4074 = vpow2.f32 %v2205_v63  ;;  %v1974_v56 = vsub.f32 %v5375_v27, %v1842_v30  ;;  %v1847_v57 = vpop.permute.xlu0 %1846  ;;  %v2363_v16 = vadd.f32 %v4051_v33, %v4049_v58  ;;  %v5958_v46 = vadd.f32 %v4047_v26, %v2359_v34  ;;  %v6633_v63 = vld [vmem:[#allocation89_spill] sm:$0xff]  ;;  %v6634_v33 = vld [vmem:[#allocation90_spill] sm:$0xff] }
 0x30b   : > { %v4057_v14 = vpop.eup %4056  ;;  %4076 = vpow2.f32 %v2207_v53  ;;  %v2211_v49 = vmul.f32 1.442695, %v1971_v42  ;;  %v2213_v39 = vmul.f32 1.442695, %v1972_v51  ;;  %v2215_v47 = vmul.f32 1.442695, %v1973_v55  ;;  %2336 = vadd.xlane.f32.xlu0 %v5923_v29 }
 0x30c   : > { %v4059_v21 = vpop.eup %4058  ;;  %4078 = vpow2.f32 %v2209_v44  ;;  %v2217_v10 = vmul.f32 1.442695, %v1974_v56  ;;  %v1975_v36 = vsub.f32 %v5382_v23, %v1847_v57  ;;  %v1976_v9 = vsub.f32 %v6631_v19, %v1847_v57 }
 0x30d   : > { %v4061_v3 = vpop.eup %4060  ;;  %4080 = vpow2.f32 %v2211_v49  ;;  %v1977_v27 = vsub.f32 %v5384_v35, %v1847_v57  ;;  %v1978_v24 = vsub.f32 %v6632_v15, %v1847_v57  ;;  %v2364_v25 = vadd.f32 %v4053_v31, %v2363_v16 }
 0x30e   : > { %v4063_v4 = vpop.eup %4062  ;;  %4082 = vpow2.f32 %v2213_v39  ;;  %v2219_v32 = vmul.f32 1.442695, %v1975_v36  ;;  %v2221_v20 = vmul.f32 1.442695, %v1976_v9  ;;  %v2368_v18 = vadd.f32 %v4059_v21, %v4057_v14 }
 0x30f   : > { %v4065_v29 = vpop.eup %4064  ;;  %4084 = vpow2.f32 %v2215_v47  ;;  %v2223_v50 = vmul.f32 1.442695, %v1977_v27  ;;  %2346 = vadd.xlane.f32.xlu0 %v5937_v45  ;;  %v2365_v26 = vadd.f32 %v4055_v13, %v2364_v25  ;;  %v2225_v2 = vmul.f32 1.442695, %v1978_v24 }
 0x310   : > { %v4067_v8 = vpop.eup %4066  ;;  %4086 = vpow2.f32 %v2217_v10  ;;  %v1852_v41 = vpop.permute.xlu1 %1851  ;;  %v2369_v58 = vadd.f32 %v4061_v3, %v2368_v18 }
 0x311   : > { %v4069_v5 = vpop.eup %4068  ;;  %4088 = vpow2.f32 %v2219_v32  ;;  %v1979_v53 = vsub.f32 %v6633_v63, %v1852_v41  ;;  %v1980_v44 = vsub.f32 %v6634_v33, %v1852_v41  ;;  %v1981_v30 = vsub.f32 %v5401_v60, %v1852_v41 }
 0x312   : > { %v4071_v34 = vpop.eup %4070  ;;  %4090 = vpow2.f32 %v2221_v20  ;;  %v1982_v31 = vsub.f32 %v5411_v28, %v1852_v41  ;;  %v2373_v38 = vadd.f32 %v4067_v8, %v4065_v29  ;;  %v5970_v45 = vadd.f32 %v4063_v4, %v2369_v58 }
 0x313   : > { %v4073_v42 = vpop.eup %4072  ;;  %4092 = vpow2.f32 %v2223_v50  ;;  %v2227_v1 = vmul.f32 1.442695, %v1979_v53  ;;  %v2229_v51 = vmul.f32 1.442695, %v1980_v44  ;;  %2356 = vadd.xlane.f32.xlu0 %v5951_v40  ;;  %v2231_v13 = vmul.f32 1.442695, %v1981_v30 }
 0x314   : > { %v4075_v55 = vpop.eup %4074  ;;  %4094 = vpow2.f32 %v2225_v2  ;;  %v2374_v56 = vadd.f32 %v4069_v5, %v2373_v38  ;;  %v2233_v14 = vmul.f32 1.442695, %v1982_v31  ;;  %v2795_v5 = vld [vmem:[#allocation4 + $0xe0] sm:$0xff]  ;;  %v6636_v30 = vld [vmem:[#allocation10_spill] sm:$0xff]  ;;  %v6637_v31 = vld [vmem:[#allocation9_spill] sm:$0xff] }
 0x315   : > { %v4077_v57 = vpop.eup %4076  ;;  %4096 = vpow2.f32 %v2227_v1  ;;  %v2378_v60 = vadd.f32 %v4075_v55, %v4073_v42  ;;  %v6635_v44 = vld [vmem:[#allocation8_spill] sm:$0xff] }
 0x316   : > { %v4079_v16 = vpop.eup %4078  ;;  %4098 = vpow2.f32 %v2229_v51  ;;  %v2375_v28 = vadd.f32 %v4071_v34, %v2374_v56  ;;  %v2794_v34 = vld [vmem:[#allocation4 + $0xd8] sm:$0xff] }
 0x317   : > { %v4081_v49 = vpop.eup %4080  ;;  %2366 = vadd.xlane.f32.xlu0 %v2365_v26  ;;  %v2379_v39 = vadd.f32 %v4077_v57, %v2378_v60  ;;  %4100 = vpow2.f32 %v2231_v13  ;;  %v6638_v56 = vld [vmem:[#allocation91_spill] sm:$0xff]  ;;  %v6639_v57 = vld [vmem:[#allocation92_spill] sm:$0xff] }
 0x318   : > { %v4083_v47 = vpop.eup %4082  ;;  %4102 = vpow2.f32 %v2233_v14 }
 0x319   : > { %v4085_v21 = vpop.eup %4084  ;;  %v2383_v10 = vadd.f32 %v4083_v47, %v4081_v49  ;;  %v5973_v36 = vadd.f32 %v4079_v16, %v2379_v39 }
 0x31a   : > { %v4087_v40 = vpop.eup %4086 }
 0x31b   : > { %v4089_v9 = vpop.eup %4088  ;;  %2376 = vadd.xlane.f32.xlu0 %v2375_v28  ;;  %v2384_v3 = vadd.f32 %v4085_v21, %v2383_v10  ;;  %v6640_v10 = vld [vmem:[#allocation93_spill] sm:$0xff] }
 0x31c   : > { %v4091_v27 = vpop.eup %4090 }
 0x31d   : > { %v4093_v24 = vpop.eup %4092  ;;  %v2385_v25 = vadd.f32 %v4087_v40, %v2384_v3  ;;  %v2388_v4 = vadd.f32 %v4091_v27, %v4089_v9 }
 0x31e   : > { %v4095_v32 = vpop.eup %4094 }
 0x31f   : > { %v4097_v20 = vpop.eup %4096  ;;  %2386 = vadd.xlane.f32.xlu0 %v2385_v25  ;;  %v2389_v18 = vadd.f32 %v4093_v24, %v2388_v4 }
 0x320   : > { %v4099_v29 = vpop.eup %4098 }
 0x321   : > { %v2393_v50 = vadd.f32 %v4099_v29, %v4097_v20  ;;  %v5975_v26 = vadd.f32 %v4095_v32, %v2389_v18  ;;  %v4101_v8 = vpop.eup %4100 }
 0x322   : > { %v4103_v41 = vpop.eup %4102 }
 0x323   : > { %v2394_v2 = vadd.f32 %v4101_v8, %v2393_v50  ;;  %v6642_v8 = vld [vmem:[#allocation97_spill] sm:$0xff] }
 0x325   : > { %v2395_v58 = vadd.f32 %v4103_v41, %v2394_v2  ;;  %v6645_v41 = vld [vmem:[#allocation99_spill] sm:$0xff] }
 0x327   : > { %2396 = vadd.xlane.f32.xlu0 %v2395_v58 }
 0x32b   : > { %3080 = vadd.xlane.f32.xlu0 %v5433_v0 }
 0x337   : > { %v3071_v63 = vpop.xlane.xlu0 %3070 }
 0x338   : > { %v3115_v53 = vadd.f32 %v3071_v63, %v2795_v5  ;;  %v6648_v63 = vld [vmem:[#allocation103_spill] sm:$0xff] }
 0x33a   : > { %3147 = vst.msk [vmem:[#allocation4 + $0xe0] sm:$0xff] %vm2435_vm9, %v3115_v53 }
 0x33f   : > { %v2632_v33 = vpop.permute.xlu0 %2631 }
 0x340   : > { %vm2755_vm10 = vcmp.eq.s32.totalorder %v6635_v44, %v2632_v33  ;;  %vm2756_vm11 = vcmp.eq.s32.totalorder %v6636_v30, %v2632_v33  ;;  %vm2757_vm12 = vcmp.eq.s32.totalorder %v6637_v31, %v2632_v33  ;;  %vm2758_vm13 = vcmp.eq.s32.totalorder %v4797_v12, %v2632_v33  ;;  %v6651_v33 = vld [vmem:[#allocation107_spill] sm:$0xff] }
 0x341   : > { %v2915_v38 = vsel %vm2755_vm10, %v5382_v23, 0.0  ;;  %v2916_v42 = vsel %vm2756_vm11, %v6631_v19, 0.0  ;;  %v2917_v13 = vsel %vm2757_vm12, %v5384_v35, 0.0  ;;  %v2918_v14 = vsel %vm2758_vm13, %v6632_v15, 0.0 }
 0x342   : > { %v3072_v1 = vadd.f32 %v2916_v42, %v2915_v38  ;;  %v3066_v51 = vpop.xlane.xlu1 %3065  ;;  %v6654_v38 = vld [vmem:[#allocation111_spill] sm:$0xff] }
 0x343   : > { %v3114_v0 = vadd.f32 %v3066_v51, %v2794_v34  ;;  %v2638_v55 = vpop.permute.xlu0 %2637  ;;  %v1540_v34 = vld [vmem:[#allocation3 + $0x8] sm:$0xff] }
 0x344   : > { %vm2763_vm14 = vcmp.eq.s32.totalorder %v6635_v44, %v2638_v55  ;;  %vm2764_vm15 = vcmp.eq.s32.totalorder %v6636_v30, %v2638_v55  ;;  %vm2765_vm0 = vcmp.eq.s32.totalorder %v6637_v31, %v2638_v55  ;;  %v3073_v60 = vadd.f32 %v3072_v1, %v2917_v13  ;;  %v6653_v31 = vld [vmem:[#allocation110_spill] sm:$0xff] }
 0x345   : > { %3146 = vst.msk [vmem:[#allocation4 + $0xd8] sm:$0xff] %vm2435_vm9, %v3114_v0  ;;  %v2923_v23 = vsel %vm2763_vm14, %v6638_v56, 0.0  ;;  %v2924_v19 = vsel %vm2764_vm15, %v6639_v57, 0.0  ;;  %vm2766_vm1 = vcmp.eq.s32.totalorder %v4797_v12, %v2638_v55  ;;  %v2925_v49 = vsel %vm2765_vm0, %v5418_v59, 0.0  ;;  %v1541_v55 = vld [vmem:[#allocation3 + $0x10] sm:$0xff] }
 0x346   : > { %v3082_v16 = vadd.f32 %v2924_v19, %v2923_v23  ;;  %v3074_v35 = vadd.f32 %v3073_v60, %v2918_v14  ;;  %v2926_v15 = vsel %vm2766_vm1, %v6640_v10, 0.0 }
 0x347   : > { %v1857_v28 = vpop.permute.xlu0 %1856 }
 0x348   : > { %v1983_v39 = vsub.f32 %v6638_v56, %v1857_v28  ;;  %v1984_v47 = vsub.f32 %v6639_v57, %v1857_v28  ;;  %v1985_v21 = vsub.f32 %v5418_v59, %v1857_v28  ;;  %v1986_v40 = vsub.f32 %v6640_v10, %v1857_v28  ;;  %3075 = vadd.xlane.f32.xlu1 %v3074_v35  ;;  %v6657_v56 = vld [vmem:[#allocation115_spill] sm:$0xff]  ;;  %v6659_v28 = vld [vmem:[#allocation118_spill] sm:$0xff] }
 0x349   : > { %v3083_v9 = vadd.f32 %v3082_v16, %v2925_v49  ;;  %v1543_v16 = vld [vmem:[#allocation3 + $0x20] sm:$0xff]  ;;  %v6660_v35 = vld [vmem:[#allocation119_spill] sm:$0xff]  ;;  %v1545_v10 = vld [vmem:[#allocation3 + $0x30] sm:$0xff] }
 0x34a   : > { %v2235_v3 = vmul.f32 1.442695, %v1983_v39  ;;  %v2237_v27 = vmul.f32 1.442695, %v1984_v47  ;;  %v2239_v24 = vmul.f32 1.442695, %v1985_v21  ;;  %v6661_v49 = vsub.f32 %v6659_v28, %v6660_v35 }
 0x34b   : > { %v6000_v12 = vadd.f32 %v3083_v9, %v2926_v15  ;;  %v2241_v25 = vmul.f32 1.442695, %v1986_v40  ;;  %v6662_v9 = vld [vmem:[#allocation122_spill] sm:$0xff]  ;;  %v6681_v35 = vld [vmem:[#allocation147_spill] sm:$0xff] }
 0x34c   : > { %4104 = vpow2.f32 %v2235_v3  ;;  %2246 = vadd.xlane.f32.xlu1 %v5807_v11  ;;  %v6641_v11 = vld [vmem:[#allocation96_spill] sm:$0xff]  ;;  %v1627_v39 = vmul.f32 1.442695, %v6661_v49  ;;  %v6663_v3 = vld [vmem:[#allocation123_spill] sm:$0xff]  ;;  %v6680_v28 = vld [vmem:[#allocation146_spill] sm:$0xff] }
 0x34d   : > { %4106 = vpow2.f32 %v2237_v27  ;;  %v6643_v2 = vsub.f32 %v6641_v11, %v6642_v8  ;;  %v6664_v27 = vsub.f32 %v6662_v9, %v6663_v3  ;;  %v6682_v49 = vsub.f32 %v6680_v28, %v6681_v35  ;;  %v6683_v9 = vld [vmem:[#allocation150_spill] sm:$0xff]  ;;  %v6684_v3 = vld [vmem:[#allocation152_spill] sm:$0xff]  ;;  %v2796_v35 = vld [vmem:[#allocation4 + $0xe8] sm:$0xff] }
 0x34e   : > { %4108 = vpow2.f32 %v2239_v24 }
 0x34f   : > { %4110 = vpow2.f32 %v2241_v25  ;;  %v1631_v15 = vmul.f32 1.442695, %v6664_v27  ;;  %v6685_v27 = vsub.f32 %v6683_v9, %v6684_v3 }
 0x350   : > { %2261 = vadd.xlane.f32.xlu1 %v5826_v7  ;;  %v1605_v7 = vmul.f32 1.442695, %v6643_v2  ;;  %v1549_v2 = vld [vmem:[#allocation3 + $0x50] sm:$0xff] }
 0x352   : > { %4112 = vpow2.f32 %v1605_v7 }
 0x354   : > { %2271 = vadd.xlane.f32.xlu1 %v5840_v43  ;;  %v6644_v43 = vld [vmem:[#allocation98_spill] sm:$0xff] }
 0x355   : > { %v6646_v58 = vsub.f32 %v6644_v43, %v6645_v41  ;;  %v6668_v43 = vld [vmem:[#allocation130_spill] sm:$0xff]  ;;  %v6669_v41 = vld [vmem:[#allocation131_spill] sm:$0xff] }
 0x356   : > { %v4105_v59 = vpop.eup %4104 }
 0x357   : > { %v4107_v4 = vpop.eup %4106  ;;  %v1607_v5 = vmul.f32 1.442695, %v6646_v58  ;;  %v6670_v58 = vsub.f32 %v6668_v43, %v6669_v41 }
 0x358   : > { %v2398_v32 = vadd.f32 %v4107_v4, %v4105_v59  ;;  %v4109_v20 = vpop.eup %4108  ;;  %2281 = vadd.xlane.f32.xlu1 %v5853_v22  ;;  %v6647_v22 = vld [vmem:[#allocation102_spill] sm:$0xff]  ;;  %v1547_v59 = vld [vmem:[#allocation3 + $0x40] sm:$0xff] }
 0x359   : > { %v4111_v29 = vpop.eup %4110  ;;  %4114 = vpow2.f32 %v1607_v5  ;;  %v6649_v53 = vsub.f32 %v6647_v22, %v6648_v63  ;;  %v1639_v5 = vmul.f32 1.442695, %v6670_v58 }
 0x35a   : > { %v2399_v18 = vadd.f32 %v4109_v20, %v2398_v32  ;;  %v6665_v32 = vld [vmem:[#allocation126_spill] sm:$0xff]  ;;  %v6666_v20 = vld [vmem:[#allocation127_spill] sm:$0xff] }
 0x35c   : > { %v6006_v50 = vadd.f32 %v4111_v29, %v2399_v18  ;;  %2291 = vadd.xlane.f32.xlu1 %v5865_v17  ;;  %v1611_v17 = vmul.f32 1.442695, %v6649_v53  ;;  %v6667_v18 = vsub.f32 %v6665_v32, %v6666_v20  ;;  %v1551_v53 = vld [vmem:[#allocation3 + $0x60] sm:$0xff] }
 0x35e   : > { %4116 = vpow2.f32 %v1611_v17  ;;  %v1635_v29 = vmul.f32 1.442695, %v6667_v18 }
 0x360   : > { %2301 = vadd.xlane.f32.xlu1 %v5877_v54  ;;  %v6650_v54 = vld [vmem:[#allocation106_spill] sm:$0xff] }
 0x361   : > { %v6652_v44 = vsub.f32 %v6650_v54, %v6651_v33  ;;  %v6671_v54 = vld [vmem:[#allocation134_spill] sm:$0xff]  ;;  %v6672_v33 = vld [vmem:[#allocation135_spill] sm:$0xff] }
 0x363   : > { %v1615_v30 = vmul.f32 1.442695, %v6652_v44  ;;  %v6673_v44 = vsub.f32 %v6671_v54, %v6672_v33 }
 0x364   : > { %2311 = vadd.xlane.f32.xlu1 %v5889_v61  ;;  %v4113_v61 = vpop.eup %4112 }
 0x365   : > { %4118 = vpow2.f32 %v1615_v30  ;;  %v1668_v1 = vmul.f32 %v4113_v61, %v1540_v34  ;;  %v4115_v51 = vpop.eup %4114 }
 0x368   : > { %2321 = vadd.xlane.f32.xlu1 %v5902_v62  ;;  %v6655_v62 = vsub.f32 %v6653_v31, %v6654_v38  ;;  %v4117_v19 = vpop.eup %4116  ;;  %v1553_v31 = vld [vmem:[#allocation3 + $0x70] sm:$0xff] }
 0x36a   : > { %v1619_v42 = vmul.f32 1.442695, %v6655_v62  ;;  %v6674_v62 = vld [vmem:[#allocation138_spill] sm:$0xff] }
 0x36c   : > { %2331 = vadd.xlane.f32.xlu1 %v5916_v6  ;;  %4120 = vpow2.f32 %v1619_v42  ;;  %v6656_v6 = vld [vmem:[#allocation114_spill] sm:$0xff]  ;;  %v6675_v42 = vld [vmem:[#allocation139_spill] sm:$0xff] }
 0x36d   : > { %v6658_v23 = vsub.f32 %v6656_v6, %v6657_v56  ;;  %v6677_v56 = vld [vmem:[#allocation142_spill] sm:$0xff] }
 0x36f   : > { %v1623_v57 = vmul.f32 1.442695, %v6658_v23  ;;  %v4119_v47 = vpop.eup %4118  ;;  %v6678_v23 = vld [vmem:[#allocation143_spill] sm:$0xff] }
 0x370   : > { %2341 = vadd.xlane.f32.xlu1 %v5930_v48  ;;  %v1669_v48 = vmul.f32 %v4115_v51, %v1541_v55 }
 0x371   : > { %4122 = vpow2.f32 %v1623_v57  ;;  %v6679_v57 = vsub.f32 %v6677_v56, %v6678_v23 }
 0x372   : > { %4124 = vpow2.f32 %v1627_v39  ;;  %v1655_v39 = vmul.f32 1.442695, %v6682_v49 }
 0x373   : > { %4126 = vpow2.f32 %v1631_v15  ;;  %v1659_v15 = vmul.f32 1.442695, %v6685_v27 }
 0x374   : > { %v2252_v0 = vpop.xlane.xlu0 %2251  ;;  %2351 = vadd.xlane.f32.xlu1 %v5944_v52  ;;  %v1671_v52 = vmul.f32 %v4117_v19, %v1543_v16  ;;  %4128 = vpow2.f32 %v1635_v29  ;;  %v1557_v16 = vld [vmem:[#allocation3 + $0x90] sm:$0xff]  ;;  %v1563_v29 = vld [vmem:[#allocation3 + $0xc0] sm:$0xff] }
 0x375   : > { %v2404_v13 = vadd.f32 %v2252_v0, %v1668_v1  ;;  %4130 = vpow2.f32 %v1639_v5  ;;  %v6676_v1 = vsub.f32 %v6674_v62, %v6675_v42  ;;  %v1565_v5 = vld [vmem:[#allocation3 + $0xd0] sm:$0xff] }
 0x376   : > { %v4121_v24 = vpop.eup %4120  ;;  %v2797_v62 = vld [vmem:[#allocation4 + $0xf0] sm:$0xff] }
 0x377   : > { %2437 = vst.msk [vmem:[#allocation3 + $0x8] sm:$0xff] %vm2435_vm9, %v2404_v13  ;;  %v1555_v13 = vld [vmem:[#allocation3 + $0x80] sm:$0xff] }
 0x378   : > { %v2257_v60 = vpop.xlane.xlu0 %2256  ;;  %2361 = vadd.xlane.f32.xlu1 %v5958_v46  ;;  %v1673_v46 = vmul.f32 %v4119_v47, %v1545_v10  ;;  %v1559_v10 = vld [vmem:[#allocation3 + $0xa0] sm:$0xff] }
 0x379   : > { %v2405_v14 = vadd.f32 %v2257_v60, %v1669_v48  ;;  %v1651_v48 = vmul.f32 1.442695, %v6679_v57  ;;  %v6695_v57 = vld [vmem:[#allocation104_spill] sm:$0xff] }
 0x37b   : > { %2438 = vst.msk [vmem:[#allocation3 + $0x10] sm:$0xff] %vm2435_vm9, %v2405_v14  ;;  %v4123_v11 = vpop.eup %4122 }
 0x37c   : > { %v2267_v21 = vpop.xlane.xlu0 %2266  ;;  %2371 = vadd.xlane.f32.xlu1 %v5970_v45  ;;  %v1675_v45 = vmul.f32 %v4121_v24, %v1547_v59  ;;  %v4125_v22 = vpop.eup %4124  ;;  %v1561_v59 = vld [vmem:[#allocation3 + $0xb0] sm:$0xff] }
 0x37d   : > { %v2407_v40 = vadd.f32 %v2267_v21, %v1671_v52  ;;  %v1679_v30 = vmul.f32 %v4125_v22, %v1551_v53  ;;  %v4127_v61 = vpop.eup %4126 }
 0x37e   : > { %v1681_v51 = vmul.f32 %v4127_v61, %v1553_v31  ;;  %v4129_v0 = vpop.eup %4128  ;;  %v1569_v61 = vld [vmem:[#allocation3 + $0xf0] sm:$0xff] }
 0x37f   : > { %2440 = vst.msk [vmem:[#allocation3 + $0x20] sm:$0xff] %vm2435_vm9, %v2407_v40  ;;  %v4131_v19 = vpop.eup %4130 }
 0x380   : > { %v2277_v25 = vpop.xlane.xlu0 %2276  ;;  %2381 = vadd.xlane.f32.xlu1 %v5973_v36  ;;  %v1677_v36 = vmul.f32 %v4123_v11, %v1549_v2  ;;  %v1685_v52 = vmul.f32 %v4131_v19, %v1557_v16  ;;  %v6686_v11 = vld [vmem:[#allocation154_spill] sm:$0xff]  ;;  %v6699_v16 = vld [vmem:[#allocation109_spill] sm:$0xff] }
 0x381   : > { %v2409_v4 = vadd.f32 %v2277_v25, %v1673_v46 }
 0x383   : > { %2442 = vst.msk [vmem:[#allocation3 + $0x30] sm:$0xff] %vm2435_vm9, %v2409_v4 }
 0x384   : > { %v2287_v8 = vpop.xlane.xlu0 %2286  ;;  %2391 = vadd.xlane.f32.xlu1 %v5975_v26  ;;  %v1643_v26 = vmul.f32 1.442695, %v6673_v44 }
 0x385   : > { %v2411_v7 = vadd.f32 %v2287_v8, %v1675_v45  ;;  %v6687_v8 = vld [vmem:[#allocation156_spill] sm:$0xff] }
 0x386   : > { %4132 = vpow2.f32 %v1643_v26  ;;  %v6688_v2 = vsub.f32 %v6686_v11, %v6687_v8  ;;  %v6707_v8 = vld [vmem:[#allocation120_spill] sm:$0xff] }
 0x387   : > { %2444 = vst.msk [vmem:[#allocation3 + $0x40] sm:$0xff] %vm2435_vm9, %v2411_v7 }
 0x388   : > { %v2297_v63 = vpop.xlane.xlu0 %2296  ;;  %2401 = vadd.xlane.f32.xlu1 %v6006_v50  ;;  %v1647_v50 = vmul.f32 1.442695, %v6676_v1  ;;  %v1663_v7 = vmul.f32 1.442695, %v6688_v2  ;;  %v6708_v2 = vld [vmem:[#allocation121_spill] sm:$0xff] }
 0x389   : > { %v2413_v17 = vadd.f32 %v2297_v63, %v1677_v36 }
 0x38a   : > { %4134 = vpow2.f32 %v1647_v50  ;;  %v6689_v50 = vld [vmem:[#allocation94_spill] sm:$0xff] }
 0x38b   : > { %2446 = vst.msk [vmem:[#allocation3 + $0x50] sm:$0xff] %vm2435_vm9, %v2413_v17  ;;  %4136 = vpow2.f32 %v1651_v48  ;;  %v1567_v17 = vld [vmem:[#allocation3 + $0xe0] sm:$0xff]  ;;  %v6696_v48 = vld [vmem:[#allocation105_spill] sm:$0xff] }
 0x38c   : > { %v2307_v34 = vpop.xlane.xlu0 %2306  ;;  %3085 = vadd.xlane.f32.xlu1 %v6000_v12  ;;  %v1683_v12 = vmul.f32 %v4129_v0, %v1555_v13  ;;  %4138 = vpow2.f32 %v1655_v39  ;;  %v6692_v13 = vld [vmem:[#allocation100_spill] sm:$0xff] }
 0x38d   : > { %v2415_v38 = vadd.f32 %v2307_v34, %v1679_v30  ;;  %4140 = vpow2.f32 %v1659_v15 }
 0x38e   : > { %4142 = vpow2.f32 %v1663_v7  ;;  %v6709_v7 = vsub.f32 %v6707_v8, %v6708_v2  ;;  %v6728_v8 = vld [vmem:[#allocation148_spill] sm:$0xff]  ;;  %v6729_v2 = vld [vmem:[#allocation149_spill] sm:$0xff] }
 0x38f   : > { %2448 = vst.msk [vmem:[#allocation3 + $0x60] sm:$0xff] %vm2435_vm9, %v2415_v38 }
 0x390   : > { %v2317_v55 = vpop.xlane.xlu0 %2316  ;;  %v4133_v47 = vpop.eup %4132 }
 0x391   : > { %v2417_v6 = vadd.f32 %v2317_v55, %v1681_v51  ;;  %v1687_v46 = vmul.f32 %v4133_v47, %v1559_v10  ;;  %v6690_v51 = vld [vmem:[#allocation95_spill] sm:$0xff]  ;;  %v6702_v10 = vld [vmem:[#allocation113_spill] sm:$0xff] }
 0x392   : > { %v6691_v0 = vsub.f32 %v6689_v50, %v6690_v51  ;;  %v1550_v51 = vld [vmem:[#allocation3 + $0x58] sm:$0xff] }
 0x393   : > { %2450 = vst.msk [vmem:[#allocation3 + $0x70] sm:$0xff] %vm2435_vm9, %v2417_v6  ;;  %v6693_v6 = vld [vmem:[#allocation101_spill] sm:$0xff] }
 0x394   : > { %v2327_v60 = vpop.xlane.xlu0 %2326  ;;  %v4135_v24 = vpop.eup %4134  ;;  %v1603_v55 = vmul.f32 1.442695, %v6691_v0  ;;  %v6694_v56 = vsub.f32 %v6692_v13, %v6693_v6  ;;  %v6717_v13 = vld [vmem:[#allocation133_spill] sm:$0xff] }
 0x395   : > { %v2419_v14 = vadd.f32 %v2327_v60, %v1683_v12  ;;  %v1689_v32 = vmul.f32 %v4135_v24, %v1561_v59  ;;  %v4137_v20 = vpop.eup %4136  ;;  %v6697_v12 = vsub.f32 %v6695_v57, %v6696_v48  ;;  %v6698_v60 = vld [vmem:[#allocation108_spill] sm:$0xff]  ;;  %v6705_v59 = vld [vmem:[#allocation117_spill] sm:$0xff] }
 0x396   : > { %v1691_v43 = vmul.f32 %v4137_v20, %v1563_v29  ;;  %v4139_v41 = vpop.eup %4138  ;;  %4144 = vpow2.f32 %v1603_v55  ;;  %v1609_v23 = vmul.f32 1.442695, %v6694_v56  ;;  %v6716_v55 = vld [vmem:[#allocation132_spill] sm:$0xff] }
 0x397   : > { %2452 = vst.msk [vmem:[#allocation3 + $0x80] sm:$0xff] %vm2435_vm9, %v2419_v14  ;;  %v1693_v22 = vmul.f32 %v4139_v41, %v1565_v5  ;;  %v4141_v63 = vpop.eup %4140  ;;  %v1613_v19 = vmul.f32 1.442695, %v6697_v12  ;;  %v6700_v14 = vsub.f32 %v6698_v60, %v6699_v16  ;;  %v6718_v6 = vsub.f32 %v6716_v55, %v6717_v13  ;;  %v1552_v12 = vld [vmem:[#allocation3 + $0x68] sm:$0xff]  ;;  %v6719_v60 = vld [vmem:[#allocation136_spill] sm:$0xff] }
 0x398   : > { %v2337_v21 = vpop.xlane.xlu0 %2336  ;;  %v1695_v33 = vmul.f32 %v4141_v63, %v1567_v17  ;;  %v4143_v30 = vpop.eup %4142  ;;  %4146 = vpow2.f32 %v1609_v23  ;;  %v6710_v63 = vld [vmem:[#allocation124_spill] sm:$0xff]  ;;  %v6720_v16 = vld [vmem:[#allocation137_spill] sm:$0xff] }
 0x399   : > { %v2421_v40 = vadd.f32 %v2337_v21, %v1685_v52  ;;  %v1697_v34 = vmul.f32 %v4143_v30, %v1569_v61  ;;  %4148 = vpow2.f32 %v1613_v19  ;;  %v1617_v28 = vmul.f32 1.442695, %v6700_v14  ;;  %v1539_v52 = vld [vmem:[#allocation3] sm:$0xff]  ;;  %v1548_v30 = vld [vmem:[#allocation3 + $0x48] sm:$0xff] }
 0x39a   : > { %v6701_v21 = vld [vmem:[#allocation112_spill] sm:$0xff]  ;;  %v1641_v56 = vmul.f32 1.442695, %v6718_v6  ;;  %v6721_v14 = vsub.f32 %v6719_v60, %v6720_v16  ;;  %v1566_v6 = vld [vmem:[#allocation3 + $0xd8] sm:$0xff] }
 0x39b   : > { %2454 = vst.msk [vmem:[#allocation3 + $0x90] sm:$0xff] %vm2435_vm9, %v2421_v40  ;;  %4150 = vpow2.f32 %v1617_v28  ;;  %v6703_v40 = vsub.f32 %v6701_v21, %v6702_v10  ;;  %v6722_v21 = vld [vmem:[#allocation140_spill] sm:$0xff]  ;;  %v6723_v10 = vld [vmem:[#allocation141_spill] sm:$0xff] }
 0x39c   : > { %v2347_v25 = vpop.xlane.xlu0 %2346  ;;  %v1645_v28 = vmul.f32 1.442695, %v6721_v14  ;;  %v1570_v14 = vld [vmem:[#allocation3 + $0xf8] sm:$0xff] }
 0x39d   : > { %v2423_v4 = vadd.f32 %v2347_v25, %v1687_v46  ;;  %v1621_v9 = vmul.f32 1.442695, %v6703_v40  ;;  %v1542_v46 = vld [vmem:[#allocation3 + $0x18] sm:$0xff]  ;;  %v6704_v25 = vld [vmem:[#allocation116_spill] sm:$0xff]  ;;  %v6724_v40 = vsub.f32 %v6722_v21, %v6723_v10 }
 0x39f   : > { %2456 = vst.msk [vmem:[#allocation3 + $0xa0] sm:$0xff] %vm2435_vm9, %v2423_v4  ;;  %4152 = vpow2.f32 %v1621_v9  ;;  %v6706_v4 = vsub.f32 %v6704_v25, %v6705_v59  ;;  %v1649_v9 = vmul.f32 1.442695, %v6724_v40  ;;  %v6725_v25 = vld [vmem:[#allocation144_spill] sm:$0xff]  ;;  %v6726_v59 = vld [vmem:[#allocation145_spill] sm:$0xff] }
 0x3a0   : > { %v2357_v18 = vpop.xlane.xlu0 %2356  ;;  %v4145_v49 = vpop.eup %4144  ;;  %v3188_v40 = vld [vmem:[#allocation3 + $0x8] sm:$0xff] (!%p3628_p10) }
 0x3a1   : > { %v2425_v45 = vadd.f32 %v2357_v18, %v1689_v32  ;;  %v1667_v3 = vmul.f32 %v4145_v49, %v1539_v52  ;;  %v1625_v32 = vmul.f32 1.442695, %v6706_v4  ;;  %v1554_v52 = vld [vmem:[#allocation3 + $0x78] sm:$0xff]  ;;  %v6727_v4 = vsub.f32 %v6725_v25, %v6726_v59  ;;  %v3195_v25 = vld [vmem:[#allocation3 + $0x40] sm:$0xff] (!%p3628_p10) }
 0x3a2   : > { %v4147_v27 = vpop.eup %4146 }
 0x3a3   : > { %2458 = vst.msk [vmem:[#allocation3 + $0xb0] sm:$0xff] %vm2435_vm9, %v2425_v45  ;;  %v1670_v20 = vmul.f32 %v4147_v27, %v1542_v46  ;;  %v4149_v18 = vpop.eup %4148  ;;  %v1544_v45 = vld [vmem:[#allocation3 + $0x28] sm:$0xff]  ;;  %4154 = vpow2.f32 %v1625_v32  ;;  %v1653_v32 = vmul.f32 1.442695, %v6727_v4  ;;  %v3197_v4 = vld [vmem:[#allocation3 + $0x50] sm:$0xff] (!%p3628_p10) }
 0x3a4   : > { %v2367_v58 = vpop.xlane.xlu0 %2366  ;;  %v1672_v41 = vmul.f32 %v4149_v18, %v1544_v45  ;;  %v1556_v46 = vld [vmem:[#allocation3 + $0x88] sm:$0xff]  ;;  %v1558_v45 = vld [vmem:[#allocation3 + $0x98] sm:$0xff] }
 0x3a5   : > { %v2427_v36 = vadd.f32 %v2367_v58, %v1691_v43  ;;  %v1629_v43 = vmul.f32 1.442695, %v6709_v7  ;;  %v4151_v58 = vpop.eup %4150  ;;  %v6730_v7 = vsub.f32 %v6728_v8, %v6729_v2  ;;  %v3199_v8 = vld [vmem:[#allocation3 + $0x60] sm:$0xff] (!%p3628_p10) }
 0x3a7   : > { %2460 = vst.msk [vmem:[#allocation3 + $0xc0] sm:$0xff] %vm2435_vm9, %v2427_v36  ;;  %v1546_v36 = vld [vmem:[#allocation3 + $0x38] sm:$0xff]  ;;  %4156 = vpow2.f32 %v1629_v43  ;;  %v1657_v43 = vmul.f32 1.442695, %v6730_v7  ;;  %v3315_v7 = vld [vmem:[#allocation4] sm:$0xff] (!%p3628_p10) }
 0x3a8   : > { %v2377_v53 = vpop.xlane.xlu0 %2376 }
 0x3a9   : > { %v2429_v54 = vadd.f32 %v2377_v53, %v1693_v22  ;;  %v6711_v53 = vld [vmem:[#allocation125_spill] sm:$0xff] }
 0x3aa   : > { %v6712_v17 = vsub.f32 %v6710_v63, %v6711_v53  ;;  %v6731_v63 = vld [vmem:[#allocation151_spill] sm:$0xff]  ;;  %v6732_v53 = vld [vmem:[#allocation153_spill] sm:$0xff] }
 0x3ab   : > { %2462 = vst.msk [vmem:[#allocation3 + $0xd0] sm:$0xff] %vm2435_vm9, %v2429_v54 }
 0x3ac   : > { %v2387_v44 = vpop.xlane.xlu0 %2386  ;;  %v1633_v54 = vmul.f32 1.442695, %v6712_v17  ;;  %v6733_v17 = vsub.f32 %v6731_v63, %v6732_v53  ;;  %v3158_v53 = vld [vmem:[#allocation2 + $0x18] sm:$0xff] (!%p3628_p10) }
 0x3ad   : > { %v2431_v26 = vadd.f32 %v2387_v44, %v1695_v33  ;;  %v1674_v33 = vmul.f32 %v4151_v58, %v1546_v36  ;;  %v4153_v44 = vpop.eup %4152  ;;  %v1560_v36 = vld [vmem:[#allocation3 + $0xa8] sm:$0xff] }
 0x3ae   : > { %4158 = vpow2.f32 %v1633_v54  ;;  %v1661_v54 = vmul.f32 1.442695, %v6733_v17  ;;  %v3201_v17 = vld [vmem:[#allocation3 + $0x70] sm:$0xff] (!%p3628_p10) }
 0x3af   : > { %2464 = vst.msk [vmem:[#allocation3 + $0xe0] sm:$0xff] %vm2435_vm9, %v2431_v26 }
 0x3b4   : > { %v2397_v31 = vpop.xlane.xlu0 %2396 }
 0x3b5   : > { %v2433_v38 = vadd.f32 %v2397_v31, %v1697_v34  ;;  %v6713_v34 = vld [vmem:[#allocation128_spill] sm:$0xff]  ;;  %v6714_v31 = vld [vmem:[#allocation129_spill] sm:$0xff] }
 0x3b7   : > { %2466 = vst.msk [vmem:[#allocation3 + $0xf0] sm:$0xff] %vm2435_vm9, %v2433_v38  ;;  %v6715_v38 = vsub.f32 %v6713_v34, %v6714_v31  ;;  %v6734_v34 = vld [vmem:[#allocation155_spill] sm:$0xff] }
 0x3b8   : > { %v3081_v42 = vpop.xlane.xlu0 %3080  ;;  %v6735_v31 = vsub.f32 %v6734_v34, %v5776_v37 }
 0x3b9   : > { %v3117_v1 = vadd.f32 %v3081_v42, %v2797_v62  ;;  %v1637_v62 = vmul.f32 1.442695, %v6715_v38  ;;  %v1676_v42 = vmul.f32 %v4153_v44, %v1548_v30  ;;  %v1562_v30 = vld [vmem:[#allocation3 + $0xb8] sm:$0xff] }
 0x3ba   : > { %v1665_v38 = vmul.f32 1.442695, %v6735_v31 }
 0x3bb   : > { %3149 = vst.msk [vmem:[#allocation4 + $0xf0] sm:$0xff] %vm2435_vm9, %v3117_v1  ;;  %v4155_v1 = vpop.eup %4154  ;;  %4160 = vpow2.f32 %v1637_v62 }
 0x3bc   : > { %v1678_v23 = vmul.f32 %v4155_v1, %v1550_v51  ;;  %v4157_v57 = vpop.eup %4156  ;;  %4162 = vpow2.f32 %v1641_v56 }
 0x3bd   : > { %v4159_v49 = vpop.eup %4158  ;;  %4164 = vpow2.f32 %v1645_v28 }
 0x3be   : > { %4166 = vpow2.f32 %v1649_v9  ;;  %v3189_v9 = vld [vmem:[#allocation3 + $0x10] sm:$0xff] (!%p3628_p10) }
 0x3bf   : > { %4168 = vpow2.f32 %v1653_v32 }
 0x3c0   : > { %4170 = vpow2.f32 %v1657_v43 }
 0x3c1   : > { %4172 = vpow2.f32 %v1661_v54 }
 0x3c2   : > { %4174 = vpow2.f32 %v1665_v38 }
 0x3c5   : > { %v4161_v27 = vpop.eup %4160 }
 0x3c6   : > { %v4163_v18 = vpop.eup %4162 }
 0x3c7   : > { %v4165_v58 = vpop.eup %4164 }
 0x3c8   : > { %v4167_v44 = vpop.eup %4166 }
 0x3c9   : > { %v1690_v62 = vmul.f32 %v4167_v44, %v1562_v30  ;;  %v3317_v44 = vld [vmem:[#allocation4 + $0x10] sm:$0xff] (!%p3628_p10)  ;;  %v3159_v30 = vld [vmem:[#allocation2 + $0x20] sm:$0xff] (!%p3628_p10) }
 0x3d5   : > { %v3076_v39 = vpop.xlane.xlu1 %3075 }
 0x3d6   : > { %v3116_v47 = vadd.f32 %v3076_v39, %v2796_v35  ;;  %v1680_v35 = vmul.f32 %v4157_v57, %v1552_v12 }
 0x3d8   : > { %3148 = vst.msk [vmem:[#allocation4 + $0xe8] sm:$0xff] %vm2435_vm9, %v3116_v47 }
 0x3d9   : > { %v2247_v15 = vpop.xlane.xlu1 %2246 }
 0x3da   : > { %v2403_v24 = vadd.f32 %v2247_v15, %v1667_v3  ;;  %v1682_v3 = vmul.f32 %v4159_v49, %v1554_v52  ;;  %v2798_v52 = vld [vmem:[#allocation4 + $0xf8] sm:$0xff] }
 0x3dc   : > { %2436 = vst.msk [vmem:[#allocation3] sm:$0xff] %vm2435_vm9, %v2403_v24 }
 0x3dd   : > { %v2262_v29 = vpop.xlane.xlu1 %2261 }
 0x3de   : > { %v2406_v11 = vadd.f32 %v2262_v29, %v1670_v20  ;;  %v1684_v20 = vmul.f32 %v4161_v27, %v1556_v46  ;;  %v3191_v27 = vld [vmem:[#allocation3 + $0x20] sm:$0xff] (!%p3628_p10)  ;;  %v3193_v46 = vld [vmem:[#allocation3 + $0x30] sm:$0xff] (!%p3628_p10) }
 0x3e0   : > { %2439 = vst.msk [vmem:[#allocation3 + $0x18] sm:$0xff] %vm2435_vm9, %v2406_v11 }
 0x3e1   : > { %v2272_v5 = vpop.xlane.xlu1 %2271 }
 0x3e2   : > { %v2408_v22 = vadd.f32 %v2272_v5, %v1672_v41  ;;  %v1686_v41 = vmul.f32 %v4163_v18, %v1558_v45 }
 0x3e3   : > { %v3187_v10 = vld [vmem:[#allocation3] sm:$0xff] (!%p3628_p10) }
 0x3e4   : > { %2441 = vst.msk [vmem:[#allocation3 + $0x28] sm:$0xff] %vm2435_vm9, %v2408_v22  ;;  %4176 = vlog2.f32 (!%p3628_p10), %v3187_v10 }
 0x3e5   : > { %v2282_v26 = vpop.xlane.xlu1 %2281  ;;  %4178 = vlog2.f32 (!%p3628_p10), %v3188_v40 }
 0x3e6   : > { %v2410_v61 = vadd.f32 %v2282_v26, %v1674_v33  ;;  %v1688_v33 = vmul.f32 %v4165_v58, %v1560_v36  ;;  %4180 = vlog2.f32 (!%p3628_p10), %v3189_v9  ;;  %v3322_v9 = vld [vmem:[#allocation4 + $0x38] sm:$0xff] (!%p3628_p10) }
 0x3e8   : > { %2443 = vst.msk [vmem:[#allocation3 + $0x38] sm:$0xff] %vm2435_vm9, %v2410_v61 }
 0x3e9   : > { %v2292_v50 = vpop.xlane.xlu1 %2291 }
 0x3ea   : > { %v2412_v0 = vadd.f32 %v2292_v50, %v1676_v42  ;;  %v4169_v42 = vpop.eup %4168  ;;  %v1564_v50 = vld [vmem:[#allocation3 + $0xc8] sm:$0xff] }
 0x3eb   : > { %v4171_v55 = vpop.eup %4170 }
 0x3ec   : > { %2445 = vst.msk [vmem:[#allocation3 + $0x48] sm:$0xff] %vm2435_vm9, %v2412_v0  ;;  %v1692_v0 = vmul.f32 %v4169_v42, %v1564_v50  ;;  %v4173_v37 = vpop.eup %4172  ;;  %v3203_v50 = vld [vmem:[#allocation3 + $0x80] sm:$0xff] (!%p3628_p10) }
 0x3ed   : > { %v2302_v48 = vpop.xlane.xlu1 %2301  ;;  %v4175_v60 = vpop.eup %4174 }
 0x3ee   : > { %v2414_v19 = vadd.f32 %v2302_v48, %v1678_v23  ;;  %v1694_v23 = vmul.f32 %v4171_v55, %v1566_v6  ;;  %v1568_v48 = vld [vmem:[#allocation3 + $0xe8] sm:$0xff]  ;;  %v4177_v32 = vpop.eup (!%p3628_p10), %4176 }
 0x3ef   : > { %v3220_v45 = vmul.f32 (!%p3628_p10), 0.6931472, %v4177_v32  ;;  %v3165_v32 = vld [vmem:[#allocation2 + $0x50] sm:$0xff] (!%p3628_p10) }
 0x3f0   : > { %2447 = vst.msk [vmem:[#allocation3 + $0x58] sm:$0xff] %vm2435_vm9, %v2414_v19  ;;  %v1696_v19 = vmul.f32 %v4173_v37, %v1568_v48 }
 0x3f1   : > { %v2312_v39 = vpop.xlane.xlu1 %2311 }
 0x3f2   : > { %v2416_v47 = vadd.f32 %v2312_v39, %v1680_v35  ;;  %v1698_v35 = vmul.f32 %v4175_v60, %v1570_v14  ;;  %v3162_v60 = vld [vmem:[#allocation2 + $0x38] sm:$0xff] (!%p3628_p10) }
 0x3f3   : > { %v3196_v59 = vld [vmem:[#allocation3 + $0x48] sm:$0xff] (!%p3628_p10) }
 0x3f4   : > { %2449 = vst.msk [vmem:[#allocation3 + $0x68] sm:$0xff] %vm2435_vm9, %v2416_v47 }
 0x3f5   : > { %v2322_v15 = vpop.xlane.xlu1 %2321 }
 0x3f6   : > { %v2418_v24 = vadd.f32 %v2322_v15, %v1682_v3  ;;  %v3190_v3 = vld [vmem:[#allocation3 + $0x18] sm:$0xff] (!%p3628_p10)  ;;  %v3192_v15 = vld [vmem:[#allocation3 + $0x28] sm:$0xff] (!%p3628_p10) }
 0x3f7   : > { %4182 = vlog2.f32 (!%p3628_p10), %v3190_v3  ;;  %v3198_v18 = vld [vmem:[#allocation3 + $0x58] sm:$0xff] (!%p3628_p10) }
 0x3f8   : > { %2451 = vst.msk [vmem:[#allocation3 + $0x78] sm:$0xff] %vm2435_vm9, %v2418_v24  ;;  %4184 = vlog2.f32 (!%p3628_p10), %v3191_v27  ;;  %v3194_v24 = vld [vmem:[#allocation3 + $0x38] sm:$0xff] (!%p3628_p10)  ;;  %v3164_v27 = vld [vmem:[#allocation2 + $0x48] sm:$0xff] (!%p3628_p10) }
 0x3f9   : > { %v2332_v29 = vpop.xlane.xlu1 %2331  ;;  %4186 = vlog2.f32 (!%p3628_p10), %v3192_v15  ;;  %v3207_v15 = vld [vmem:[#allocation3 + $0xa0] sm:$0xff] (!%p3628_p10) }
 0x3fa   : > { %v2420_v11 = vadd.f32 %v2332_v29, %v1684_v20  ;;  %4188 = vlog2.f32 (!%p3628_p10), %v3193_v46  ;;  %v3155_v20 = vld [vmem:[#allocation2] sm:$0xff] (!%p3628_p10)  ;;  %v4179_v29 = vpop.eup (!%p3628_p10), %4178 }
 0x3fb   : > { %4190 = vlog2.f32 (!%p3628_p10), %v3194_v24  ;;  %v4181_v2 = vpop.eup (!%p3628_p10), %4180  ;;  %v3222_v43 = vmul.f32 (!%p3628_p10), 0.6931472, %v4179_v29  ;;  %v3200_v58 = vld [vmem:[#allocation3 + $0x68] sm:$0xff] (!%p3628_p10)  ;;  %v3283_v36 = vadd.f32 (!%p3628_p10), %v3220_v45, %v3155_v20 }
 0x3fc   : > { %2453 = vst.msk [vmem:[#allocation3 + $0x88] sm:$0xff] %vm2435_vm9, %v2420_v11  ;;  %4192 = vlog2.f32 (!%p3628_p10), %v3195_v25  ;;  %v3156_v11 = vld [vmem:[#allocation2 + $0x8] sm:$0xff] (!%p3628_p10)  ;;  %v3224_v63 = vmul.f32 (!%p3628_p10), 0.6931472, %v4181_v2  ;;  %v3166_v2 = vld [vmem:[#allocation2 + $0x58] sm:$0xff] (!%p3628_p10) }
 0x3fd   : > { %v2342_v5 = vpop.xlane.xlu1 %2341  ;;  %4194 = vlog2.f32 (!%p3628_p10), %v3196_v59  ;;  %v3347_v31 = vsub.f32 (!%p3628_p10), %v3283_v36, %v3315_v7  ;;  %v3323_v59 = vld [vmem:[#allocation4 + $0x40] sm:$0xff] (!%p3628_p10)  ;;  %v3209_v7 = vld [vmem:[#allocation3 + $0xb0] sm:$0xff] (!%p3628_p10) }
 0x3fe   : > { %v2422_v22 = vadd.f32 %v2342_v5, %v1686_v41  ;;  %4196 = vlog2.f32 (!%p3628_p10), %v3197_v4  ;;  %v3157_v41 = vld [vmem:[#allocation2 + $0x10] sm:$0xff] (!%p3628_p10) }
 0x3ff   : > { %4198 = vlog2.f32 (!%p3628_p10), %v3198_v18  ;;  %v3285_v38 = vadd.f32 (!%p3628_p10), %v3224_v63, %v3157_v41  ;;  %3379 = vst.msk [vmem:[%s4498_s28] sm:$0xff] (!%p3628_p10), %vm2435_vm9, %v3347_v31 }
 0x400   : > { %2455 = vst.msk [vmem:[#allocation3 + $0x98] sm:$0xff] %vm2435_vm9, %v2422_v22  ;;  %4200 = vlog2.f32 (!%p3628_p10), %v3199_v8  ;;  %v3316_v22 = vld [vmem:[#allocation4 + $0x8] sm:$0xff] (!%p3628_p10) }
 0x401   : > { %v2352_v26 = vpop.xlane.xlu1 %2351  ;;  %v4183_v5 = vpop.eup (!%p3628_p10), %4182  ;;  %4202 = vlog2.f32 (!%p3628_p10), %v3200_v58 }
 0x402   : > { %v2424_v61 = vadd.f32 %v2352_v26, %v1688_v33  ;;  %v4185_v54 = vpop.eup (!%p3628_p10), %4184  ;;  %v3284_v33 = vadd.f32 (!%p3628_p10), %v3222_v43, %v3156_v11  ;;  %v3226_v26 = vmul.f32 (!%p3628_p10), 0.6931472, %v4183_v5  ;;  %4204 = vlog2.f32 (!%p3628_p10), %v3201_v17  ;;  %v3324_v11 = vld [vmem:[#allocation4 + $0x48] sm:$0xff] (!%p3628_p10)  ;;  %v3325_v5 = vld [vmem:[#allocation4 + $0x50] sm:$0xff] (!%p3628_p10) }
 0x403   : > { %v4187_v34 = vpop.eup (!%p3628_p10), %4186  ;;  %v3228_v42 = vmul.f32 (!%p3628_p10), 0.6931472, %v4185_v54 }
 0x404   : > { %2457 = vst.msk [vmem:[#allocation3 + $0xa8] sm:$0xff] %vm2435_vm9, %v2424_v61  ;;  %v3202_v61 = vld [vmem:[#allocation3 + $0x78] sm:$0xff] (!%p3628_p10)  ;;  %v3286_v55 = vadd.f32 (!%p3628_p10), %v3226_v26, %v3158_v53  ;;  %v3230_v6 = vmul.f32 (!%p3628_p10), 0.6931472, %v4187_v34  ;;  %v3168_v26 = vld [vmem:[#allocation2 + $0x68] sm:$0xff] (!%p3628_p10) }
 0x405   : > { %v2362_v1 = vpop.xlane.xlu1 %2361  ;;  %4206 = vlog2.f32 (!%p3628_p10), %v3202_v61  ;;  %v3287_v48 = vadd.f32 (!%p3628_p10), %v3228_v42, %v3159_v30  ;;  %v3211_v30 = vld [vmem:[#allocation3 + $0xc0] sm:$0xff] (!%p3628_p10)  ;;  %v3169_v42 = vld [vmem:[#allocation2 + $0x70] sm:$0xff] (!%p3628_p10) }
 0x406   : > { %v2426_v51 = vadd.f32 %v2362_v1, %v1690_v62  ;;  %v3318_v62 = vld [vmem:[#allocation4 + $0x18] sm:$0xff] (!%p3628_p10)  ;;  %v3160_v1 = vld [vmem:[#allocation2 + $0x28] sm:$0xff] (!%p3628_p10)  ;;  %4208 = vlog2.f32 (!%p3628_p10), %v3203_v50 }
 0x408   : > { %2459 = vst.msk [vmem:[#allocation3 + $0xb8] sm:$0xff] %vm2435_vm9, %v2426_v51  ;;  %v4189_v51 = vpop.eup (!%p3628_p10), %4188 }
 0x409   : > { %v2372_v13 = vpop.xlane.xlu1 %2371  ;;  %v4191_v37 = vpop.eup (!%p3628_p10), %4190 }
 0x40a   : > { %v2428_v56 = vadd.f32 %v2372_v13, %v1692_v0  ;;  %v3348_v0 = vsub.f32 (!%p3628_p10), %v3284_v33, %v3316_v22  ;;  %v3319_v13 = vld [vmem:[#allocation4 + $0x20] sm:$0xff] (!%p3628_p10)  ;;  %v4193_v14 = vpop.eup (!%p3628_p10), %4192  ;;  %v3326_v33 = vld [vmem:[#allocation4 + $0x58] sm:$0xff] (!%p3628_p10) }
 0x40b   : > { %v3351_v10 = vsub.f32 (!%p3628_p10), %v3287_v48, %v3319_v13  ;;  %v3236_v3 = vmul.f32 (!%p3628_p10), 0.6931472, %v4193_v14  ;;  %v3208_v20 = vld [vmem:[#allocation3 + $0xa8] sm:$0xff] (!%p3628_p10)  ;;  %v3167_v22 = vld [vmem:[#allocation2 + $0x60] sm:$0xff] (!%p3628_p10)  ;;  %v3329_v48 = vld [vmem:[#allocation4 + $0x70] sm:$0xff] (!%p3628_p10) }
 0x40c   : > { %2461 = vst.msk [vmem:[#allocation3 + $0xc8] sm:$0xff] %vm2435_vm9, %v2428_v56  ;;  %v3161_v56 = vld [vmem:[#allocation2 + $0x30] sm:$0xff] (!%p3628_p10)  ;;  %3380 = vst.msk [vmem:[%s4498_s28 + $0x8] sm:$0xff] (!%p3628_p10), %vm2435_vm9, %v3348_v0 }
 0x40d   : > { %v2382_v57 = vpop.xlane.xlu1 %2381  ;;  %3383 = vst.msk [vmem:[%s4498_s28 + $0x20] sm:$0xff] (!%p3628_p10), %vm2435_vm9, %v3351_v10 }
 0x40e   : > { %v2430_v12 = vadd.f32 %v2382_v57, %v1694_v23  ;;  %v3204_v23 = vld [vmem:[#allocation3 + $0x88] sm:$0xff] (!%p3628_p10)  ;;  %v3349_v57 = vsub.f32 (!%p3628_p10), %v3285_v38, %v3317_v44  ;;  %v3327_v38 = vld [vmem:[#allocation4 + $0x60] sm:$0xff] (!%p3628_p10) }
 0x40f   : > { %4210 = vlog2.f32 (!%p3628_p10), %v3204_v23  ;;  %v3210_v63 = vld [vmem:[#allocation3 + $0xb8] sm:$0xff] (!%p3628_p10) }
 0x410   : > { %2463 = vst.msk [vmem:[#allocation3 + $0xd8] sm:$0xff] %vm2435_vm9, %v2430_v12  ;;  %v3320_v12 = vld [vmem:[#allocation4 + $0x28] sm:$0xff] (!%p3628_p10)  ;;  %3381 = vst.msk [vmem:[%s4498_s28 + $0x10] sm:$0xff] (!%p3628_p10), %vm2435_vm9, %v3349_v57 }
 0x411   : > { %v2392_v16 = vpop.xlane.xlu1 %2391 }
 0x412   : > { %v2432_v28 = vadd.f32 %v2392_v16, %v1696_v19  ;;  %v3232_v19 = vmul.f32 (!%p3628_p10), 0.6931472, %v4189_v51  ;;  %v3205_v16 = vld [vmem:[#allocation3 + $0x90] sm:$0xff] (!%p3628_p10) }
 0x413   : > { %4212 = vlog2.f32 (!%p3628_p10), %v3205_v16 }
 0x414   : > { %2465 = vst.msk [vmem:[#allocation3 + $0xe8] sm:$0xff] %vm2435_vm9, %v2432_v28  ;;  %v3350_v28 = vsub.f32 (!%p3628_p10), %v3286_v55, %v3318_v62  ;;  %v3289_v40 = vadd.f32 (!%p3628_p10), %v3232_v19, %v3161_v56  ;;  %v3328_v55 = vld [vmem:[#allocation4 + $0x68] sm:$0xff] (!%p3628_p10)  ;;  %v3213_v56 = vld [vmem:[#allocation3 + $0xd0] sm:$0xff] (!%p3628_p10)  ;;  %v3171_v19 = vld [vmem:[#allocation2 + $0x80] sm:$0xff] (!%p3628_p10) }
 0x415   : > { %v2402_v49 = vpop.xlane.xlu1 %2401 }
 0x416   : > { %v2434_v39 = vadd.f32 %v2402_v49, %v1698_v35  ;;  %3154 = sbr.rel (%p3628_p10) target bundleno = 1082 (0x43a), region = 44  ;;  %v3288_v35 = vadd.f32 (!%p3628_p10), %v3230_v6, %v3160_v1  ;;  %v3321_v49 = vld [vmem:[#allocation4 + $0x30] sm:$0xff] (!%p3628_p10)  ;;  %3382 = vst.msk [vmem:[%s4498_s28 + $0x18] sm:$0xff] (!%p3628_p10), %vm2435_vm9, %v3350_v28  ;;  %v3212_v1 = vld [vmem:[#allocation3 + $0xc8] sm:$0xff] (!%p3628_p10)  ;;  %v3170_v6 = vld [vmem:[#allocation2 + $0x78] sm:$0xff] (!%p3628_p10) }
 0x417   : > { %v3353_v29 = vsub.f32 (!%p3628_p10), %v3289_v40, %v3321_v49  ;;  %v3331_v40 = vld [vmem:[#allocation4 + $0x80] sm:$0xff] (!%p3628_p10) }
 0x418   : > { %2467 = vst.msk [vmem:[#allocation3 + $0xf8] sm:$0xff] %vm2435_vm9, %v2434_v39  ;;  %v3234_v39 = vmul.f32 (!%p3628_p10), 0.6931472, %v4191_v37  ;;  %v3352_v24 = vsub.f32 (!%p3628_p10), %v3288_v35, %v3320_v12  ;;  %v3330_v35 = vld [vmem:[#allocation4 + $0x78] sm:$0xff] (!%p3628_p10) }
 0x419   : > { %v3086_v47 = vpop.xlane.xlu1 %3085  ;;  %3385 = vst.msk [vmem:[%s4498_s28 + $0x30] sm:$0xff] (!%p3628_p10), %vm2435_vm9, %v3353_v29 }
 0x41a   : > { %v3118_v21 = vadd.f32 %v3086_v47, %v2798_v52  ;;  %v3163_v52 = vld [vmem:[#allocation2 + $0x40] sm:$0xff] (!%p3628_p10)  ;;  %v3206_v47 = vld [vmem:[#allocation3 + $0x98] sm:$0xff] (!%p3628_p10)  ;;  %v3290_v25 = vadd.f32 (!%p3628_p10), %v3234_v39, %v3162_v60  ;;  %3384 = vst.msk [vmem:[%s4498_s28 + $0x28] sm:$0xff] (!%p3628_p10), %vm2435_vm9, %v3352_v24  ;;  %v3172_v39 = vld [vmem:[#allocation2 + $0x88] sm:$0xff] (!%p3628_p10) }
 0x41b   : > { %4214 = vlog2.f32 (!%p3628_p10), %v3206_v47  ;;  %v3291_v45 = vadd.f32 (!%p3628_p10), %v3236_v3, %v3163_v52  ;;  %v3214_v60 = vld [vmem:[#allocation3 + $0xd8] sm:$0xff] (!%p3628_p10)  ;;  %v3215_v52 = vld [vmem:[#allocation3 + $0xe0] sm:$0xff] (!%p3628_p10)  ;;  %v3173_v3 = vld [vmem:[#allocation2 + $0x90] sm:$0xff] (!%p3628_p10) }
 0x41c   : > { %3150 = vst.msk [vmem:[#allocation4 + $0xf8] sm:$0xff] %vm2435_vm9, %v3118_v21  ;;  %v4195_v21 = vpop.eup (!%p3628_p10), %4194  ;;  %4216 = vlog2.f32 (!%p3628_p10), %v3207_v15  ;;  %v3354_v41 = vsub.f32 (!%p3628_p10), %v3290_v25, %v3322_v9  ;;  %v3332_v25 = vld [vmem:[#allocation4 + $0x88] sm:$0xff] (!%p3628_p10) }
 0x41d   : > { %v4197_v46 = vpop.eup %4196  ;;  %v3238_v4 = vmul.f32 0.6931472, %v4195_v21  ;;  %4218 = vlog2.f32 %v3208_v20  ;;  %v3355_v17 = vsub.f32 %v3291_v45, %v3323_v59  ;;  %v3333_v45 = vld [vmem:[#allocation4 + $0x90] sm:$0xff] }
 0x41e   : > { %v4199_v18 = vpop.eup %4198  ;;  %v3240_v8 = vmul.f32 0.6931472, %v4197_v46  ;;  %4220 = vlog2.f32 %v3209_v7  ;;  %3386 = vst.msk [vmem:[%s4498_s28 + $0x38] sm:$0xff] %vm2435_vm9, %v3354_v41 }
 0x41f   : > { %v4201_v43 = vpop.eup %4200  ;;  %v3292_v58 = vadd.f32 %v3238_v4, %v3164_v27  ;;  %v3242_v36 = vmul.f32 0.6931472, %v4199_v18  ;;  %4222 = vlog2.f32 %v3210_v63  ;;  %3387 = vst.msk [vmem:[%s4498_s28 + $0x40] sm:$0xff] %vm2435_vm9, %v3355_v17  ;;  %v3216_v27 = vld [vmem:[#allocation3 + $0xe8] sm:$0xff]  ;;  %v3174_v4 = vld [vmem:[#allocation2 + $0x98] sm:$0xff]  ;;  %v3335_v17 = vld [vmem:[#allocation4 + $0xa0] sm:$0xff] }
 0x420   : > { %v4203_v53 = vpop.eup %4202  ;;  %v3293_v54 = vadd.f32 %v3240_v8, %v3165_v32  ;;  %v3244_v44 = vmul.f32 0.6931472, %v4201_v43  ;;  %4224 = vlog2.f32 %v3211_v30  ;;  %v3217_v32 = vld [vmem:[#allocation3 + $0xf0] sm:$0xff]  ;;  %v3175_v8 = vld [vmem:[#allocation2 + $0xa0] sm:$0xff] }
 0x421   : > { %v4205_v61 = vpop.eup %4204  ;;  %v3356_v34 = vsub.f32 %v3292_v58, %v3324_v11  ;;  %v3294_v31 = vadd.f32 %v3242_v36, %v3166_v2  ;;  %v3246_v62 = vmul.f32 0.6931472, %v4203_v53  ;;  %4226 = vlog2.f32 %v3212_v1  ;;  %v3218_v2 = vld [vmem:[#allocation3 + $0xf8] sm:$0xff]  ;;  %v3176_v36 = vld [vmem:[#allocation2 + $0xa8] sm:$0xff]  ;;  %v3337_v1 = vld [vmem:[#allocation4 + $0xb0] sm:$0xff] }
 0x422   : > { %v4207_v50 = vpop.eup %4206  ;;  %v3357_v51 = vsub.f32 %v3293_v54, %v3325_v5  ;;  %v3295_v0 = vadd.f32 %v3244_v44, %v3167_v22  ;;  %v3248_v13 = vmul.f32 0.6931472, %v4205_v61  ;;  %4228 = vlog2.f32 %v3213_v56  ;;  %v3334_v58 = vld [vmem:[#allocation4 + $0x98] sm:$0xff]  ;;  %v3336_v61 = vld [vmem:[#allocation4 + $0xa8] sm:$0xff] }
 0x423   : > { %v4209_v23 = vpop.eup %4208  ;;  %3388 = vst.msk [vmem:[%s4498_s28 + $0x48] sm:$0xff] %vm2435_vm9, %v3356_v34  ;;  %v3358_v37 = vsub.f32 %v3294_v31, %v3326_v33  ;;  %v3296_v57 = vadd.f32 %v3246_v62, %v3168_v26  ;;  %v3250_v12 = vmul.f32 0.6931472, %v4207_v50  ;;  %4230 = vlog2.f32 %v3214_v60  ;;  %v3177_v33 = vld [vmem:[#allocation2 + $0xb0] sm:$0xff]  ;;  %v3178_v31 = vld [vmem:[#allocation2 + $0xb8] sm:$0xff] }
 0x424   : > { %v4211_v16 = vpop.eup %4210  ;;  %3389 = vst.msk [vmem:[%s4498_s28 + $0x50] sm:$0xff] %vm2435_vm9, %v3357_v51  ;;  %v3359_v14 = vsub.f32 %v3295_v0, %v3327_v38  ;;  %v3297_v28 = vadd.f32 %v3248_v13, %v3169_v42  ;;  %v3252_v49 = vmul.f32 0.6931472, %v4209_v23  ;;  %4232 = vlog2.f32 %v3215_v52  ;;  %v3179_v51 = vld [vmem:[#allocation2 + $0xc0] sm:$0xff]  ;;  %v3180_v23 = vld [vmem:[#allocation2 + $0xc8] sm:$0xff]  ;;  %v3181_v60 = vld [vmem:[#allocation2 + $0xd0] sm:$0xff] }
 0x425   : > { %v4213_v47 = vpop.eup %4212  ;;  %3390 = vst.msk [vmem:[%s4498_s28 + $0x58] sm:$0xff] %vm2435_vm9, %v3358_v37  ;;  %v3360_v21 = vsub.f32 %v3296_v57, %v3328_v55  ;;  %v3298_v10 = vadd.f32 %v3250_v12, %v3170_v6  ;;  %v3254_v9 = vmul.f32 0.6931472, %v4211_v16  ;;  %4234 = vlog2.f32 %v3216_v27  ;;  %v3338_v6 = vld [vmem:[#allocation4 + $0xb8] sm:$0xff]  ;;  %v3339_v12 = vld [vmem:[#allocation4 + $0xc0] sm:$0xff] }
 0x426   : > { %v4215_v15 = vpop.eup %4214  ;;  %3391 = vst.msk [vmem:[%s4498_s28 + $0x60] sm:$0xff] %vm2435_vm9, %v3359_v14  ;;  %v3361_v46 = vsub.f32 %v3297_v28, %v3329_v48  ;;  %v3299_v24 = vadd.f32 %v3252_v49, %v3171_v19  ;;  %v3256_v59 = vmul.f32 0.6931472, %v4213_v47  ;;  %4236 = vlog2.f32 %v3217_v32 }
 0x427   : > { %v4217_v20 = vpop.eup %4216  ;;  %3392 = vst.msk [vmem:[%s4498_s28 + $0x68] sm:$0xff] %vm2435_vm9, %v3360_v21  ;;  %v3362_v18 = vsub.f32 %v3298_v10, %v3330_v35  ;;  %v3300_v29 = vadd.f32 %v3254_v9, %v3172_v39  ;;  %v3258_v11 = vmul.f32 0.6931472, %v4215_v15  ;;  %4238 = vlog2.f32 %v3218_v2  ;;  %v3340_v35 = vld [vmem:[#allocation4 + $0xc8] sm:$0xff]  ;;  %v3182_v39 = vld [vmem:[#allocation2 + $0xd8] sm:$0xff]  ;;  %v3341_v10 = vld [vmem:[#allocation4 + $0xd0] sm:$0xff] }
 0x428   : > { %v4219_v7 = vpop.eup %4218  ;;  %3393 = vst.msk [vmem:[%s4498_s28 + $0x70] sm:$0xff] %vm2435_vm9, %v3361_v46  ;;  %v3363_v43 = vsub.f32 %v3299_v24, %v3331_v40  ;;  %v3301_v41 = vadd.f32 %v3256_v59, %v3173_v3  ;;  %v3260_v5 = vmul.f32 0.6931472, %v4217_v20  ;;  %v3183_v9 = vld [vmem:[#allocation2 + $0xe0] sm:$0xff]  ;;  %v3342_v46 = vld [vmem:[#allocation4 + $0xd8] sm:$0xff]  ;;  %v3344_v2 = vld [vmem:[#allocation4 + $0xe8] sm:$0xff] }
 0x429   : > { %v4221_v22 = vpop.eup %4220  ;;  %3394 = vst.msk [vmem:[%s4498_s28 + $0x78] sm:$0xff] %vm2435_vm9, %v3362_v18  ;;  %v3364_v63 = vsub.f32 %v3300_v29, %v3332_v25  ;;  %v3302_v53 = vadd.f32 %v3258_v11, %v3174_v4  ;;  %v3262_v54 = vmul.f32 0.6931472, %v4219_v7  ;;  %v3184_v25 = vld [vmem:[#allocation2 + $0xe8] sm:$0xff]  ;;  %v3343_v20 = vld [vmem:[#allocation4 + $0xe0] sm:$0xff]  ;;  %v3185_v29 = vld [vmem:[#allocation2 + $0xf0] sm:$0xff] }
 0x42a   : > { %v4223_v44 = vpop.eup %4222  ;;  %3395 = vst.msk [vmem:[%s4498_s28 + $0x80] sm:$0xff] %vm2435_vm9, %v3363_v43  ;;  %v3365_v26 = vsub.f32 %v3301_v41, %v3333_v45  ;;  %v3303_v30 = vadd.f32 %v3260_v5, %v3175_v8  ;;  %v3264_v34 = vmul.f32 0.6931472, %v4221_v22  ;;  %v3186_v43 = vld [vmem:[#allocation2 + $0xf8] sm:$0xff]  ;;  %v3345_v5 = vld [vmem:[#allocation4 + $0xf0] sm:$0xff] }
 0x42b   : > { %v4225_v38 = vpop.eup %4224  ;;  %3396 = vst.msk [vmem:[%s4498_s28 + $0x88] sm:$0xff] %vm2435_vm9, %v3364_v63  ;;  %v3366_v62 = vsub.f32 %v3302_v53, %v3334_v58  ;;  %v3304_v42 = vadd.f32 %v3262_v54, %v3176_v36  ;;  %v3266_v50 = vmul.f32 0.6931472, %v4223_v44  ;;  %v3346_v53 = vld [vmem:[#allocation4 + $0xf8] sm:$0xff] }
 0x42c   : > { %v4227_v0 = vpop.eup %4226  ;;  %3397 = vst.msk [vmem:[%s4498_s28 + $0x90] sm:$0xff] %vm2435_vm9, %v3365_v26  ;;  %v3367_v55 = vsub.f32 %v3303_v30, %v3335_v17  ;;  %v3305_v13 = vadd.f32 %v3264_v34, %v3177_v33  ;;  %v3268_v56 = vmul.f32 0.6931472, %v4225_v38 }
 0x42d   : > { %v4229_v37 = vpop.eup %4228  ;;  %3398 = vst.msk [vmem:[%s4498_s28 + $0x98] sm:$0xff] %vm2435_vm9, %v3366_v62  ;;  %v3368_v57 = vsub.f32 %v3304_v42, %v3336_v61  ;;  %v3306_v48 = vadd.f32 %v3266_v50, %v3178_v31  ;;  %v3270_v19 = vmul.f32 0.6931472, %v4227_v0 }
 0x42e   : > { %v4231_v16 = vpop.eup %4230  ;;  %3399 = vst.msk [vmem:[%s4498_s28 + $0xa0] sm:$0xff] %vm2435_vm9, %v3367_v55  ;;  %v3369_v14 = vsub.f32 %v3305_v13, %v3337_v1  ;;  %v3307_v28 = vadd.f32 %v3268_v56, %v3179_v51  ;;  %v3272_v49 = vmul.f32 0.6931472, %v4229_v37 }
 0x42f   : > { %v4233_v52 = vpop.eup %4232  ;;  %3400 = vst.msk [vmem:[%s4498_s28 + $0xa8] sm:$0xff] %vm2435_vm9, %v3368_v57  ;;  %v3370_v47 = vsub.f32 %v3306_v48, %v3338_v6  ;;  %v3308_v21 = vadd.f32 %v3270_v19, %v3180_v23  ;;  %v3274_v40 = vmul.f32 0.6931472, %v4231_v16 }
 0x430   : > { %v4235_v3 = vpop.eup %4234  ;;  %3401 = vst.msk [vmem:[%s4498_s28 + $0xb0] sm:$0xff] %vm2435_vm9, %v3369_v14  ;;  %v3371_v27 = vsub.f32 %v3307_v28, %v3339_v12  ;;  %v3309_v15 = vadd.f32 %v3272_v49, %v3181_v60  ;;  %v3276_v24 = vmul.f32 0.6931472, %v4233_v52 }
 0x431   : > { %v4237_v59 = vpop.eup %4236  ;;  %3402 = vst.msk [vmem:[%s4498_s28 + $0xb8] sm:$0xff] %vm2435_vm9, %v3370_v47  ;;  %v3372_v4 = vsub.f32 %v3308_v21, %v3340_v35  ;;  %v3310_v32 = vadd.f32 %v3274_v40, %v3182_v39  ;;  %v3278_v18 = vmul.f32 0.6931472, %v4235_v3 }
 0x432   : > { %v4239_v45 = vpop.eup %4238  ;;  %3403 = vst.msk [vmem:[%s4498_s28 + $0xc0] sm:$0xff] %vm2435_vm9, %v3371_v27  ;;  %v3373_v11 = vsub.f32 %v3309_v15, %v3341_v10  ;;  %v3311_v8 = vadd.f32 %v3276_v24, %v3183_v9  ;;  %v3280_v7 = vmul.f32 0.6931472, %v4237_v59 }
 0x433   : > { %3404 = vst.msk [vmem:[%s4498_s28 + $0xc8] sm:$0xff] %vm2435_vm9, %v3372_v4  ;;  %v3374_v41 = vsub.f32 %v3310_v32, %v3342_v46  ;;  %v3312_v58 = vadd.f32 %v3278_v18, %v3184_v25  ;;  %v3282_v36 = vmul.f32 0.6931472, %v4239_v45 }
 0x434   : > { %3405 = vst.msk [vmem:[%s4498_s28 + $0xd0] sm:$0xff] %vm2435_vm9, %v3373_v11  ;;  %v3375_v22 = vsub.f32 %v3311_v8, %v3343_v20  ;;  %v3313_v63 = vadd.f32 %v3280_v7, %v3185_v29 }
 0x435   : > { %3406 = vst.msk [vmem:[%s4498_s28 + $0xd8] sm:$0xff] %vm2435_vm9, %v3374_v41  ;;  %v3376_v17 = vsub.f32 %v3312_v58, %v3344_v2  ;;  %v3314_v54 = vadd.f32 %v3282_v36, %v3186_v43 }
 0x436   : > { %3407 = vst.msk [vmem:[%s4498_s28 + $0xe0] sm:$0xff] %vm2435_vm9, %v3375_v22  ;;  %v3377_v33 = vsub.f32 %v3313_v63, %v3345_v5 }
 0x437   : > { %3408 = vst.msk [vmem:[%s4498_s28 + $0xe8] sm:$0xff] %vm2435_vm9, %v3376_v17  ;;  %v3378_v44 = vsub.f32 %v3314_v54, %v3346_v53 }
 0x438   : > { %3409 = vst.msk [vmem:[%s4498_s28 + $0xf0] sm:$0xff] %vm2435_vm9, %v3377_v33 }
 0x439   : > { %3410 = vst.msk [vmem:[%s4498_s28 + $0xf8] sm:$0xff] %vm2435_vm9, %v3378_v44 }
 0x43a PF: > { %s16_s19 = sadd.s32 1, %s4336_s19   ;;  %s6736_s12 = smov %s4312_s13 }
 0x43b   : > { %p13_p6 = scmp.ge.s32.totalorder %s16_s19, 6   ;;  %s6737_s13 = smov %s4316_s14 }
 0x43c   : > { %s6738_s14 = smov %s4423_s26  ;;  %s6739_s15 = smov %s4328_s17 }
 0x43d   : > { %s6740_s16 = smov %s4332_s18  ;;  %s6741_s17 = smov %s6744_s21 }
 0x43e   : > { %s6742_s18 = smov %s6748_s22  ;;  %15 = sbr.rel (!%p13_p6) target bundleno = 5 (0x5), region = 86 }
 0x445   :  { %3433 = vsyncpa [#allocation6], 1 }
 0x446   :  { %3435 = vsyncpa [#allocation6 + $0x1], 1 }

</bundles_post_ra>
